<compile_context>
chip_gen: v5e
topology: v5e:2x2
jax: 0.10.0
libtpu: 0.0.40
codegen_flags: <defaults>
</compile_context>

<pallas_src>
import jax
import jax.numpy as jnp
from jax.experimental import pallas as pl
from jax.experimental.pallas import tpu as pltpu

# ----------------------------- config ---------------------------------------
B = 2              # batch
IMG = 32           # image size (scaled down from 256)
PATCH = 16
C_IN = 3
N_PATCH = (IMG // PATCH) ** 2     # 4
S_IMG = N_PATCH + 1               # 5 (cls token)
D = 64             # embed dim (scaled down from 768)
NH = 4             # heads (scaled down from 12)
DH = D // NH
MLP = 4 * D        # mlp_ratio = 4
VIT_DEPTH = 2      # scaled down from 12
BERT_LAYERS = 2
SEQ = 8            # text length
VOCAB = 100
MAX_POS = 16
LN_EPS_VIT = 1e-6
LN_EPS_BERT = 1e-12
ATTN_SCALE = DH ** -0.5
VMEM_LIMIT = 32 * 1024 * 1024     # raise explicitly at production sizes


# ------------------------- in-kernel math helpers ----------------------------
def _ln(x, g, b, eps):
    # LayerNorm in f32; g/b are [1, D] rows broadcast over tokens.
    mean = jnp.mean(x, axis=-1, keepdims=True)
    var = jnp.mean(jnp.square(x - mean), axis=-1, keepdims=True)
    return (x - mean) * jax.lax.rsqrt(var + eps) * g + b


def _matmul(x, w, b):
    # bf16 operands into the MXU, f32 accumulation, bias add in f32.
    y = jnp.dot(x.astype(jnp.bfloat16), w, preferred_element_type=jnp.float32)
    return y + b


def _gelu(x):
    # TODO(synk): exact erf-GELU (torch.nn.GELU / BERT "gelu") replaced by the
    # tanh approximation for robust Mosaic lowering.
    return jax.nn.gelu(x, approximate=True)


def _attention(q, k, v, add_mask, o_w, o_b, scale):
    # q: [RQ, D] f32, k/v: [RK, D] f32 (batch rows flattened; cross-batch
    # attention blocked by add_mask).  o_w: [D, D] bf16 output projection.
    # bf16 casts hoisted out of the head loop; each head's (p @ v_h) is folded
    # straight into its slice of the output projection and accumulated, so no
    # lane-concat of head outputs is ever materialized.
    qb = q.astype(jnp.bfloat16)
    kb = k.astype(jnp.bfloat16)
    vb = v.astype(jnp.bfloat16)
    out = jnp.zeros((q.shape[0], D), jnp.float32)
    for h in range(NH):
        sl = slice(h * DH, (h + 1) * DH)
        s = jax.lax.dot_general(qb[:, sl], kb[:, sl], (((1,), (1,)), ((), ())),
                                preferred_element_type=jnp.float32) * scale
        s = s + add_mask
        s = s - jnp.max(s, axis=-1, keepdims=True)
        p = jnp.exp(s)
        p = p * pl.reciprocal(jnp.sum(p, axis=-1, keepdims=True), approx=True)
        o_h = jnp.dot(p.astype(jnp.bfloat16), vb[:, sl],
                      preferred_element_type=jnp.float32)
        out = out + jnp.dot(o_h.astype(jnp.bfloat16), o_w[sl, :],
                            preferred_element_type=jnp.float32)
    return out + o_b


# --------------------------- fused Pallas kernels -----------------------------
def _vit_kernel(x_ref, mask_ref,
                ln1_g, ln1_b, qkv_w, qkv_b, proj_w, proj_b,
                ln2_g, ln2_b, fc1_w, fc1_b, fc2_w, fc2_b,
                lnf_g, lnf_b, o_ref):
    # One grid step == one ViT encoder block; o_ref (constant index map) is
    # the resident activation carry across the layer grid axis.
    layer = pl.program_id(0)

    @pl.when(layer == 0)
    def _init():
        o_ref[...] = x_ref[...]

    x = o_ref[...]                       # [B*S_IMG, D] f32
    mask = mask_ref[...]                 # additive batch-block mask

    # pre-LN self-attention sub-layer (residual folded in)
    h = _ln(x, ln1_g[0], ln1_b[0], LN_EPS_VIT)
    qkv = _matmul(h, qkv_w[0], qkv_b[0])                       # [R, 3D]
    x = x + _attention(qkv[:, :D], qkv[:, D:2 * D], qkv[:, 2 * D:],
                       mask, proj_w[0], proj_b[0], ATTN_SCALE)

    # pre-LN MLP sub-layer
    h = _ln(x, ln2_g[0], ln2_b[0], LN_EPS_VIT)
    h = _gelu(_matmul(h, fc1_w[0], fc1_b[0]))
    x = x + _matmul(h, fc2_w[0], fc2_b[0])

    o_ref[...] = x

    @pl.when(layer == pl.num_programs(0) - 1)
    def _final():
        # final ViT LayerNorm folded into the last grid step
        o_ref[...] = _ln(x, lnf_g[...], lnf_b[...], LN_EPS_VIT)


def _bert_kernel(emb_ref, img_ref, smask_ref, xmask_ref,
                 emb_ln_g, emb_ln_b,
                 sa_qkv_w, sa_qkv_b, sa_o_w, sa_o_b, sa_ln_g, sa_ln_b,
                 ca_q_w, ca_q_b, ca_kv_w, ca_kv_b, ca_o_w, ca_o_b,
                 ca_ln_g, ca_ln_b,
                 ff_i_w, ff_i_b, ff_o_w, ff_o_b, ff_ln_g, ff_ln_b, o_ref):
    # One grid step == one full BERT layer (self-attn + cross-attn + FF).
    layer = pl.program_id(0)

    @pl.when(layer == 0)
    def _init():
        # BertEmbeddings LayerNorm folded into the first grid step.
        o_ref[...] = _ln(emb_ref[...], emb_ln_g[...], emb_ln_b[...], LN_EPS_BERT)

    x = o_ref[...]                       # [B*SEQ, D] f32
    img = img_ref[...]                   # [B*S_IMG, D] f32 (resident across layers)
    smask = smask_ref[...]               # batch-block + text padding mask
    xmask = xmask_ref[...]               # batch-block mask (image atts all-ones)

    # --- self-attention (packed QKV) ---
    qkv = _matmul(x, sa_qkv_w[0], sa_qkv_b[0])                 # [Rt, 3D]
    a = _attention(qkv[:, :D], qkv[:, D:2 * D], qkv[:, 2 * D:],
                   smask, sa_o_w[0], sa_o_b[0], ATTN_SCALE)
    x = _ln(x + a, sa_ln_g[0], sa_ln_b[0], LN_EPS_BERT)

    # --- cross-attention over image embeds (packed KV) ---
    q = _matmul(x, ca_q_w[0], ca_q_b[0])
    kv = _matmul(img, ca_kv_w[0], ca_kv_b[0])                  # [Ri, 2D]
    a = _attention(q, kv[:, :D], kv[:, D:], xmask,
                   ca_o_w[0], ca_o_b[0], ATTN_SCALE)
    x = _ln(x + a, ca_ln_g[0], ca_ln_b[0], LN_EPS_BERT)

    # --- feed-forward ---
    h = _gelu(_matmul(x, ff_i_w[0], ff_i_b[0]))
    h = _matmul(h, ff_o_w[0], ff_o_b[0])
    o_ref[...] = _ln(x + h, ff_ln_g[0], ff_ln_b[0], LN_EPS_BERT)


# ------------------------------ BlockSpec helpers -----------------------------
def _const_spec(shape):
    # Full-array block with a constant index map -> resident across grid steps.
    nd = len(shape)
    return pl.BlockSpec(shape, lambda l, _n=nd: (0,) * _n)


def _stacked_spec(shape):
    # Per-layer block of a weight stacked along a leading layer axis.
    nd = len(shape)
    return pl.BlockSpec((1,) + shape, lambda l, _n=nd: (l,) + (0,) * _n)


# ------------------------------ kernel wrappers -------------------------------
def run_vit_blocks(p, x0, batch_mask):
    R = B * S_IMG
    flops = VIT_DEPTH * (2 * R * D * 3 * D + 4 * R * R * D + 2 * R * D * D
                         + 4 * R * D * MLP)
    trans = VIT_DEPTH * (NH * R * R + R * MLP)
    nbytes = (VIT_DEPTH * 2 * (D * 3 * D + D * D + 2 * D * MLP)   # bf16 weights
              + 4 * (2 * R * D + R * R))
    return pl.pallas_call(
        _vit_kernel,
        grid=(VIT_DEPTH,),
        in_specs=[
            _const_spec((R, D)),                       # x0
            _const_spec((R, R)),                       # batch-block mask
            _stacked_spec((1, D)), _stacked_spec((1, D)),          # ln1
            _stacked_spec((D, 3 * D)), _stacked_spec((1, 3 * D)),  # qkv
            _stacked_spec((D, D)), _stacked_spec((1, D)),          # proj
            _stacked_spec((1, D)), _stacked_spec((1, D)),          # ln2
            _stacked_spec((D, MLP)), _stacked_spec((1, MLP)),      # fc1
            _stacked_spec((MLP, D)), _stacked_spec((1, D)),        # fc2
            _const_spec((1, D)), _const_spec((1, D)),              # final LN
        ],
        out_specs=_const_spec((R, D)),
        out_shape=jax.ShapeDtypeStruct((R, D), jnp.float32),
        compiler_params=pltpu.CompilerParams(
            dimension_semantics=("arbitrary",),
            vmem_limit_bytes=VMEM_LIMIT),
        cost_estimate=pl.CostEstimate(flops=int(flops), transcendentals=int(trans),
                                      bytes_accessed=int(nbytes)),
    )(x0, batch_mask,
      p["vit_ln1_g"], p["vit_ln1_b"], p["vit_qkv_w"], p["vit_qkv_b"],
      p["vit_proj_w"], p["vit_proj_b"], p["vit_ln2_g"], p["vit_ln2_b"],
      p["vit_fc1_w"], p["vit_fc1_b"], p["vit_fc2_w"], p["vit_fc2_b"],
      p["vit_lnf_g"], p["vit_lnf_b"])


def run_bert_layers(p, emb, img, self_mask, cross_mask):
    Rt, Ri = B * SEQ, B * S_IMG
    flops = BERT_LAYERS * (2 * Rt * D * 3 * D + 4 * Rt * Rt * D + 2 * Rt * D * D
                           + 2 * Rt * D * D + 2 * Ri * D * 2 * D
                           + 4 * Rt * Ri * D + 2 * Rt * D * D
                           + 4 * Rt * D * MLP)
    trans = BERT_LAYERS * (NH * Rt * Rt + NH * Rt * Ri + Rt * MLP)
    nbytes = (BERT_LAYERS * 2 * (D * 3 * D + 2 * D * D + D * 2 * D + D * D
                                 + 2 * D * MLP)
              + 4 * (2 * Rt * D + Ri * D + Rt * Rt + Rt * Ri))
    return pl.pallas_call(
        _bert_kernel,
        grid=(BERT_LAYERS,),
        in_specs=[
            _const_spec((Rt, D)),                      # embeddings (pre-LN)
            _const_spec((Ri, D)),                      # image embeds
            _const_spec((Rt, Rt)),                     # self-attn mask
            _const_spec((Rt, Ri)),                     # cross-attn mask
            _const_spec((1, D)), _const_spec((1, D)),  # embedding LN
            _stacked_spec((D, 3 * D)), _stacked_spec((1, 3 * D)),  # sa qkv
            _stacked_spec((D, D)), _stacked_spec((1, D)),          # sa out
            _stacked_spec((1, D)), _stacked_spec((1, D)),          # sa LN
            _stacked_spec((D, D)), _stacked_spec((1, D)),          # ca q
            _stacked_spec((D, 2 * D)), _stacked_spec((1, 2 * D)),  # ca kv
            _stacked_spec((D, D)), _stacked_spec((1, D)),          # ca out
            _stacked_spec((1, D)), _stacked_spec((1, D)),          # ca LN
            _stacked_spec((D, MLP)), _stacked_spec((1, MLP)),      # ff in
            _stacked_spec((MLP, D)), _stacked_spec((1, D)),        # ff out
            _stacked_spec((1, D)), _stacked_spec((1, D)),          # ff LN
        ],
        out_specs=_const_spec((Rt, D)),
        out_shape=jax.ShapeDtypeStruct((Rt, D), jnp.float32),
        compiler_params=pltpu.CompilerParams(
            dimension_semantics=("arbitrary",),
            vmem_limit_bytes=VMEM_LIMIT),
        cost_estimate=pl.CostEstimate(flops=int(flops), transcendentals=int(trans),
                                      bytes_accessed=int(nbytes)),
    )(emb, img, self_mask, cross_mask,
      p["emb_ln_g"], p["emb_ln_b"],
      p["sa_qkv_w"], p["sa_qkv_b"], p["sa_o_w"], p["sa_o_b"],
      p["sa_ln_g"], p["sa_ln_b"],
      p["ca_q_w"], p["ca_q_b"], p["ca_kv_w"], p["ca_kv_b"],
      p["ca_o_w"], p["ca_o_b"], p["ca_ln_g"], p["ca_ln_b"],
      p["ff_i_w"], p["ff_i_b"], p["ff_o_w"], p["ff_o_b"],
      p["ff_ln_g"], p["ff_ln_b"])


# ------------------------------ parameters -----------------------------------
def init_params(key):
    keys = iter(jax.random.split(key, 64))

    def w(shape, scale=0.02):
        # matmul weights stored bf16 (MXU-native on v6e/v7x, halves DMA bytes)
        return (scale * jax.random.normal(next(keys), shape)).astype(jnp.bfloat16)

    def wf32(shape, scale=0.02):
        return (scale * jax.random.normal(next(keys), shape)).astype(jnp.float32)

    zeros = lambda s: jnp.zeros(s, jnp.float32)
    ones = lambda s: jnp.ones(s, jnp.float32)

    p = {}
    # --- VisionTransformer (patch=16, pre-LN blocks, final LN) ---
    p["patch_w"] = wf32((C_IN * PATCH * PATCH, D))   # conv weight flattened (c,i,j)
    p["patch_b"] = zeros((1, D))
    p["cls"] = wf32((1, 1, D))
    p["pos"] = wf32((1, S_IMG, D))
    Lv = VIT_DEPTH
    p["vit_ln1_g"] = ones((Lv, 1, D));  p["vit_ln1_b"] = zeros((Lv, 1, D))
    p["vit_qkv_w"] = w((Lv, D, 3 * D)); p["vit_qkv_b"] = zeros((Lv, 1, 3 * D))
    p["vit_proj_w"] = w((Lv, D, D));    p["vit_proj_b"] = zeros((Lv, 1, D))
    p["vit_ln2_g"] = ones((Lv, 1, D));  p["vit_ln2_b"] = zeros((Lv, 1, D))
    p["vit_fc1_w"] = w((Lv, D, MLP));   p["vit_fc1_b"] = zeros((Lv, 1, MLP))
    p["vit_fc2_w"] = w((Lv, MLP, D));   p["vit_fc2_b"] = zeros((Lv, 1, D))
    p["vit_lnf_g"] = ones((1, D));      p["vit_lnf_b"] = zeros((1, D))

    # --- BertModel (add_pooling_layer=False) with cross-attention to image ---
    p["word_emb"] = wf32((VOCAB, D))
    p["pos_emb"] = wf32((MAX_POS, D))
    p["type_emb"] = wf32((2, D))
    p["emb_ln_g"] = ones((1, D)); p["emb_ln_b"] = zeros((1, D))
    Lb = BERT_LAYERS
    p["sa_qkv_w"] = w((Lb, D, 3 * D)); p["sa_qkv_b"] = zeros((Lb, 1, 3 * D))
    p["sa_o_w"] = w((Lb, D, D));       p["sa_o_b"] = zeros((Lb, 1, D))
    p["sa_ln_g"] = ones((Lb, 1, D));   p["sa_ln_b"] = zeros((Lb, 1, D))
    p["ca_q_w"] = w((Lb, D, D));       p["ca_q_b"] = zeros((Lb, 1, D))
    p["ca_kv_w"] = w((Lb, D, 2 * D));  p["ca_kv_b"] = zeros((Lb, 1, 2 * D))
    p["ca_o_w"] = w((Lb, D, D));       p["ca_o_b"] = zeros((Lb, 1, D))
    p["ca_ln_g"] = ones((Lb, 1, D));   p["ca_ln_b"] = zeros((Lb, 1, D))
    p["ff_i_w"] = w((Lb, D, MLP));     p["ff_i_b"] = zeros((Lb, 1, MLP))
    p["ff_o_w"] = w((Lb, MLP, D));     p["ff_o_b"] = zeros((Lb, 1, D))
    p["ff_ln_g"] = ones((Lb, 1, D));   p["ff_ln_b"] = zeros((Lb, 1, D))
    # itm_head = nn.Linear(768, 2): defined in __init__ but unused in forward()
    p["itm_w"] = wf32((D, 2)); p["itm_b"] = zeros((1, 2))
    return p


# ------------------------------ model forward --------------------------------
def _batch_block_mask(bx, sq, sk):
    # Additive mask that blocks attention across different batch rows once the
    # batch is flattened into the token axis (tiny; computed in XLA glue).
    qb = jnp.repeat(jnp.arange(bx), sq)[:, None]
    kb = jnp.repeat(jnp.arange(bx), sk)[None, :]
    return jnp.where(qb == kb, 0.0, -1e9).astype(jnp.float32)


def vl_transformer_itm_forward(p, image, text, text_mask):
    Bx = image.shape[0]
    # --- ViT patch embedding (glue; one tiny GEMM kept in XLA) ---
    x = image.reshape(Bx, C_IN, IMG // PATCH, PATCH, IMG // PATCH, PATCH)
    x = x.transpose(0, 2, 4, 1, 3, 5).reshape(Bx * N_PATCH, C_IN * PATCH * PATCH)
    x = jnp.dot(x, p["patch_w"]) + p["patch_b"]
    x = x.reshape(Bx, N_PATCH, D)
    cls = jnp.broadcast_to(p["cls"], (Bx, 1, D))
    x = jnp.concatenate([cls, x], axis=1) + p["pos"]            # [B, S_IMG, D]

    vit_mask = _batch_block_mask(Bx, S_IMG, S_IMG)
    image_embeds_flat = run_vit_blocks(p, x.reshape(Bx * S_IMG, D), vit_mask)
    image_embeds = image_embeds_flat.reshape(Bx, S_IMG, D)

    # --- BERT embeddings + masks (glue: lookups, adds, tiny mask math) ---
    L = text.shape[1]
    tok = jnp.take(p["word_emb"], text, axis=0)
    emb = tok + p["pos_emb"][:L][None] + p["type_emb"][0][None, None]
    pad_add = ((1.0 - text_mask.astype(jnp.float32)) * -10000.0).reshape(1, Bx * L)
    self_mask = _batch_block_mask(Bx, L, L) + pad_add
    cross_mask = _batch_block_mask(Bx, L, S_IMG)   # image_atts = ones -> no pad term

    text_embeds_flat = run_bert_layers(p, emb.reshape(Bx * L, D),
                                       image_embeds_flat, self_mask, cross_mask)
    text_embeds = text_embeds_flat.reshape(Bx, L, D)
    return image_embeds, text_embeds


# ---------------------------------- main --------------------------------------
if __name__ == "__main__":
    key = jax.random.PRNGKey(0)
    pkey, ikey, tkey = jax.random.split(key, 3)
    params = init_params(pkey)

    image = jax.random.normal(ikey, (B, C_IN, IMG, IMG), dtype=jnp.float32)
    text = jax.random.randint(tkey, (B, SEQ), 0, VOCAB, dtype=jnp.int32)
    text_mask = jnp.ones((B, SEQ), dtype=jnp.int32).at[:, SEQ - 2:].set(0)  # pad last 2

    fwd = jax.jit(vl_transformer_itm_forward)
    image_embeds, text_embeds = fwd(params, image, text, text_mask)
    jax.block_until_ready((image_embeds, text_embeds))

    assert image_embeds.shape == (B, S_IMG, D)
    assert text_embeds.shape == (B, SEQ, D)
    assert jnp.all(jnp.isfinite(image_embeds)) and jnp.all(jnp.isfinite(text_embeds))
    print("KERNEL_OK")
</pallas_src>

<mosaic_0001>
module attributes {stable_mosaic.version = 11 : i64} {
  func.func @_vit_kernel(%arg0: i32, %arg1: memref<10x64xf32, #tpu.memory_space<vmem>>, %arg2: memref<10x10xf32, #tpu.memory_space<vmem>>, %arg3: memref<1x1x64xf32, #tpu.memory_space<vmem>>, %arg4: memref<1x1x64xf32, #tpu.memory_space<vmem>>, %arg5: memref<1x64x192xbf16, #tpu.memory_space<vmem>>, %arg6: memref<1x1x192xf32, #tpu.memory_space<vmem>>, %arg7: memref<1x64x64xbf16, #tpu.memory_space<vmem>>, %arg8: memref<1x1x64xf32, #tpu.memory_space<vmem>>, %arg9: memref<1x1x64xf32, #tpu.memory_space<vmem>>, %arg10: memref<1x1x64xf32, #tpu.memory_space<vmem>>, %arg11: memref<1x64x256xbf16, #tpu.memory_space<vmem>>, %arg12: memref<1x1x256xf32, #tpu.memory_space<vmem>>, %arg13: memref<1x256x64xbf16, #tpu.memory_space<vmem>>, %arg14: memref<1x1x64xf32, #tpu.memory_space<vmem>>, %arg15: memref<1x64xf32, #tpu.memory_space<vmem>>, %arg16: memref<1x64xf32, #tpu.memory_space<vmem>>, %arg17: memref<10x64xf32, #tpu.memory_space<vmem>>) attributes {dimension_semantics = [#tpu.dimension_semantics<arbitrary>], iteration_bounds = array<i64: 2>, scalar_prefetch = 0 : i64, scratch_operands = 0 : i64, tpu.core_type = #tpu.core_type<tc>, window_params = [{pipeline_mode = #tpu.pipeline_mode<synchronous>, transform_indices = @transform_0, window_bounds = array<i64: 10, 64>}, {pipeline_mode = #tpu.pipeline_mode<synchronous>, transform_indices = @transform_1, window_bounds = array<i64: 10, 10>}, {transform_indices = @transform_2, window_bounds = array<i64: 1, 1, 64>}, {transform_indices = @transform_3, window_bounds = array<i64: 1, 1, 64>}, {transform_indices = @transform_4, window_bounds = array<i64: 1, 64, 192>}, {transform_indices = @transform_5, window_bounds = array<i64: 1, 1, 192>}, {transform_indices = @transform_6, window_bounds = array<i64: 1, 64, 64>}, {transform_indices = @transform_7, window_bounds = array<i64: 1, 1, 64>}, {transform_indices = @transform_8, window_bounds = array<i64: 1, 1, 64>}, {transform_indices = @transform_9, window_bounds = array<i64: 1, 1, 64>}, {transform_indices = @transform_10, window_bounds = array<i64: 1, 64, 256>}, {transform_indices = @transform_11, window_bounds = array<i64: 1, 1, 256>}, {transform_indices = @transform_12, window_bounds = array<i64: 1, 256, 64>}, {transform_indices = @transform_13, window_bounds = array<i64: 1, 1, 64>}, {pipeline_mode = #tpu.pipeline_mode<synchronous>, transform_indices = @transform_14, window_bounds = array<i64: 1, 64>}, {pipeline_mode = #tpu.pipeline_mode<synchronous>, transform_indices = @transform_15, window_bounds = array<i64: 1, 64>}, {pipeline_mode = #tpu.pipeline_mode<synchronous>, transform_indices = @transform_16, window_bounds = array<i64: 10, 64>}]} {
    %c0_i32 = arith.constant 0 : i32
    %0 = arith.cmpi eq, %arg0, %c0_i32 : i32
    %1 = arith.extui %0 : i1 to i32
    %c0_i32_0 = arith.constant 0 : i32
    %2 = arith.cmpi ne, %1, %c0_i32_0 : i32
    scf.if %2 {
      %c0_84 = arith.constant 0 : index
      %c0_85 = arith.constant 0 : index
      %205 = vector.load %arg1[%c0_84, %c0_85] : memref<10x64xf32, #tpu.memory_space<vmem>>, vector<10x64xf32>
      %c0_86 = arith.constant 0 : index
      %c0_87 = arith.constant 0 : index
      %206 = vector.load %arg17[%c0_86, %c0_87] : memref<10x64xf32, #tpu.memory_space<vmem>>, vector<10x64xf32>
      tpu.vector_store %arg17[%c0_86, %c0_87], %205 {strides = array<i32>} : memref<10x64xf32, #tpu.memory_space<vmem>>, vector<10x64xf32>,
    } else {
    }
    %c0 = arith.constant 0 : index
    %c0_1 = arith.constant 0 : index
    %3 = vector.load %arg17[%c0, %c0_1] : memref<10x64xf32, #tpu.memory_space<vmem>>, vector<10x64xf32>
    %c0_2 = arith.constant 0 : index
    %c0_3 = arith.constant 0 : index
    %4 = vector.load %arg2[%c0_2, %c0_3] : memref<10x10xf32, #tpu.memory_space<vmem>>, vector<10x10xf32>
    %c0_4 = arith.constant 0 : index
    %c0_5 = arith.constant 0 : index
    %c0_6 = arith.constant 0 : index
    %5 = vector.load %arg3[%c0_4, %c0_5, %c0_6] : memref<1x1x64xf32, #tpu.memory_space<vmem>>, vector<1x1x64xf32>
    %6 = vector.shape_cast %5 : vector<1x1x64xf32> to vector<1x64xf32>
    %c0_7 = arith.constant 0 : index
    %c0_8 = arith.constant 0 : index
    %c0_9 = arith.constant 0 : index
    %7 = vector.load %arg4[%c0_7, %c0_8, %c0_9] : memref<1x1x64xf32, #tpu.memory_space<vmem>>, vector<1x1x64xf32>
    %8 = vector.shape_cast %7 : vector<1x1x64xf32> to vector<1x64xf32>
    %cst = arith.constant dense<0.000000e+00> : vector<10xf32>
    %9 = vector.multi_reduction <add>, %3, %cst [1] : vector<10x64xf32> to vector<10xf32>
    %10 = vector.shape_cast %9 : vector<10xf32> to vector<10x1xf32>
    %cst_10 = arith.constant 6.400000e+01 : f32
    %11 = vector.broadcast %cst_10 : f32 to vector<10x1xf32>
    %12 = arith.divf %10, %11 : vector<10x1xf32>
    %13 = vector.broadcast %12 : vector<10x1xf32> to vector<10x64xf32>
    %14 = arith.subf %3, %13 : vector<10x64xf32>
    %15 = arith.mulf %14, %14 : vector<10x64xf32>
    %cst_11 = arith.constant dense<0.000000e+00> : vector<10xf32>
    %16 = vector.multi_reduction <add>, %15, %cst_11 [1] : vector<10x64xf32> to vector<10xf32>
    %17 = vector.shape_cast %16 : vector<10xf32> to vector<10x1xf32>
    %cst_12 = arith.constant 6.400000e+01 : f32
    %18 = vector.broadcast %cst_12 : f32 to vector<10x1xf32>
    %19 = arith.divf %17, %18 : vector<10x1xf32>
    %20 = vector.broadcast %12 : vector<10x1xf32> to vector<10x64xf32>
    %21 = arith.subf %3, %20 : vector<10x64xf32>
    %cst_13 = arith.constant 9.99999997E-7 : f32
    %22 = vector.broadcast %cst_13 : f32 to vector<10x1xf32>
    %23 = arith.addf %19, %22 : vector<10x1xf32>
    %24 = math.rsqrt %23 : vector<10x1xf32>
    %25 = vector.broadcast %24 : vector<10x1xf32> to vector<10x64xf32>
    %26 = arith.mulf %21, %25 : vector<10x64xf32>
    %27 = vector.broadcast %6 : vector<1x64xf32> to vector<10x64xf32>
    %28 = arith.mulf %26, %27 : vector<10x64xf32>
    %29 = vector.broadcast %8 : vector<1x64xf32> to vector<10x64xf32>
    %30 = arith.addf %28, %29 : vector<10x64xf32>
    %c0_14 = arith.constant 0 : index
    %c0_15 = arith.constant 0 : index
    %c0_16 = arith.constant 0 : index
    %31 = vector.load %arg5[%c0_14, %c0_15, %c0_16] : memref<1x64x192xbf16, #tpu.memory_space<vmem>>, vector<1x64x192xbf16>
    %32 = vector.shape_cast %31 : vector<1x64x192xbf16> to vector<64x192xbf16>
    %c0_17 = arith.constant 0 : index
    %c0_18 = arith.constant 0 : index
    %c0_19 = arith.constant 0 : index
    %33 = vector.load %arg6[%c0_17, %c0_18, %c0_19] : memref<1x1x192xf32, #tpu.memory_space<vmem>>, vector<1x1x192xf32>
    %34 = vector.shape_cast %33 : vector<1x1x192xf32> to vector<1x192xf32>
    %35 = arith.truncf %30 : vector<10x64xf32> to vector<10x64xbf16>
    %cst_20 = arith.constant dense<0.000000e+00> : vector<10x192xf32>
    %36 = tpu.matmul %35, %32, %cst_20 {dimension_numbers = #tpu.dot_dimension_numbers<[1], [0], [0], [1], [0, 0, 1, 1], [], []>} : vector<10x64xbf16>, vector<64x192xbf16>, vector<10x192xf32> -> vector<10x192xf32>
    %37 = vector.broadcast %34 : vector<1x192xf32> to vector<10x192xf32>
    %38 = arith.addf %36, %37 : vector<10x192xf32>
    %39 = vector.extract_strided_slice %38 {offsets = [0, 0], sizes = [10, 64], strides = [1, 1]} : vector<10x192xf32> to vector<10x64xf32>
    %40 = vector.extract_strided_slice %38 {offsets = [0, 64], sizes = [10, 64], strides = [1, 1]} : vector<10x192xf32> to vector<10x64xf32>
    %41 = vector.extract_strided_slice %38 {offsets = [0, 128], sizes = [10, 64], strides = [1, 1]} : vector<10x192xf32> to vector<10x64xf32>
    %c0_21 = arith.constant 0 : index
    %c0_22 = arith.constant 0 : index
    %c0_23 = arith.constant 0 : index
    %42 = vector.load %arg7[%c0_21, %c0_22, %c0_23] : memref<1x64x64xbf16, #tpu.memory_space<vmem>>, vector<1x64x64xbf16>
    %43 = vector.shape_cast %42 : vector<1x64x64xbf16> to vector<64x64xbf16>
    %c0_24 = arith.constant 0 : index
    %c0_25 = arith.constant 0 : index
    %c0_26 = arith.constant 0 : index
    %44 = vector.load %arg8[%c0_24, %c0_25, %c0_26] : memref<1x1x64xf32, #tpu.memory_space<vmem>>, vector<1x1x64xf32>
    %45 = vector.shape_cast %44 : vector<1x1x64xf32> to vector<1x64xf32>
    %46 = arith.truncf %39 : vector<10x64xf32> to vector<10x64xbf16>
    %47 = arith.truncf %40 : vector<10x64xf32> to vector<10x64xbf16>
    %48 = arith.truncf %41 : vector<10x64xf32> to vector<10x64xbf16>
    %cst_27 = arith.constant 0.000000e+00 : f32
    %49 = vector.broadcast %cst_27 : f32 to vector<10x64xf32>
    %50 = vector.extract_strided_slice %46 {offsets = [0, 0], sizes = [10, 16], strides = [1, 1]} : vector<10x64xbf16> to vector<10x16xbf16>
    %51 = vector.extract_strided_slice %47 {offsets = [0, 0], sizes = [10, 16], strides = [1, 1]} : vector<10x64xbf16> to vector<10x16xbf16>
    %cst_28 = arith.constant dense<0.000000e+00> : vector<10x10xf32>
    %52 = tpu.matmul %50, %51, %cst_28 {dimension_numbers = #tpu.dot_dimension_numbers<[1], [1], [0], [0], [0, 0, 1, 0], [], []>} : vector<10x16xbf16>, vector<10x16xbf16>, vector<10x10xf32> -> vector<10x10xf32>
    %cst_29 = arith.constant 2.500000e-01 : f32
    %53 = vector.broadcast %cst_29 : f32 to vector<10x10xf32>
    %54 = arith.mulf %52, %53 : vector<10x10xf32>
    %55 = arith.addf %54, %4 : vector<10x10xf32>
    %cst_30 = arith.constant dense<0xFF800000> : vector<10xf32>
    %56 = vector.multi_reduction <maximumf>, %55, %cst_30 [1] : vector<10x10xf32> to vector<10xf32>
    %57 = vector.shape_cast %56 : vector<10xf32> to vector<10x1xf32>
    %58 = vector.broadcast %57 : vector<10x1xf32> to vector<10x10xf32>
    %59 = arith.subf %55, %58 : vector<10x10xf32>
    %60 = math.exp %59 : vector<10x10xf32>
    %cst_31 = arith.constant dense<0.000000e+00> : vector<10xf32>
    %61 = vector.multi_reduction <add>, %60, %cst_31 [1] : vector<10x10xf32> to vector<10xf32>
    %62 = vector.shape_cast %61 : vector<10xf32> to vector<10x1xf32>
    %63 = tpu.reciprocal %62 {approx = true} : vector<10x1xf32> -> vector<10x1xf32>
    %64 = vector.broadcast %63 : vector<10x1xf32> to vector<10x10xf32>
    %65 = arith.mulf %60, %64 : vector<10x10xf32>
    %66 = arith.truncf %65 : vector<10x10xf32> to vector<10x10xbf16>
    %67 = vector.extract_strided_slice %48 {offsets = [0, 0], sizes = [10, 16], strides = [1, 1]} : vector<10x64xbf16> to vector<10x16xbf16>
    %cst_32 = arith.constant dense<0.000000e+00> : vector<10x16xf32>
    %68 = tpu.matmul %66, %67, %cst_32 {dimension_numbers = #tpu.dot_dimension_numbers<[1], [0], [0], [1], [0, 0, 1, 1], [], []>} : vector<10x10xbf16>, vector<10x16xbf16>, vector<10x16xf32> -> vector<10x16xf32>
    %69 = arith.truncf %68 : vector<10x16xf32> to vector<10x16xbf16>
    %70 = vector.extract_strided_slice %43 {offsets = [0, 0], sizes = [16, 64], strides = [1, 1]} : vector<64x64xbf16> to vector<16x64xbf16>
    %cst_33 = arith.constant dense<0.000000e+00> : vector<10x64xf32>
    %71 = tpu.matmul %69, %70, %cst_33 {dimension_numbers = #tpu.dot_dimension_numbers<[1], [0], [0], [1], [0, 0, 1, 1], [], []>} : vector<10x16xbf16>, vector<16x64xbf16>, vector<10x64xf32> -> vector<10x64xf32>
    %72 = arith.addf %49, %71 : vector<10x64xf32>
    %73 = vector.extract_strided_slice %46 {offsets = [0, 16], sizes = [10, 16], strides = [1, 1]} : vector<10x64xbf16> to vector<10x16xbf16>
    %74 = vector.extract_strided_slice %47 {offsets = [0, 16], sizes = [10, 16], strides = [1, 1]} : vector<10x64xbf16> to vector<10x16xbf16>
    %cst_34 = arith.constant dense<0.000000e+00> : vector<10x10xf32>
    %75 = tpu.matmul %73, %74, %cst_34 {dimension_numbers = #tpu.dot_dimension_numbers<[1], [1], [0], [0], [0, 0, 1, 0], [], []>} : vector<10x16xbf16>, vector<10x16xbf16>, vector<10x10xf32> -> vector<10x10xf32>
    %cst_35 = arith.constant 2.500000e-01 : f32
    %76 = vector.broadcast %cst_35 : f32 to vector<10x10xf32>
    %77 = arith.mulf %75, %76 : vector<10x10xf32>
    %78 = arith.addf %77, %4 : vector<10x10xf32>
    %cst_36 = arith.constant dense<0xFF800000> : vector<10xf32>
    %79 = vector.multi_reduction <maximumf>, %78, %cst_36 [1] : vector<10x10xf32> to vector<10xf32>
    %80 = vector.shape_cast %79 : vector<10xf32> to vector<10x1xf32>
    %81 = vector.broadcast %80 : vector<10x1xf32> to vector<10x10xf32>
    %82 = arith.subf %78, %81 : vector<10x10xf32>
    %83 = math.exp %82 : vector<10x10xf32>
    %cst_37 = arith.constant dense<0.000000e+00> : vector<10xf32>
    %84 = vector.multi_reduction <add>, %83, %cst_37 [1] : vector<10x10xf32> to vector<10xf32>
    %85 = vector.shape_cast %84 : vector<10xf32> to vector<10x1xf32>
    %86 = tpu.reciprocal %85 {approx = true} : vector<10x1xf32> -> vector<10x1xf32>
    %87 = vector.broadcast %86 : vector<10x1xf32> to vector<10x10xf32>
    %88 = arith.mulf %83, %87 : vector<10x10xf32>
    %89 = arith.truncf %88 : vector<10x10xf32> to vector<10x10xbf16>
    %90 = vector.extract_strided_slice %48 {offsets = [0, 16], sizes = [10, 16], strides = [1, 1]} : vector<10x64xbf16> to vector<10x16xbf16>
    %cst_38 = arith.constant dense<0.000000e+00> : vector<10x16xf32>
    %91 = tpu.matmul %89, %90, %cst_38 {dimension_numbers = #tpu.dot_dimension_numbers<[1], [0], [0], [1], [0, 0, 1, 1], [], []>} : vector<10x10xbf16>, vector<10x16xbf16>, vector<10x16xf32> -> vector<10x16xf32>
    %92 = arith.truncf %91 : vector<10x16xf32> to vector<10x16xbf16>
    %93 = vector.extract_strided_slice %43 {offsets = [16, 0], sizes = [16, 64], strides = [1, 1]} : vector<64x64xbf16> to vector<16x64xbf16>
    %cst_39 = arith.constant dense<0.000000e+00> : vector<10x64xf32>
    %94 = tpu.matmul %92, %93, %cst_39 {dimension_numbers = #tpu.dot_dimension_numbers<[1], [0], [0], [1], [0, 0, 1, 1], [], []>} : vector<10x16xbf16>, vector<16x64xbf16>, vector<10x64xf32> -> vector<10x64xf32>
    %95 = arith.addf %72, %94 : vector<10x64xf32>
    %96 = vector.extract_strided_slice %46 {offsets = [0, 32], sizes = [10, 16], strides = [1, 1]} : vector<10x64xbf16> to vector<10x16xbf16>
    %97 = vector.extract_strided_slice %47 {offsets = [0, 32], sizes = [10, 16], strides = [1, 1]} : vector<10x64xbf16> to vector<10x16xbf16>
    %cst_40 = arith.constant dense<0.000000e+00> : vector<10x10xf32>
    %98 = tpu.matmul %96, %97, %cst_40 {dimension_numbers = #tpu.dot_dimension_numbers<[1], [1], [0], [0], [0, 0, 1, 0], [], []>} : vector<10x16xbf16>, vector<10x16xbf16>, vector<10x10xf32> -> vector<10x10xf32>
    %cst_41 = arith.constant 2.500000e-01 : f32
    %99 = vector.broadcast %cst_41 : f32 to vector<10x10xf32>
    %100 = arith.mulf %98, %99 : vector<10x10xf32>
    %101 = arith.addf %100, %4 : vector<10x10xf32>
    %cst_42 = arith.constant dense<0xFF800000> : vector<10xf32>
    %102 = vector.multi_reduction <maximumf>, %101, %cst_42 [1] : vector<10x10xf32> to vector<10xf32>
    %103 = vector.shape_cast %102 : vector<10xf32> to vector<10x1xf32>
    %104 = vector.broadcast %103 : vector<10x1xf32> to vector<10x10xf32>
    %105 = arith.subf %101, %104 : vector<10x10xf32>
    %106 = math.exp %105 : vector<10x10xf32>
    %cst_43 = arith.constant dense<0.000000e+00> : vector<10xf32>
    %107 = vector.multi_reduction <add>, %106, %cst_43 [1] : vector<10x10xf32> to vector<10xf32>
    %108 = vector.shape_cast %107 : vector<10xf32> to vector<10x1xf32>
    %109 = tpu.reciprocal %108 {approx = true} : vector<10x1xf32> -> vector<10x1xf32>
    %110 = vector.broadcast %109 : vector<10x1xf32> to vector<10x10xf32>
    %111 = arith.mulf %106, %110 : vector<10x10xf32>
    %112 = arith.truncf %111 : vector<10x10xf32> to vector<10x10xbf16>
    %113 = vector.extract_strided_slice %48 {offsets = [0, 32], sizes = [10, 16], strides = [1, 1]} : vector<10x64xbf16> to vector<10x16xbf16>
    %cst_44 = arith.constant dense<0.000000e+00> : vector<10x16xf32>
    %114 = tpu.matmul %112, %113, %cst_44 {dimension_numbers = #tpu.dot_dimension_numbers<[1], [0], [0], [1], [0, 0, 1, 1], [], []>} : vector<10x10xbf16>, vector<10x16xbf16>, vector<10x16xf32> -> vector<10x16xf32>
    %115 = arith.truncf %114 : vector<10x16xf32> to vector<10x16xbf16>
    %116 = vector.extract_strided_slice %43 {offsets = [32, 0], sizes = [16, 64], strides = [1, 1]} : vector<64x64xbf16> to vector<16x64xbf16>
    %cst_45 = arith.constant dense<0.000000e+00> : vector<10x64xf32>
    %117 = tpu.matmul %115, %116, %cst_45 {dimension_numbers = #tpu.dot_dimension_numbers<[1], [0], [0], [1], [0, 0, 1, 1], [], []>} : vector<10x16xbf16>, vector<16x64xbf16>, vector<10x64xf32> -> vector<10x64xf32>
    %118 = arith.addf %95, %117 : vector<10x64xf32>
    %119 = vector.extract_strided_slice %46 {offsets = [0, 48], sizes = [10, 16], strides = [1, 1]} : vector<10x64xbf16> to vector<10x16xbf16>
    %120 = vector.extract_strided_slice %47 {offsets = [0, 48], sizes = [10, 16], strides = [1, 1]} : vector<10x64xbf16> to vector<10x16xbf16>
    %cst_46 = arith.constant dense<0.000000e+00> : vector<10x10xf32>
    %121 = tpu.matmul %119, %120, %cst_46 {dimension_numbers = #tpu.dot_dimension_numbers<[1], [1], [0], [0], [0, 0, 1, 0], [], []>} : vector<10x16xbf16>, vector<10x16xbf16>, vector<10x10xf32> -> vector<10x10xf32>
    %cst_47 = arith.constant 2.500000e-01 : f32
    %122 = vector.broadcast %cst_47 : f32 to vector<10x10xf32>
    %123 = arith.mulf %121, %122 : vector<10x10xf32>
    %124 = arith.addf %123, %4 : vector<10x10xf32>
    %cst_48 = arith.constant dense<0xFF800000> : vector<10xf32>
    %125 = vector.multi_reduction <maximumf>, %124, %cst_48 [1] : vector<10x10xf32> to vector<10xf32>
    %126 = vector.shape_cast %125 : vector<10xf32> to vector<10x1xf32>
    %127 = vector.broadcast %126 : vector<10x1xf32> to vector<10x10xf32>
    %128 = arith.subf %124, %127 : vector<10x10xf32>
    %129 = math.exp %128 : vector<10x10xf32>
    %cst_49 = arith.constant dense<0.000000e+00> : vector<10xf32>
    %130 = vector.multi_reduction <add>, %129, %cst_49 [1] : vector<10x10xf32> to vector<10xf32>
    %131 = vector.shape_cast %130 : vector<10xf32> to vector<10x1xf32>
    %132 = tpu.reciprocal %131 {approx = true} : vector<10x1xf32> -> vector<10x1xf32>
    %133 = vector.broadcast %132 : vector<10x1xf32> to vector<10x10xf32>
    %134 = arith.mulf %129, %133 : vector<10x10xf32>
    %135 = arith.truncf %134 : vector<10x10xf32> to vector<10x10xbf16>
    %136 = vector.extract_strided_slice %48 {offsets = [0, 48], sizes = [10, 16], strides = [1, 1]} : vector<10x64xbf16> to vector<10x16xbf16>
    %cst_50 = arith.constant dense<0.000000e+00> : vector<10x16xf32>
    %137 = tpu.matmul %135, %136, %cst_50 {dimension_numbers = #tpu.dot_dimension_numbers<[1], [0], [0], [1], [0, 0, 1, 1], [], []>} : vector<10x10xbf16>, vector<10x16xbf16>, vector<10x16xf32> -> vector<10x16xf32>
    %138 = arith.truncf %137 : vector<10x16xf32> to vector<10x16xbf16>
    %139 = vector.extract_strided_slice %43 {offsets = [48, 0], sizes = [16, 64], strides = [1, 1]} : vector<64x64xbf16> to vector<16x64xbf16>
    %cst_51 = arith.constant dense<0.000000e+00> : vector<10x64xf32>
    %140 = tpu.matmul %138, %139, %cst_51 {dimension_numbers = #tpu.dot_dimension_numbers<[1], [0], [0], [1], [0, 0, 1, 1], [], []>} : vector<10x16xbf16>, vector<16x64xbf16>, vector<10x64xf32> -> vector<10x64xf32>
    %141 = arith.addf %118, %140 : vector<10x64xf32>
    %142 = vector.broadcast %45 : vector<1x64xf32> to vector<10x64xf32>
    %143 = arith.addf %141, %142 : vector<10x64xf32>
    %144 = arith.addf %3, %143 : vector<10x64xf32>
    %c0_52 = arith.constant 0 : index
    %c0_53 = arith.constant 0 : index
    %c0_54 = arith.constant 0 : index
    %145 = vector.load %arg9[%c0_52, %c0_53, %c0_54] : memref<1x1x64xf32, #tpu.memory_space<vmem>>, vector<1x1x64xf32>
    %146 = vector.shape_cast %145 : vector<1x1x64xf32> to vector<1x64xf32>
    %c0_55 = arith.constant 0 : index
    %c0_56 = arith.constant 0 : index
    %c0_57 = arith.constant 0 : index
    %147 = vector.load %arg10[%c0_55, %c0_56, %c0_57] : memref<1x1x64xf32, #tpu.memory_space<vmem>>, vector<1x1x64xf32>
    %148 = vector.shape_cast %147 : vector<1x1x64xf32> to vector<1x64xf32>
    %cst_58 = arith.constant dense<0.000000e+00> : vector<10xf32>
    %149 = vector.multi_reduction <add>, %144, %cst_58 [1] : vector<10x64xf32> to vector<10xf32>
    %150 = vector.shape_cast %149 : vector<10xf32> to vector<10x1xf32>
    %cst_59 = arith.constant 6.400000e+01 : f32
    %151 = vector.broadcast %cst_59 : f32 to vector<10x1xf32>
    %152 = arith.divf %150, %151 : vector<10x1xf32>
    %153 = vector.broadcast %152 : vector<10x1xf32> to vector<10x64xf32>
    %154 = arith.subf %144, %153 : vector<10x64xf32>
    %155 = arith.mulf %154, %154 : vector<10x64xf32>
    %cst_60 = arith.constant dense<0.000000e+00> : vector<10xf32>
    %156 = vector.multi_reduction <add>, %155, %cst_60 [1] : vector<10x64xf32> to vector<10xf32>
    %157 = vector.shape_cast %156 : vector<10xf32> to vector<10x1xf32>
    %cst_61 = arith.constant 6.400000e+01 : f32
    %158 = vector.broadcast %cst_61 : f32 to vector<10x1xf32>
    %159 = arith.divf %157, %158 : vector<10x1xf32>
    %160 = vector.broadcast %152 : vector<10x1xf32> to vector<10x64xf32>
    %161 = arith.subf %144, %160 : vector<10x64xf32>
    %cst_62 = arith.constant 9.99999997E-7 : f32
    %162 = vector.broadcast %cst_62 : f32 to vector<10x1xf32>
    %163 = arith.addf %159, %162 : vector<10x1xf32>
    %164 = math.rsqrt %163 : vector<10x1xf32>
    %165 = vector.broadcast %164 : vector<10x1xf32> to vector<10x64xf32>
    %166 = arith.mulf %161, %165 : vector<10x64xf32>
    %167 = vector.broadcast %146 : vector<1x64xf32> to vector<10x64xf32>
    %168 = arith.mulf %166, %167 : vector<10x64xf32>
    %169 = vector.broadcast %148 : vector<1x64xf32> to vector<10x64xf32>
    %170 = arith.addf %168, %169 : vector<10x64xf32>
    %c0_63 = arith.constant 0 : index
    %c0_64 = arith.constant 0 : index
    %c0_65 = arith.constant 0 : index
    %171 = vector.load %arg11[%c0_63, %c0_64, %c0_65] : memref<1x64x256xbf16, #tpu.memory_space<vmem>>, vector<1x64x256xbf16>
    %172 = vector.shape_cast %171 : vector<1x64x256xbf16> to vector<64x256xbf16>
    %c0_66 = arith.constant 0 : index
    %c0_67 = arith.constant 0 : index
    %c0_68 = arith.constant 0 : index
    %173 = vector.load %arg12[%c0_66, %c0_67, %c0_68] : memref<1x1x256xf32, #tpu.memory_space<vmem>>, vector<1x1x256xf32>
    %174 = vector.shape_cast %173 : vector<1x1x256xf32> to vector<1x256xf32>
    %175 = arith.truncf %170 : vector<10x64xf32> to vector<10x64xbf16>
    %cst_69 = arith.constant dense<0.000000e+00> : vector<10x256xf32>
    %176 = tpu.matmul %175, %172, %cst_69 {dimension_numbers = #tpu.dot_dimension_numbers<[1], [0], [0], [1], [0, 0, 1, 1], [], []>} : vector<10x64xbf16>, vector<64x256xbf16>, vector<10x256xf32> -> vector<10x256xf32>
    %177 = vector.broadcast %174 : vector<1x256xf32> to vector<10x256xf32>
    %178 = arith.addf %176, %177 : vector<10x256xf32>
    %179 = arith.mulf %178, %178 : vector<10x256xf32>
    %180 = arith.mulf %178, %179 : vector<10x256xf32>
    %cst_70 = arith.constant 4.471500e-02 : f32
    %181 = vector.broadcast %cst_70 : f32 to vector<10x256xf32>
    %182 = arith.mulf %181, %180 : vector<10x256xf32>
    %183 = arith.addf %178, %182 : vector<10x256xf32>
    %cst_71 = arith.constant 0.797884583 : f32
    %184 = vector.broadcast %cst_71 : f32 to vector<10x256xf32>
    %185 = arith.mulf %184, %183 : vector<10x256xf32>
    %186 = math.tanh %185 : vector<10x256xf32>
    %cst_72 = arith.constant 1.000000e+00 : f32
    %187 = vector.broadcast %cst_72 : f32 to vector<10x256xf32>
    %188 = arith.addf %187, %186 : vector<10x256xf32>
    %cst_73 = arith.constant 5.000000e-01 : f32
    %189 = vector.broadcast %cst_73 : f32 to vector<10x256xf32>
    %190 = arith.mulf %189, %188 : vector<10x256xf32>
    %191 = arith.mulf %178, %190 : vector<10x256xf32>
    %c0_74 = arith.constant 0 : index
    %c0_75 = arith.constant 0 : index
    %c0_76 = arith.constant 0 : index
    %192 = vector.load %arg13[%c0_74, %c0_75, %c0_76] : memref<1x256x64xbf16, #tpu.memory_space<vmem>>, vector<1x256x64xbf16>
    %193 = vector.shape_cast %192 : vector<1x256x64xbf16> to vector<256x64xbf16>
    %c0_77 = arith.constant 0 : index
    %c0_78 = arith.constant 0 : index
    %c0_79 = arith.constant 0 : index
    %194 = vector.load %arg14[%c0_77, %c0_78, %c0_79] : memref<1x1x64xf32, #tpu.memory_space<vmem>>, vector<1x1x64xf32>
    %195 = vector.shape_cast %194 : vector<1x1x64xf32> to vector<1x64xf32>
    %196 = arith.truncf %191 : vector<10x256xf32> to vector<10x256xbf16>
    %cst_80 = arith.constant dense<0.000000e+00> : vector<10x64xf32>
    %197 = tpu.matmul %196, %193, %cst_80 {dimension_numbers = #tpu.dot_dimension_numbers<[1], [0], [0], [1], [0, 0, 1, 1], [], []>} : vector<10x256xbf16>, vector<256x64xbf16>, vector<10x64xf32> -> vector<10x64xf32>
    %198 = vector.broadcast %195 : vector<1x64xf32> to vector<10x64xf32>
    %199 = arith.addf %197, %198 : vector<10x64xf32>
    %200 = arith.addf %144, %199 : vector<10x64xf32>
    %c0_81 = arith.constant 0 : index
    %c0_82 = arith.constant 0 : index
    %201 = vector.load %arg17[%c0_81, %c0_82] : memref<10x64xf32, #tpu.memory_space<vmem>>, vector<10x64xf32>
    tpu.vector_store %arg17[%c0_81, %c0_82], %200 {strides = array<i32>} : memref<10x64xf32, #tpu.memory_space<vmem>>, vector<10x64xf32>,
    %c1_i32 = arith.constant 1 : i32
    %202 = arith.cmpi eq, %arg0, %c1_i32 : i32
    %203 = arith.extui %202 : i1 to i32
    %c0_i32_83 = arith.constant 0 : i32
    %204 = arith.cmpi ne, %203, %c0_i32_83 : i32
    scf.if %204 {
      %c0_84 = arith.constant 0 : index
      %c0_85 = arith.constant 0 : index
      %205 = vector.load %arg15[%c0_84, %c0_85] : memref<1x64xf32, #tpu.memory_space<vmem>>, vector<1x64xf32>
      %c0_86 = arith.constant 0 : index
      %c0_87 = arith.constant 0 : index
      %206 = vector.load %arg16[%c0_86, %c0_87] : memref<1x64xf32, #tpu.memory_space<vmem>>, vector<1x64xf32>
      %cst_88 = arith.constant dense<0.000000e+00> : vector<10xf32>
      %207 = vector.multi_reduction <add>, %200, %cst_88 [1] : vector<10x64xf32> to vector<10xf32>
      %208 = vector.shape_cast %207 : vector<10xf32> to vector<10x1xf32>
      %cst_89 = arith.constant 6.400000e+01 : f32
      %209 = vector.broadcast %cst_89 : f32 to vector<10x1xf32>
      %210 = arith.divf %208, %209 : vector<10x1xf32>
      %211 = vector.broadcast %210 : vector<10x1xf32> to vector<10x64xf32>
      %212 = arith.subf %200, %211 : vector<10x64xf32>
      %213 = arith.mulf %212, %212 : vector<10x64xf32>
      %cst_90 = arith.constant dense<0.000000e+00> : vector<10xf32>
      %214 = vector.multi_reduction <add>, %213, %cst_90 [1] : vector<10x64xf32> to vector<10xf32>
      %215 = vector.shape_cast %214 : vector<10xf32> to vector<10x1xf32>
      %cst_91 = arith.constant 6.400000e+01 : f32
      %216 = vector.broadcast %cst_91 : f32 to vector<10x1xf32>
      %217 = arith.divf %215, %216 : vector<10x1xf32>
      %218 = vector.broadcast %210 : vector<10x1xf32> to vector<10x64xf32>
      %219 = arith.subf %200, %218 : vector<10x64xf32>
      %cst_92 = arith.constant 9.99999997E-7 : f32
      %220 = vector.broadcast %cst_92 : f32 to vector<10x1xf32>
      %221 = arith.addf %217, %220 : vector<10x1xf32>
      %222 = math.rsqrt %221 : vector<10x1xf32>
      %223 = vector.broadcast %222 : vector<10x1xf32> to vector<10x64xf32>
      %224 = arith.mulf %219, %223 : vector<10x64xf32>
      %225 = vector.broadcast %205 : vector<1x64xf32> to vector<10x64xf32>
      %226 = arith.mulf %224, %225 : vector<10x64xf32>
      %227 = vector.broadcast %206 : vector<1x64xf32> to vector<10x64xf32>
      %228 = arith.addf %226, %227 : vector<10x64xf32>
      %c0_93 = arith.constant 0 : index
      %c0_94 = arith.constant 0 : index
      %229 = vector.load %arg17[%c0_93, %c0_94] : memref<10x64xf32, #tpu.memory_space<vmem>>, vector<10x64xf32>
      tpu.vector_store %arg17[%c0_93, %c0_94], %228 {strides = array<i32>} : memref<10x64xf32, #tpu.memory_space<vmem>>, vector<10x64xf32>,
    } else {
    }
    return
  }
  func.func @transform_0(%arg0: i32) -> (i32, i32) {
    %c0_i32 = arith.constant 0 : i32
    %c0_i32_0 = arith.constant 0 : i32
    %c0_i32_1 = arith.constant 0 : i32
    return %c0_i32, %c0_i32_0 : i32, i32
  }
  func.func @transform_1(%arg0: i32) -> (i32, i32) {
    %c0_i32 = arith.constant 0 : i32
    %c0_i32_0 = arith.constant 0 : i32
    %c0_i32_1 = arith.constant 0 : i32
    return %c0_i32, %c0_i32_0 : i32, i32
  }
  func.func @transform_2(%arg0: i32) -> (i32, i32, i32) {
    %c0_i32 = arith.constant 0 : i32
    %c0_i32_0 = arith.constant 0 : i32
    %c0_i32_1 = arith.constant 0 : i32
    return %arg0, %c0_i32, %c0_i32_0 : i32, i32, i32
  }
  func.func @transform_3(%arg0: i32) -> (i32, i32, i32) {
    %c0_i32 = arith.constant 0 : i32
    %c0_i32_0 = arith.constant 0 : i32
    %c0_i32_1 = arith.constant 0 : i32
    return %arg0, %c0_i32, %c0_i32_0 : i32, i32, i32
  }
  func.func @transform_4(%arg0: i32) -> (i32, i32, i32) {
    %c0_i32 = arith.constant 0 : i32
    %c0_i32_0 = arith.constant 0 : i32
    %c0_i32_1 = arith.constant 0 : i32
    return %arg0, %c0_i32, %c0_i32_0 : i32, i32, i32
  }
  func.func @transform_5(%arg0: i32) -> (i32, i32, i32) {
    %c0_i32 = arith.constant 0 : i32
    %c0_i32_0 = arith.constant 0 : i32
    %c0_i32_1 = arith.constant 0 : i32
    return %arg0, %c0_i32, %c0_i32_0 : i32, i32, i32
  }
  func.func @transform_6(%arg0: i32) -> (i32, i32, i32) {
    %c0_i32 = arith.constant 0 : i32
    %c0_i32_0 = arith.constant 0 : i32
    %c0_i32_1 = arith.constant 0 : i32
    return %arg0, %c0_i32, %c0_i32_0 : i32, i32, i32
  }
  func.func @transform_7(%arg0: i32) -> (i32, i32, i32) {
    %c0_i32 = arith.constant 0 : i32
    %c0_i32_0 = arith.constant 0 : i32
    %c0_i32_1 = arith.constant 0 : i32
    return %arg0, %c0_i32, %c0_i32_0 : i32, i32, i32
  }
  func.func @transform_8(%arg0: i32) -> (i32, i32, i32) {
    %c0_i32 = arith.constant 0 : i32
    %c0_i32_0 = arith.constant 0 : i32
    %c0_i32_1 = arith.constant 0 : i32
    return %arg0, %c0_i32, %c0_i32_0 : i32, i32, i32
  }
  func.func @transform_9(%arg0: i32) -> (i32, i32, i32) {
    %c0_i32 = arith.constant 0 : i32
    %c0_i32_0 = arith.constant 0 : i32
    %c0_i32_1 = arith.constant 0 : i32
    return %arg0, %c0_i32, %c0_i32_0 : i32, i32, i32
  }
  func.func @transform_10(%arg0: i32) -> (i32, i32, i32) {
    %c0_i32 = arith.constant 0 : i32
    %c0_i32_0 = arith.constant 0 : i32
    %c0_i32_1 = arith.constant 0 : i32
    return %arg0, %c0_i32, %c0_i32_0 : i32, i32, i32
  }
  func.func @transform_11(%arg0: i32) -> (i32, i32, i32) {
    %c0_i32 = arith.constant 0 : i32
    %c0_i32_0 = arith.constant 0 : i32
    %c0_i32_1 = arith.constant 0 : i32
    return %arg0, %c0_i32, %c0_i32_0 : i32, i32, i32
  }
  func.func @transform_12(%arg0: i32) -> (i32, i32, i32) {
    %c0_i32 = arith.constant 0 : i32
    %c0_i32_0 = arith.constant 0 : i32
    %c0_i32_1 = arith.constant 0 : i32
    return %arg0, %c0_i32, %c0_i32_0 : i32, i32, i32
  }
  func.func @transform_13(%arg0: i32) -> (i32, i32, i32) {
    %c0_i32 = arith.constant 0 : i32
    %c0_i32_0 = arith.constant 0 : i32
    %c0_i32_1 = arith.constant 0 : i32
    return %arg0, %c0_i32, %c0_i32_0 : i32, i32, i32
  }
  func.func @transform_14(%arg0: i32) -> (i32, i32) {
    %c0_i32 = arith.constant 0 : i32
    %c0_i32_0 = arith.constant 0 : i32
    %c0_i32_1 = arith.constant 0 : i32
    return %c0_i32, %c0_i32_0 : i32, i32
  }
  func.func @transform_15(%arg0: i32) -> (i32, i32) {
    %c0_i32 = arith.constant 0 : i32
    %c0_i32_0 = arith.constant 0 : i32
    %c0_i32_1 = arith.constant 0 : i32
    return %c0_i32, %c0_i32_0 : i32, i32
  }
  func.func @transform_16(%arg0: i32) -> (i32, i32) {
    %c0_i32 = arith.constant 0 : i32
    %c0_i32_0 = arith.constant 0 : i32
    %c0_i32_1 = arith.constant 0 : i32
    return %c0_i32, %c0_i32_0 : i32, i32
  }
}

module attributes {stable_mosaic.version = 11 : i64} {
  func.func @_bert_kernel(%arg0: i32, %arg1: memref<16x64xf32, #tpu.memory_space<vmem>>, %arg2: memref<10x64xf32, #tpu.memory_space<vmem>>, %arg3: memref<16x16xf32, #tpu.memory_space<vmem>>, %arg4: memref<16x10xf32, #tpu.memory_space<vmem>>, %arg5: memref<1x64xf32, #tpu.memory_space<vmem>>, %arg6: memref<1x64xf32, #tpu.memory_space<vmem>>, %arg7: memref<1x64x192xbf16, #tpu.memory_space<vmem>>, %arg8: memref<1x1x192xf32, #tpu.memory_space<vmem>>, %arg9: memref<1x64x64xbf16, #tpu.memory_space<vmem>>, %arg10: memref<1x1x64xf32, #tpu.memory_space<vmem>>, %arg11: memref<1x1x64xf32, #tpu.memory_space<vmem>>, %arg12: memref<1x1x64xf32, #tpu.memory_space<vmem>>, %arg13: memref<1x64x64xbf16, #tpu.memory_space<vmem>>, %arg14: memref<1x1x64xf32, #tpu.memory_space<vmem>>, %arg15: memref<1x64x128xbf16, #tpu.memory_space<vmem>>, %arg16: memref<1x1x128xf32, #tpu.memory_space<vmem>>, %arg17: memref<1x64x64xbf16, #tpu.memory_space<vmem>>, %arg18: memref<1x1x64xf32, #tpu.memory_space<vmem>>, %arg19: memref<1x1x64xf32, #tpu.memory_space<vmem>>, %arg20: memref<1x1x64xf32, #tpu.memory_space<vmem>>, %arg21: memref<1x64x256xbf16, #tpu.memory_space<vmem>>, %arg22: memref<1x1x256xf32, #tpu.memory_space<vmem>>, %arg23: memref<1x256x64xbf16, #tpu.memory_space<vmem>>, %arg24: memref<1x1x64xf32, #tpu.memory_space<vmem>>, %arg25: memref<1x1x64xf32, #tpu.memory_space<vmem>>, %arg26: memref<1x1x64xf32, #tpu.memory_space<vmem>>, %arg27: memref<16x64xf32, #tpu.memory_space<vmem>>) attributes {dimension_semantics = [#tpu.dimension_semantics<arbitrary>], iteration_bounds = array<i64: 2>, scalar_prefetch = 0 : i64, scratch_operands = 0 : i64, tpu.core_type = #tpu.core_type<tc>, window_params = [{pipeline_mode = #tpu.pipeline_mode<synchronous>, transform_indices = @transform_0, window_bounds = array<i64: 16, 64>}, {pipeline_mode = #tpu.pipeline_mode<synchronous>, transform_indices = @transform_1, window_bounds = array<i64: 10, 64>}, {pipeline_mode = #tpu.pipeline_mode<synchronous>, transform_indices = @transform_2, window_bounds = array<i64: 16, 16>}, {pipeline_mode = #tpu.pipeline_mode<synchronous>, transform_indices = @transform_3, window_bounds = array<i64: 16, 10>}, {pipeline_mode = #tpu.pipeline_mode<synchronous>, transform_indices = @transform_4, window_bounds = array<i64: 1, 64>}, {pipeline_mode = #tpu.pipeline_mode<synchronous>, transform_indices = @transform_5, window_bounds = array<i64: 1, 64>}, {transform_indices = @transform_6, window_bounds = array<i64: 1, 64, 192>}, {transform_indices = @transform_7, window_bounds = array<i64: 1, 1, 192>}, {transform_indices = @transform_8, window_bounds = array<i64: 1, 64, 64>}, {transform_indices = @transform_9, window_bounds = array<i64: 1, 1, 64>}, {transform_indices = @transform_10, window_bounds = array<i64: 1, 1, 64>}, {transform_indices = @transform_11, window_bounds = array<i64: 1, 1, 64>}, {transform_indices = @transform_12, window_bounds = array<i64: 1, 64, 64>}, {transform_indices = @transform_13, window_bounds = array<i64: 1, 1, 64>}, {transform_indices = @transform_14, window_bounds = array<i64: 1, 64, 128>}, {transform_indices = @transform_15, window_bounds = array<i64: 1, 1, 128>}, {transform_indices = @transform_16, window_bounds = array<i64: 1, 64, 64>}, {transform_indices = @transform_17, window_bounds = array<i64: 1, 1, 64>}, {transform_indices = @transform_18, window_bounds = array<i64: 1, 1, 64>}, {transform_indices = @transform_19, window_bounds = array<i64: 1, 1, 64>}, {transform_indices = @transform_20, window_bounds = array<i64: 1, 64, 256>}, {transform_indices = @transform_21, window_bounds = array<i64: 1, 1, 256>}, {transform_indices = @transform_22, window_bounds = array<i64: 1, 256, 64>}, {transform_indices = @transform_23, window_bounds = array<i64: 1, 1, 64>}, {transform_indices = @transform_24, window_bounds = array<i64: 1, 1, 64>}, {transform_indices = @transform_25, window_bounds = array<i64: 1, 1, 64>}, {pipeline_mode = #tpu.pipeline_mode<synchronous>, transform_indices = @transform_26, window_bounds = array<i64: 16, 64>}]} {
    %c0_i32 = arith.constant 0 : i32
    %0 = arith.cmpi eq, %arg0, %c0_i32 : i32
    %1 = arith.extui %0 : i1 to i32
    %c0_i32_0 = arith.constant 0 : i32
    %2 = arith.cmpi ne, %1, %c0_i32_0 : i32
    scf.if %2 {
      %c0_143 = arith.constant 0 : index
      %c0_144 = arith.constant 0 : index
      %351 = vector.load %arg1[%c0_143, %c0_144] : memref<16x64xf32, #tpu.memory_space<vmem>>, vector<16x64xf32>
      %c0_145 = arith.constant 0 : index
      %c0_146 = arith.constant 0 : index
      %352 = vector.load %arg5[%c0_145, %c0_146] : memref<1x64xf32, #tpu.memory_space<vmem>>, vector<1x64xf32>
      %c0_147 = arith.constant 0 : index
      %c0_148 = arith.constant 0 : index
      %353 = vector.load %arg6[%c0_147, %c0_148] : memref<1x64xf32, #tpu.memory_space<vmem>>, vector<1x64xf32>
      %cst_149 = arith.constant dense<0.000000e+00> : vector<16xf32>
      %354 = vector.multi_reduction <add>, %351, %cst_149 [1] : vector<16x64xf32> to vector<16xf32>
      %355 = vector.shape_cast %354 : vector<16xf32> to vector<16x1xf32>
      %cst_150 = arith.constant 6.400000e+01 : f32
      %356 = vector.broadcast %cst_150 : f32 to vector<16x1xf32>
      %357 = arith.divf %355, %356 : vector<16x1xf32>
      %358 = vector.broadcast %357 : vector<16x1xf32> to vector<16x64xf32>
      %359 = arith.subf %351, %358 : vector<16x64xf32>
      %360 = arith.mulf %359, %359 : vector<16x64xf32>
      %cst_151 = arith.constant dense<0.000000e+00> : vector<16xf32>
      %361 = vector.multi_reduction <add>, %360, %cst_151 [1] : vector<16x64xf32> to vector<16xf32>
      %362 = vector.shape_cast %361 : vector<16xf32> to vector<16x1xf32>
      %cst_152 = arith.constant 6.400000e+01 : f32
      %363 = vector.broadcast %cst_152 : f32 to vector<16x1xf32>
      %364 = arith.divf %362, %363 : vector<16x1xf32>
      %365 = vector.broadcast %357 : vector<16x1xf32> to vector<16x64xf32>
      %366 = arith.subf %351, %365 : vector<16x64xf32>
      %cst_153 = arith.constant 9.99999996E-13 : f32
      %367 = vector.broadcast %cst_153 : f32 to vector<16x1xf32>
      %368 = arith.addf %364, %367 : vector<16x1xf32>
      %369 = math.rsqrt %368 : vector<16x1xf32>
      %370 = vector.broadcast %369 : vector<16x1xf32> to vector<16x64xf32>
      %371 = arith.mulf %366, %370 : vector<16x64xf32>
      %372 = vector.broadcast %352 : vector<1x64xf32> to vector<16x64xf32>
      %373 = arith.mulf %371, %372 : vector<16x64xf32>
      %374 = vector.broadcast %353 : vector<1x64xf32> to vector<16x64xf32>
      %375 = arith.addf %373, %374 : vector<16x64xf32>
      %c0_154 = arith.constant 0 : index
      %c0_155 = arith.constant 0 : index
      %376 = vector.load %arg27[%c0_154, %c0_155] : memref<16x64xf32, #tpu.memory_space<vmem>>, vector<16x64xf32>
      tpu.vector_store %arg27[%c0_154, %c0_155], %375 {strides = array<i32>} : memref<16x64xf32, #tpu.memory_space<vmem>>, vector<16x64xf32>,
    } else {
    }
    %c0 = arith.constant 0 : index
    %c0_1 = arith.constant 0 : index
    %3 = vector.load %arg27[%c0, %c0_1] : memref<16x64xf32, #tpu.memory_space<vmem>>, vector<16x64xf32>
    %c0_2 = arith.constant 0 : index
    %c0_3 = arith.constant 0 : index
    %4 = vector.load %arg2[%c0_2, %c0_3] : memref<10x64xf32, #tpu.memory_space<vmem>>, vector<10x64xf32>
    %c0_4 = arith.constant 0 : index
    %c0_5 = arith.constant 0 : index
    %5 = vector.load %arg3[%c0_4, %c0_5] : memref<16x16xf32, #tpu.memory_space<vmem>>, vector<16x16xf32>
    %c0_6 = arith.constant 0 : index
    %c0_7 = arith.constant 0 : index
    %6 = vector.load %arg4[%c0_6, %c0_7] : memref<16x10xf32, #tpu.memory_space<vmem>>, vector<16x10xf32>
    %c0_8 = arith.constant 0 : index
    %c0_9 = arith.constant 0 : index
    %c0_10 = arith.constant 0 : index
    %7 = vector.load %arg7[%c0_8, %c0_9, %c0_10] : memref<1x64x192xbf16, #tpu.memory_space<vmem>>, vector<1x64x192xbf16>
    %8 = vector.shape_cast %7 : vector<1x64x192xbf16> to vector<64x192xbf16>
    %c0_11 = arith.constant 0 : index
    %c0_12 = arith.constant 0 : index
    %c0_13 = arith.constant 0 : index
    %9 = vector.load %arg8[%c0_11, %c0_12, %c0_13] : memref<1x1x192xf32, #tpu.memory_space<vmem>>, vector<1x1x192xf32>
    %10 = vector.shape_cast %9 : vector<1x1x192xf32> to vector<1x192xf32>
    %11 = arith.truncf %3 : vector<16x64xf32> to vector<16x64xbf16>
    %cst = arith.constant dense<0.000000e+00> : vector<16x192xf32>
    %12 = tpu.matmul %11, %8, %cst {dimension_numbers = #tpu.dot_dimension_numbers<[1], [0], [0], [1], [0, 0, 1, 1], [], []>} : vector<16x64xbf16>, vector<64x192xbf16>, vector<16x192xf32> -> vector<16x192xf32>
    %13 = vector.broadcast %10 : vector<1x192xf32> to vector<16x192xf32>
    %14 = arith.addf %12, %13 : vector<16x192xf32>
    %15 = vector.extract_strided_slice %14 {offsets = [0, 0], sizes = [16, 64], strides = [1, 1]} : vector<16x192xf32> to vector<16x64xf32>
    %16 = vector.extract_strided_slice %14 {offsets = [0, 64], sizes = [16, 64], strides = [1, 1]} : vector<16x192xf32> to vector<16x64xf32>
    %17 = vector.extract_strided_slice %14 {offsets = [0, 128], sizes = [16, 64], strides = [1, 1]} : vector<16x192xf32> to vector<16x64xf32>
    %c0_14 = arith.constant 0 : index
    %c0_15 = arith.constant 0 : index
    %c0_16 = arith.constant 0 : index
    %18 = vector.load %arg9[%c0_14, %c0_15, %c0_16] : memref<1x64x64xbf16, #tpu.memory_space<vmem>>, vector<1x64x64xbf16>
    %19 = vector.shape_cast %18 : vector<1x64x64xbf16> to vector<64x64xbf16>
    %c0_17 = arith.constant 0 : index
    %c0_18 = arith.constant 0 : index
    %c0_19 = arith.constant 0 : index
    %20 = vector.load %arg10[%c0_17, %c0_18, %c0_19] : memref<1x1x64xf32, #tpu.memory_space<vmem>>, vector<1x1x64xf32>
    %21 = vector.shape_cast %20 : vector<1x1x64xf32> to vector<1x64xf32>
    %22 = arith.truncf %15 : vector<16x64xf32> to vector<16x64xbf16>
    %23 = arith.truncf %16 : vector<16x64xf32> to vector<16x64xbf16>
    %24 = arith.truncf %17 : vector<16x64xf32> to vector<16x64xbf16>
    %cst_20 = arith.constant 0.000000e+00 : f32
    %25 = vector.broadcast %cst_20 : f32 to vector<16x64xf32>
    %26 = vector.extract_strided_slice %22 {offsets = [0, 0], sizes = [16, 16], strides = [1, 1]} : vector<16x64xbf16> to vector<16x16xbf16>
    %27 = vector.extract_strided_slice %23 {offsets = [0, 0], sizes = [16, 16], strides = [1, 1]} : vector<16x64xbf16> to vector<16x16xbf16>
    %cst_21 = arith.constant dense<0.000000e+00> : vector<16x16xf32>
    %28 = tpu.matmul %26, %27, %cst_21 {dimension_numbers = #tpu.dot_dimension_numbers<[1], [1], [0], [0], [0, 0, 1, 0], [], []>} : vector<16x16xbf16>, vector<16x16xbf16>, vector<16x16xf32> -> vector<16x16xf32>
    %cst_22 = arith.constant 2.500000e-01 : f32
    %29 = vector.broadcast %cst_22 : f32 to vector<16x16xf32>
    %30 = arith.mulf %28, %29 : vector<16x16xf32>
    %31 = arith.addf %30, %5 : vector<16x16xf32>
    %cst_23 = arith.constant dense<0xFF800000> : vector<16xf32>
    %32 = vector.multi_reduction <maximumf>, %31, %cst_23 [1] : vector<16x16xf32> to vector<16xf32>
    %33 = vector.shape_cast %32 : vector<16xf32> to vector<16x1xf32>
    %34 = vector.broadcast %33 : vector<16x1xf32> to vector<16x16xf32>
    %35 = arith.subf %31, %34 : vector<16x16xf32>
    %36 = math.exp %35 : vector<16x16xf32>
    %cst_24 = arith.constant dense<0.000000e+00> : vector<16xf32>
    %37 = vector.multi_reduction <add>, %36, %cst_24 [1] : vector<16x16xf32> to vector<16xf32>
    %38 = vector.shape_cast %37 : vector<16xf32> to vector<16x1xf32>
    %39 = tpu.reciprocal %38 {approx = true} : vector<16x1xf32> -> vector<16x1xf32>
    %40 = vector.broadcast %39 : vector<16x1xf32> to vector<16x16xf32>
    %41 = arith.mulf %36, %40 : vector<16x16xf32>
    %42 = arith.truncf %41 : vector<16x16xf32> to vector<16x16xbf16>
    %43 = vector.extract_strided_slice %24 {offsets = [0, 0], sizes = [16, 16], strides = [1, 1]} : vector<16x64xbf16> to vector<16x16xbf16>
    %cst_25 = arith.constant dense<0.000000e+00> : vector<16x16xf32>
    %44 = tpu.matmul %42, %43, %cst_25 {dimension_numbers = #tpu.dot_dimension_numbers<[1], [0], [0], [1], [0, 0, 1, 1], [], []>} : vector<16x16xbf16>, vector<16x16xbf16>, vector<16x16xf32> -> vector<16x16xf32>
    %45 = arith.truncf %44 : vector<16x16xf32> to vector<16x16xbf16>
    %46 = vector.extract_strided_slice %19 {offsets = [0, 0], sizes = [16, 64], strides = [1, 1]} : vector<64x64xbf16> to vector<16x64xbf16>
    %cst_26 = arith.constant dense<0.000000e+00> : vector<16x64xf32>
    %47 = tpu.matmul %45, %46, %cst_26 {dimension_numbers = #tpu.dot_dimension_numbers<[1], [0], [0], [1], [0, 0, 1, 1], [], []>} : vector<16x16xbf16>, vector<16x64xbf16>, vector<16x64xf32> -> vector<16x64xf32>
    %48 = arith.addf %25, %47 : vector<16x64xf32>
    %49 = vector.extract_strided_slice %22 {offsets = [0, 16], sizes = [16, 16], strides = [1, 1]} : vector<16x64xbf16> to vector<16x16xbf16>
    %50 = vector.extract_strided_slice %23 {offsets = [0, 16], sizes = [16, 16], strides = [1, 1]} : vector<16x64xbf16> to vector<16x16xbf16>
    %cst_27 = arith.constant dense<0.000000e+00> : vector<16x16xf32>
    %51 = tpu.matmul %49, %50, %cst_27 {dimension_numbers = #tpu.dot_dimension_numbers<[1], [1], [0], [0], [0, 0, 1, 0], [], []>} : vector<16x16xbf16>, vector<16x16xbf16>, vector<16x16xf32> -> vector<16x16xf32>
    %cst_28 = arith.constant 2.500000e-01 : f32
    %52 = vector.broadcast %cst_28 : f32 to vector<16x16xf32>
    %53 = arith.mulf %51, %52 : vector<16x16xf32>
    %54 = arith.addf %53, %5 : vector<16x16xf32>
    %cst_29 = arith.constant dense<0xFF800000> : vector<16xf32>
    %55 = vector.multi_reduction <maximumf>, %54, %cst_29 [1] : vector<16x16xf32> to vector<16xf32>
    %56 = vector.shape_cast %55 : vector<16xf32> to vector<16x1xf32>
    %57 = vector.broadcast %56 : vector<16x1xf32> to vector<16x16xf32>
    %58 = arith.subf %54, %57 : vector<16x16xf32>
    %59 = math.exp %58 : vector<16x16xf32>
    %cst_30 = arith.constant dense<0.000000e+00> : vector<16xf32>
    %60 = vector.multi_reduction <add>, %59, %cst_30 [1] : vector<16x16xf32> to vector<16xf32>
    %61 = vector.shape_cast %60 : vector<16xf32> to vector<16x1xf32>
    %62 = tpu.reciprocal %61 {approx = true} : vector<16x1xf32> -> vector<16x1xf32>
    %63 = vector.broadcast %62 : vector<16x1xf32> to vector<16x16xf32>
    %64 = arith.mulf %59, %63 : vector<16x16xf32>
    %65 = arith.truncf %64 : vector<16x16xf32> to vector<16x16xbf16>
    %66 = vector.extract_strided_slice %24 {offsets = [0, 16], sizes = [16, 16], strides = [1, 1]} : vector<16x64xbf16> to vector<16x16xbf16>
    %cst_31 = arith.constant dense<0.000000e+00> : vector<16x16xf32>
    %67 = tpu.matmul %65, %66, %cst_31 {dimension_numbers = #tpu.dot_dimension_numbers<[1], [0], [0], [1], [0, 0, 1, 1], [], []>} : vector<16x16xbf16>, vector<16x16xbf16>, vector<16x16xf32> -> vector<16x16xf32>
    %68 = arith.truncf %67 : vector<16x16xf32> to vector<16x16xbf16>
    %69 = vector.extract_strided_slice %19 {offsets = [16, 0], sizes = [16, 64], strides = [1, 1]} : vector<64x64xbf16> to vector<16x64xbf16>
    %cst_32 = arith.constant dense<0.000000e+00> : vector<16x64xf32>
    %70 = tpu.matmul %68, %69, %cst_32 {dimension_numbers = #tpu.dot_dimension_numbers<[1], [0], [0], [1], [0, 0, 1, 1], [], []>} : vector<16x16xbf16>, vector<16x64xbf16>, vector<16x64xf32> -> vector<16x64xf32>
    %71 = arith.addf %48, %70 : vector<16x64xf32>
    %72 = vector.extract_strided_slice %22 {offsets = [0, 32], sizes = [16, 16], strides = [1, 1]} : vector<16x64xbf16> to vector<16x16xbf16>
    %73 = vector.extract_strided_slice %23 {offsets = [0, 32], sizes = [16, 16], strides = [1, 1]} : vector<16x64xbf16> to vector<16x16xbf16>
    %cst_33 = arith.constant dense<0.000000e+00> : vector<16x16xf32>
    %74 = tpu.matmul %72, %73, %cst_33 {dimension_numbers = #tpu.dot_dimension_numbers<[1], [1], [0], [0], [0, 0, 1, 0], [], []>} : vector<16x16xbf16>, vector<16x16xbf16>, vector<16x16xf32> -> vector<16x16xf32>
    %cst_34 = arith.constant 2.500000e-01 : f32
    %75 = vector.broadcast %cst_34 : f32 to vector<16x16xf32>
    %76 = arith.mulf %74, %75 : vector<16x16xf32>
    %77 = arith.addf %76, %5 : vector<16x16xf32>
    %cst_35 = arith.constant dense<0xFF800000> : vector<16xf32>
    %78 = vector.multi_reduction <maximumf>, %77, %cst_35 [1] : vector<16x16xf32> to vector<16xf32>
    %79 = vector.shape_cast %78 : vector<16xf32> to vector<16x1xf32>
    %80 = vector.broadcast %79 : vector<16x1xf32> to vector<16x16xf32>
    %81 = arith.subf %77, %80 : vector<16x16xf32>
    %82 = math.exp %81 : vector<16x16xf32>
    %cst_36 = arith.constant dense<0.000000e+00> : vector<16xf32>
    %83 = vector.multi_reduction <add>, %82, %cst_36 [1] : vector<16x16xf32> to vector<16xf32>
    %84 = vector.shape_cast %83 : vector<16xf32> to vector<16x1xf32>
    %85 = tpu.reciprocal %84 {approx = true} : vector<16x1xf32> -> vector<16x1xf32>
    %86 = vector.broadcast %85 : vector<16x1xf32> to vector<16x16xf32>
    %87 = arith.mulf %82, %86 : vector<16x16xf32>
    %88 = arith.truncf %87 : vector<16x16xf32> to vector<16x16xbf16>
    %89 = vector.extract_strided_slice %24 {offsets = [0, 32], sizes = [16, 16], strides = [1, 1]} : vector<16x64xbf16> to vector<16x16xbf16>
    %cst_37 = arith.constant dense<0.000000e+00> : vector<16x16xf32>
    %90 = tpu.matmul %88, %89, %cst_37 {dimension_numbers = #tpu.dot_dimension_numbers<[1], [0], [0], [1], [0, 0, 1, 1], [], []>} : vector<16x16xbf16>, vector<16x16xbf16>, vector<16x16xf32> -> vector<16x16xf32>
    %91 = arith.truncf %90 : vector<16x16xf32> to vector<16x16xbf16>
    %92 = vector.extract_strided_slice %19 {offsets = [32, 0], sizes = [16, 64], strides = [1, 1]} : vector<64x64xbf16> to vector<16x64xbf16>
    %cst_38 = arith.constant dense<0.000000e+00> : vector<16x64xf32>
    %93 = tpu.matmul %91, %92, %cst_38 {dimension_numbers = #tpu.dot_dimension_numbers<[1], [0], [0], [1], [0, 0, 1, 1], [], []>} : vector<16x16xbf16>, vector<16x64xbf16>, vector<16x64xf32> -> vector<16x64xf32>
    %94 = arith.addf %71, %93 : vector<16x64xf32>
    %95 = vector.extract_strided_slice %22 {offsets = [0, 48], sizes = [16, 16], strides = [1, 1]} : vector<16x64xbf16> to vector<16x16xbf16>
    %96 = vector.extract_strided_slice %23 {offsets = [0, 48], sizes = [16, 16], strides = [1, 1]} : vector<16x64xbf16> to vector<16x16xbf16>
    %cst_39 = arith.constant dense<0.000000e+00> : vector<16x16xf32>
    %97 = tpu.matmul %95, %96, %cst_39 {dimension_numbers = #tpu.dot_dimension_numbers<[1], [1], [0], [0], [0, 0, 1, 0], [], []>} : vector<16x16xbf16>, vector<16x16xbf16>, vector<16x16xf32> -> vector<16x16xf32>
    %cst_40 = arith.constant 2.500000e-01 : f32
    %98 = vector.broadcast %cst_40 : f32 to vector<16x16xf32>
    %99 = arith.mulf %97, %98 : vector<16x16xf32>
    %100 = arith.addf %99, %5 : vector<16x16xf32>
    %cst_41 = arith.constant dense<0xFF800000> : vector<16xf32>
    %101 = vector.multi_reduction <maximumf>, %100, %cst_41 [1] : vector<16x16xf32> to vector<16xf32>
    %102 = vector.shape_cast %101 : vector<16xf32> to vector<16x1xf32>
    %103 = vector.broadcast %102 : vector<16x1xf32> to vector<16x16xf32>
    %104 = arith.subf %100, %103 : vector<16x16xf32>
    %105 = math.exp %104 : vector<16x16xf32>
    %cst_42 = arith.constant dense<0.000000e+00> : vector<16xf32>
    %106 = vector.multi_reduction <add>, %105, %cst_42 [1] : vector<16x16xf32> to vector<16xf32>
    %107 = vector.shape_cast %106 : vector<16xf32> to vector<16x1xf32>
    %108 = tpu.reciprocal %107 {approx = true} : vector<16x1xf32> -> vector<16x1xf32>
    %109 = vector.broadcast %108 : vector<16x1xf32> to vector<16x16xf32>
    %110 = arith.mulf %105, %109 : vector<16x16xf32>
    %111 = arith.truncf %110 : vector<16x16xf32> to vector<16x16xbf16>
    %112 = vector.extract_strided_slice %24 {offsets = [0, 48], sizes = [16, 16], strides = [1, 1]} : vector<16x64xbf16> to vector<16x16xbf16>
    %cst_43 = arith.constant dense<0.000000e+00> : vector<16x16xf32>
    %113 = tpu.matmul %111, %112, %cst_43 {dimension_numbers = #tpu.dot_dimension_numbers<[1], [0], [0], [1], [0, 0, 1, 1], [], []>} : vector<16x16xbf16>, vector<16x16xbf16>, vector<16x16xf32> -> vector<16x16xf32>
    %114 = arith.truncf %113 : vector<16x16xf32> to vector<16x16xbf16>
    %115 = vector.extract_strided_slice %19 {offsets = [48, 0], sizes = [16, 64], strides = [1, 1]} : vector<64x64xbf16> to vector<16x64xbf16>
    %cst_44 = arith.constant dense<0.000000e+00> : vector<16x64xf32>
    %116 = tpu.matmul %114, %115, %cst_44 {dimension_numbers = #tpu.dot_dimension_numbers<[1], [0], [0], [1], [0, 0, 1, 1], [], []>} : vector<16x16xbf16>, vector<16x64xbf16>, vector<16x64xf32> -> vector<16x64xf32>
    %117 = arith.addf %94, %116 : vector<16x64xf32>
    %118 = vector.broadcast %21 : vector<1x64xf32> to vector<16x64xf32>
    %119 = arith.addf %117, %118 : vector<16x64xf32>
    %120 = arith.addf %3, %119 : vector<16x64xf32>
    %c0_45 = arith.constant 0 : index
    %c0_46 = arith.constant 0 : index
    %c0_47 = arith.constant 0 : index
    %121 = vector.load %arg11[%c0_45, %c0_46, %c0_47] : memref<1x1x64xf32, #tpu.memory_space<vmem>>, vector<1x1x64xf32>
    %122 = vector.shape_cast %121 : vector<1x1x64xf32> to vector<1x64xf32>
    %c0_48 = arith.constant 0 : index
    %c0_49 = arith.constant 0 : index
    %c0_50 = arith.constant 0 : index
    %123 = vector.load %arg12[%c0_48, %c0_49, %c0_50] : memref<1x1x64xf32, #tpu.memory_space<vmem>>, vector<1x1x64xf32>
    %124 = vector.shape_cast %123 : vector<1x1x64xf32> to vector<1x64xf32>
    %cst_51 = arith.constant dense<0.000000e+00> : vector<16xf32>
    %125 = vector.multi_reduction <add>, %120, %cst_51 [1] : vector<16x64xf32> to vector<16xf32>
    %126 = vector.shape_cast %125 : vector<16xf32> to vector<16x1xf32>
    %cst_52 = arith.constant 6.400000e+01 : f32
    %127 = vector.broadcast %cst_52 : f32 to vector<16x1xf32>
    %128 = arith.divf %126, %127 : vector<16x1xf32>
    %129 = vector.broadcast %128 : vector<16x1xf32> to vector<16x64xf32>
    %130 = arith.subf %120, %129 : vector<16x64xf32>
    %131 = arith.mulf %130, %130 : vector<16x64xf32>
    %cst_53 = arith.constant dense<0.000000e+00> : vector<16xf32>
    %132 = vector.multi_reduction <add>, %131, %cst_53 [1] : vector<16x64xf32> to vector<16xf32>
    %133 = vector.shape_cast %132 : vector<16xf32> to vector<16x1xf32>
    %cst_54 = arith.constant 6.400000e+01 : f32
    %134 = vector.broadcast %cst_54 : f32 to vector<16x1xf32>
    %135 = arith.divf %133, %134 : vector<16x1xf32>
    %136 = vector.broadcast %128 : vector<16x1xf32> to vector<16x64xf32>
    %137 = arith.subf %120, %136 : vector<16x64xf32>
    %cst_55 = arith.constant 9.99999996E-13 : f32
    %138 = vector.broadcast %cst_55 : f32 to vector<16x1xf32>
    %139 = arith.addf %135, %138 : vector<16x1xf32>
    %140 = math.rsqrt %139 : vector<16x1xf32>
    %141 = vector.broadcast %140 : vector<16x1xf32> to vector<16x64xf32>
    %142 = arith.mulf %137, %141 : vector<16x64xf32>
    %143 = vector.broadcast %122 : vector<1x64xf32> to vector<16x64xf32>
    %144 = arith.mulf %142, %143 : vector<16x64xf32>
    %145 = vector.broadcast %124 : vector<1x64xf32> to vector<16x64xf32>
    %146 = arith.addf %144, %145 : vector<16x64xf32>
    %c0_56 = arith.constant 0 : index
    %c0_57 = arith.constant 0 : index
    %c0_58 = arith.constant 0 : index
    %147 = vector.load %arg13[%c0_56, %c0_57, %c0_58] : memref<1x64x64xbf16, #tpu.memory_space<vmem>>, vector<1x64x64xbf16>
    %148 = vector.shape_cast %147 : vector<1x64x64xbf16> to vector<64x64xbf16>
    %c0_59 = arith.constant 0 : index
    %c0_60 = arith.constant 0 : index
    %c0_61 = arith.constant 0 : index
    %149 = vector.load %arg14[%c0_59, %c0_60, %c0_61] : memref<1x1x64xf32, #tpu.memory_space<vmem>>, vector<1x1x64xf32>
    %150 = vector.shape_cast %149 : vector<1x1x64xf32> to vector<1x64xf32>
    %151 = arith.truncf %146 : vector<16x64xf32> to vector<16x64xbf16>
    %cst_62 = arith.constant dense<0.000000e+00> : vector<16x64xf32>
    %152 = tpu.matmul %151, %148, %cst_62 {dimension_numbers = #tpu.dot_dimension_numbers<[1], [0], [0], [1], [0, 0, 1, 1], [], []>} : vector<16x64xbf16>, vector<64x64xbf16>, vector<16x64xf32> -> vector<16x64xf32>
    %153 = vector.broadcast %150 : vector<1x64xf32> to vector<16x64xf32>
    %154 = arith.addf %152, %153 : vector<16x64xf32>
    %c0_63 = arith.constant 0 : index
    %c0_64 = arith.constant 0 : index
    %c0_65 = arith.constant 0 : index
    %155 = vector.load %arg15[%c0_63, %c0_64, %c0_65] : memref<1x64x128xbf16, #tpu.memory_space<vmem>>, vector<1x64x128xbf16>
    %156 = vector.shape_cast %155 : vector<1x64x128xbf16> to vector<64x128xbf16>
    %c0_66 = arith.constant 0 : index
    %c0_67 = arith.constant 0 : index
    %c0_68 = arith.constant 0 : index
    %157 = vector.load %arg16[%c0_66, %c0_67, %c0_68] : memref<1x1x128xf32, #tpu.memory_space<vmem>>, vector<1x1x128xf32>
    %158 = vector.shape_cast %157 : vector<1x1x128xf32> to vector<1x128xf32>
    %159 = arith.truncf %4 : vector<10x64xf32> to vector<10x64xbf16>
    %cst_69 = arith.constant dense<0.000000e+00> : vector<10x128xf32>
    %160 = tpu.matmul %159, %156, %cst_69 {dimension_numbers = #tpu.dot_dimension_numbers<[1], [0], [0], [1], [0, 0, 1, 1], [], []>} : vector<10x64xbf16>, vector<64x128xbf16>, vector<10x128xf32> -> vector<10x128xf32>
    %161 = vector.broadcast %158 : vector<1x128xf32> to vector<10x128xf32>
    %162 = arith.addf %160, %161 : vector<10x128xf32>
    %163 = vector.extract_strided_slice %162 {offsets = [0, 0], sizes = [10, 64], strides = [1, 1]} : vector<10x128xf32> to vector<10x64xf32>
    %164 = vector.extract_strided_slice %162 {offsets = [0, 64], sizes = [10, 64], strides = [1, 1]} : vector<10x128xf32> to vector<10x64xf32>
    %c0_70 = arith.constant 0 : index
    %c0_71 = arith.constant 0 : index
    %c0_72 = arith.constant 0 : index
    %165 = vector.load %arg17[%c0_70, %c0_71, %c0_72] : memref<1x64x64xbf16, #tpu.memory_space<vmem>>, vector<1x64x64xbf16>
    %166 = vector.shape_cast %165 : vector<1x64x64xbf16> to vector<64x64xbf16>
    %c0_73 = arith.constant 0 : index
    %c0_74 = arith.constant 0 : index
    %c0_75 = arith.constant 0 : index
    %167 = vector.load %arg18[%c0_73, %c0_74, %c0_75] : memref<1x1x64xf32, #tpu.memory_space<vmem>>, vector<1x1x64xf32>
    %168 = vector.shape_cast %167 : vector<1x1x64xf32> to vector<1x64xf32>
    %169 = arith.truncf %154 : vector<16x64xf32> to vector<16x64xbf16>
    %170 = arith.truncf %163 : vector<10x64xf32> to vector<10x64xbf16>
    %171 = arith.truncf %164 : vector<10x64xf32> to vector<10x64xbf16>
    %cst_76 = arith.constant 0.000000e+00 : f32
    %172 = vector.broadcast %cst_76 : f32 to vector<16x64xf32>
    %173 = vector.extract_strided_slice %169 {offsets = [0, 0], sizes = [16, 16], strides = [1, 1]} : vector<16x64xbf16> to vector<16x16xbf16>
    %174 = vector.extract_strided_slice %170 {offsets = [0, 0], sizes = [10, 16], strides = [1, 1]} : vector<10x64xbf16> to vector<10x16xbf16>
    %cst_77 = arith.constant dense<0.000000e+00> : vector<16x10xf32>
    %175 = tpu.matmul %173, %174, %cst_77 {dimension_numbers = #tpu.dot_dimension_numbers<[1], [1], [0], [0], [0, 0, 1, 0], [], []>} : vector<16x16xbf16>, vector<10x16xbf16>, vector<16x10xf32> -> vector<16x10xf32>
    %cst_78 = arith.constant 2.500000e-01 : f32
    %176 = vector.broadcast %cst_78 : f32 to vector<16x10xf32>
    %177 = arith.mulf %175, %176 : vector<16x10xf32>
    %178 = arith.addf %177, %6 : vector<16x10xf32>
    %cst_79 = arith.constant dense<0xFF800000> : vector<16xf32>
    %179 = vector.multi_reduction <maximumf>, %178, %cst_79 [1] : vector<16x10xf32> to vector<16xf32>
    %180 = vector.shape_cast %179 : vector<16xf32> to vector<16x1xf32>
    %181 = vector.broadcast %180 : vector<16x1xf32> to vector<16x10xf32>
    %182 = arith.subf %178, %181 : vector<16x10xf32>
    %183 = math.exp %182 : vector<16x10xf32>
    %cst_80 = arith.constant dense<0.000000e+00> : vector<16xf32>
    %184 = vector.multi_reduction <add>, %183, %cst_80 [1] : vector<16x10xf32> to vector<16xf32>
    %185 = vector.shape_cast %184 : vector<16xf32> to vector<16x1xf32>
    %186 = tpu.reciprocal %185 {approx = true} : vector<16x1xf32> -> vector<16x1xf32>
    %187 = vector.broadcast %186 : vector<16x1xf32> to vector<16x10xf32>
    %188 = arith.mulf %183, %187 : vector<16x10xf32>
    %189 = arith.truncf %188 : vector<16x10xf32> to vector<16x10xbf16>
    %190 = vector.extract_strided_slice %171 {offsets = [0, 0], sizes = [10, 16], strides = [1, 1]} : vector<10x64xbf16> to vector<10x16xbf16>
    %cst_81 = arith.constant dense<0.000000e+00> : vector<16x16xf32>
    %191 = tpu.matmul %189, %190, %cst_81 {dimension_numbers = #tpu.dot_dimension_numbers<[1], [0], [0], [1], [0, 0, 1, 1], [], []>} : vector<16x10xbf16>, vector<10x16xbf16>, vector<16x16xf32> -> vector<16x16xf32>
    %192 = arith.truncf %191 : vector<16x16xf32> to vector<16x16xbf16>
    %193 = vector.extract_strided_slice %166 {offsets = [0, 0], sizes = [16, 64], strides = [1, 1]} : vector<64x64xbf16> to vector<16x64xbf16>
    %cst_82 = arith.constant dense<0.000000e+00> : vector<16x64xf32>
    %194 = tpu.matmul %192, %193, %cst_82 {dimension_numbers = #tpu.dot_dimension_numbers<[1], [0], [0], [1], [0, 0, 1, 1], [], []>} : vector<16x16xbf16>, vector<16x64xbf16>, vector<16x64xf32> -> vector<16x64xf32>
    %195 = arith.addf %172, %194 : vector<16x64xf32>
    %196 = vector.extract_strided_slice %169 {offsets = [0, 16], sizes = [16, 16], strides = [1, 1]} : vector<16x64xbf16> to vector<16x16xbf16>
    %197 = vector.extract_strided_slice %170 {offsets = [0, 16], sizes = [10, 16], strides = [1, 1]} : vector<10x64xbf16> to vector<10x16xbf16>
    %cst_83 = arith.constant dense<0.000000e+00> : vector<16x10xf32>
    %198 = tpu.matmul %196, %197, %cst_83 {dimension_numbers = #tpu.dot_dimension_numbers<[1], [1], [0], [0], [0, 0, 1, 0], [], []>} : vector<16x16xbf16>, vector<10x16xbf16>, vector<16x10xf32> -> vector<16x10xf32>
    %cst_84 = arith.constant 2.500000e-01 : f32
    %199 = vector.broadcast %cst_84 : f32 to vector<16x10xf32>
    %200 = arith.mulf %198, %199 : vector<16x10xf32>
    %201 = arith.addf %200, %6 : vector<16x10xf32>
    %cst_85 = arith.constant dense<0xFF800000> : vector<16xf32>
    %202 = vector.multi_reduction <maximumf>, %201, %cst_85 [1] : vector<16x10xf32> to vector<16xf32>
    %203 = vector.shape_cast %202 : vector<16xf32> to vector<16x1xf32>
    %204 = vector.broadcast %203 : vector<16x1xf32> to vector<16x10xf32>
    %205 = arith.subf %201, %204 : vector<16x10xf32>
    %206 = math.exp %205 : vector<16x10xf32>
    %cst_86 = arith.constant dense<0.000000e+00> : vector<16xf32>
    %207 = vector.multi_reduction <add>, %206, %cst_86 [1] : vector<16x10xf32> to vector<16xf32>
    %208 = vector.shape_cast %207 : vector<16xf32> to vector<16x1xf32>
    %209 = tpu.reciprocal %208 {approx = true} : vector<16x1xf32> -> vector<16x1xf32>
    %210 = vector.broadcast %209 : vector<16x1xf32> to vector<16x10xf32>
    %211 = arith.mulf %206, %210 : vector<16x10xf32>
    %212 = arith.truncf %211 : vector<16x10xf32> to vector<16x10xbf16>
    %213 = vector.extract_strided_slice %171 {offsets = [0, 16], sizes = [10, 16], strides = [1, 1]} : vector<10x64xbf16> to vector<10x16xbf16>
    %cst_87 = arith.constant dense<0.000000e+00> : vector<16x16xf32>
    %214 = tpu.matmul %212, %213, %cst_87 {dimension_numbers = #tpu.dot_dimension_numbers<[1], [0], [0], [1], [0, 0, 1, 1], [], []>} : vector<16x10xbf16>, vector<10x16xbf16>, vector<16x16xf32> -> vector<16x16xf32>
    %215 = arith.truncf %214 : vector<16x16xf32> to vector<16x16xbf16>
    %216 = vector.extract_strided_slice %166 {offsets = [16, 0], sizes = [16, 64], strides = [1, 1]} : vector<64x64xbf16> to vector<16x64xbf16>
    %cst_88 = arith.constant dense<0.000000e+00> : vector<16x64xf32>
    %217 = tpu.matmul %215, %216, %cst_88 {dimension_numbers = #tpu.dot_dimension_numbers<[1], [0], [0], [1], [0, 0, 1, 1], [], []>} : vector<16x16xbf16>, vector<16x64xbf16>, vector<16x64xf32> -> vector<16x64xf32>
    %218 = arith.addf %195, %217 : vector<16x64xf32>
    %219 = vector.extract_strided_slice %169 {offsets = [0, 32], sizes = [16, 16], strides = [1, 1]} : vector<16x64xbf16> to vector<16x16xbf16>
    %220 = vector.extract_strided_slice %170 {offsets = [0, 32], sizes = [10, 16], strides = [1, 1]} : vector<10x64xbf16> to vector<10x16xbf16>
    %cst_89 = arith.constant dense<0.000000e+00> : vector<16x10xf32>
    %221 = tpu.matmul %219, %220, %cst_89 {dimension_numbers = #tpu.dot_dimension_numbers<[1], [1], [0], [0], [0, 0, 1, 0], [], []>} : vector<16x16xbf16>, vector<10x16xbf16>, vector<16x10xf32> -> vector<16x10xf32>
    %cst_90 = arith.constant 2.500000e-01 : f32
    %222 = vector.broadcast %cst_90 : f32 to vector<16x10xf32>
    %223 = arith.mulf %221, %222 : vector<16x10xf32>
    %224 = arith.addf %223, %6 : vector<16x10xf32>
    %cst_91 = arith.constant dense<0xFF800000> : vector<16xf32>
    %225 = vector.multi_reduction <maximumf>, %224, %cst_91 [1] : vector<16x10xf32> to vector<16xf32>
    %226 = vector.shape_cast %225 : vector<16xf32> to vector<16x1xf32>
    %227 = vector.broadcast %226 : vector<16x1xf32> to vector<16x10xf32>
    %228 = arith.subf %224, %227 : vector<16x10xf32>
    %229 = math.exp %228 : vector<16x10xf32>
    %cst_92 = arith.constant dense<0.000000e+00> : vector<16xf32>
    %230 = vector.multi_reduction <add>, %229, %cst_92 [1] : vector<16x10xf32> to vector<16xf32>
    %231 = vector.shape_cast %230 : vector<16xf32> to vector<16x1xf32>
    %232 = tpu.reciprocal %231 {approx = true} : vector<16x1xf32> -> vector<16x1xf32>
    %233 = vector.broadcast %232 : vector<16x1xf32> to vector<16x10xf32>
    %234 = arith.mulf %229, %233 : vector<16x10xf32>
    %235 = arith.truncf %234 : vector<16x10xf32> to vector<16x10xbf16>
    %236 = vector.extract_strided_slice %171 {offsets = [0, 32], sizes = [10, 16], strides = [1, 1]} : vector<10x64xbf16> to vector<10x16xbf16>
    %cst_93 = arith.constant dense<0.000000e+00> : vector<16x16xf32>
    %237 = tpu.matmul %235, %236, %cst_93 {dimension_numbers = #tpu.dot_dimension_numbers<[1], [0], [0], [1], [0, 0, 1, 1], [], []>} : vector<16x10xbf16>, vector<10x16xbf16>, vector<16x16xf32> -> vector<16x16xf32>
    %238 = arith.truncf %237 : vector<16x16xf32> to vector<16x16xbf16>
    %239 = vector.extract_strided_slice %166 {offsets = [32, 0], sizes = [16, 64], strides = [1, 1]} : vector<64x64xbf16> to vector<16x64xbf16>
    %cst_94 = arith.constant dense<0.000000e+00> : vector<16x64xf32>
    %240 = tpu.matmul %238, %239, %cst_94 {dimension_numbers = #tpu.dot_dimension_numbers<[1], [0], [0], [1], [0, 0, 1, 1], [], []>} : vector<16x16xbf16>, vector<16x64xbf16>, vector<16x64xf32> -> vector<16x64xf32>
    %241 = arith.addf %218, %240 : vector<16x64xf32>
    %242 = vector.extract_strided_slice %169 {offsets = [0, 48], sizes = [16, 16], strides = [1, 1]} : vector<16x64xbf16> to vector<16x16xbf16>
    %243 = vector.extract_strided_slice %170 {offsets = [0, 48], sizes = [10, 16], strides = [1, 1]} : vector<10x64xbf16> to vector<10x16xbf16>
    %cst_95 = arith.constant dense<0.000000e+00> : vector<16x10xf32>
    %244 = tpu.matmul %242, %243, %cst_95 {dimension_numbers = #tpu.dot_dimension_numbers<[1], [1], [0], [0], [0, 0, 1, 0], [], []>} : vector<16x16xbf16>, vector<10x16xbf16>, vector<16x10xf32> -> vector<16x10xf32>
    %cst_96 = arith.constant 2.500000e-01 : f32
    %245 = vector.broadcast %cst_96 : f32 to vector<16x10xf32>
    %246 = arith.mulf %244, %245 : vector<16x10xf32>
    %247 = arith.addf %246, %6 : vector<16x10xf32>
    %cst_97 = arith.constant dense<0xFF800000> : vector<16xf32>
    %248 = vector.multi_reduction <maximumf>, %247, %cst_97 [1] : vector<16x10xf32> to vector<16xf32>
    %249 = vector.shape_cast %248 : vector<16xf32> to vector<16x1xf32>
    %250 = vector.broadcast %249 : vector<16x1xf32> to vector<16x10xf32>
    %251 = arith.subf %247, %250 : vector<16x10xf32>
    %252 = math.exp %251 : vector<16x10xf32>
    %cst_98 = arith.constant dense<0.000000e+00> : vector<16xf32>
    %253 = vector.multi_reduction <add>, %252, %cst_98 [1] : vector<16x10xf32> to vector<16xf32>
    %254 = vector.shape_cast %253 : vector<16xf32> to vector<16x1xf32>
    %255 = tpu.reciprocal %254 {approx = true} : vector<16x1xf32> -> vector<16x1xf32>
    %256 = vector.broadcast %255 : vector<16x1xf32> to vector<16x10xf32>
    %257 = arith.mulf %252, %256 : vector<16x10xf32>
    %258 = arith.truncf %257 : vector<16x10xf32> to vector<16x10xbf16>
    %259 = vector.extract_strided_slice %171 {offsets = [0, 48], sizes = [10, 16], strides = [1, 1]} : vector<10x64xbf16> to vector<10x16xbf16>
    %cst_99 = arith.constant dense<0.000000e+00> : vector<16x16xf32>
    %260 = tpu.matmul %258, %259, %cst_99 {dimension_numbers = #tpu.dot_dimension_numbers<[1], [0], [0], [1], [0, 0, 1, 1], [], []>} : vector<16x10xbf16>, vector<10x16xbf16>, vector<16x16xf32> -> vector<16x16xf32>
    %261 = arith.truncf %260 : vector<16x16xf32> to vector<16x16xbf16>
    %262 = vector.extract_strided_slice %166 {offsets = [48, 0], sizes = [16, 64], strides = [1, 1]} : vector<64x64xbf16> to vector<16x64xbf16>
    %cst_100 = arith.constant dense<0.000000e+00> : vector<16x64xf32>
    %263 = tpu.matmul %261, %262, %cst_100 {dimension_numbers = #tpu.dot_dimension_numbers<[1], [0], [0], [1], [0, 0, 1, 1], [], []>} : vector<16x16xbf16>, vector<16x64xbf16>, vector<16x64xf32> -> vector<16x64xf32>
    %264 = arith.addf %241, %263 : vector<16x64xf32>
    %265 = vector.broadcast %168 : vector<1x64xf32> to vector<16x64xf32>
    %266 = arith.addf %264, %265 : vector<16x64xf32>
    %267 = arith.addf %146, %266 : vector<16x64xf32>
    %c0_101 = arith.constant 0 : index
    %c0_102 = arith.constant 0 : index
    %c0_103 = arith.constant 0 : index
    %268 = vector.load %arg19[%c0_101, %c0_102, %c0_103] : memref<1x1x64xf32, #tpu.memory_space<vmem>>, vector<1x1x64xf32>
    %269 = vector.shape_cast %268 : vector<1x1x64xf32> to vector<1x64xf32>
    %c0_104 = arith.constant 0 : index
    %c0_105 = arith.constant 0 : index
    %c0_106 = arith.constant 0 : index
    %270 = vector.load %arg20[%c0_104, %c0_105, %c0_106] : memref<1x1x64xf32, #tpu.memory_space<vmem>>, vector<1x1x64xf32>
    %271 = vector.shape_cast %270 : vector<1x1x64xf32> to vector<1x64xf32>
    %cst_107 = arith.constant dense<0.000000e+00> : vector<16xf32>
    %272 = vector.multi_reduction <add>, %267, %cst_107 [1] : vector<16x64xf32> to vector<16xf32>
    %273 = vector.shape_cast %272 : vector<16xf32> to vector<16x1xf32>
    %cst_108 = arith.constant 6.400000e+01 : f32
    %274 = vector.broadcast %cst_108 : f32 to vector<16x1xf32>
    %275 = arith.divf %273, %274 : vector<16x1xf32>
    %276 = vector.broadcast %275 : vector<16x1xf32> to vector<16x64xf32>
    %277 = arith.subf %267, %276 : vector<16x64xf32>
    %278 = arith.mulf %277, %277 : vector<16x64xf32>
    %cst_109 = arith.constant dense<0.000000e+00> : vector<16xf32>
    %279 = vector.multi_reduction <add>, %278, %cst_109 [1] : vector<16x64xf32> to vector<16xf32>
    %280 = vector.shape_cast %279 : vector<16xf32> to vector<16x1xf32>
    %cst_110 = arith.constant 6.400000e+01 : f32
    %281 = vector.broadcast %cst_110 : f32 to vector<16x1xf32>
    %282 = arith.divf %280, %281 : vector<16x1xf32>
    %283 = vector.broadcast %275 : vector<16x1xf32> to vector<16x64xf32>
    %284 = arith.subf %267, %283 : vector<16x64xf32>
    %cst_111 = arith.constant 9.99999996E-13 : f32
    %285 = vector.broadcast %cst_111 : f32 to vector<16x1xf32>
    %286 = arith.addf %282, %285 : vector<16x1xf32>
    %287 = math.rsqrt %286 : vector<16x1xf32>
    %288 = vector.broadcast %287 : vector<16x1xf32> to vector<16x64xf32>
    %289 = arith.mulf %284, %288 : vector<16x64xf32>
    %290 = vector.broadcast %269 : vector<1x64xf32> to vector<16x64xf32>
    %291 = arith.mulf %289, %290 : vector<16x64xf32>
    %292 = vector.broadcast %271 : vector<1x64xf32> to vector<16x64xf32>
    %293 = arith.addf %291, %292 : vector<16x64xf32>
    %c0_112 = arith.constant 0 : index
    %c0_113 = arith.constant 0 : index
    %c0_114 = arith.constant 0 : index
    %294 = vector.load %arg21[%c0_112, %c0_113, %c0_114] : memref<1x64x256xbf16, #tpu.memory_space<vmem>>, vector<1x64x256xbf16>
    %295 = vector.shape_cast %294 : vector<1x64x256xbf16> to vector<64x256xbf16>
    %c0_115 = arith.constant 0 : index
    %c0_116 = arith.constant 0 : index
    %c0_117 = arith.constant 0 : index
    %296 = vector.load %arg22[%c0_115, %c0_116, %c0_117] : memref<1x1x256xf32, #tpu.memory_space<vmem>>, vector<1x1x256xf32>
    %297 = vector.shape_cast %296 : vector<1x1x256xf32> to vector<1x256xf32>
    %298 = arith.truncf %293 : vector<16x64xf32> to vector<16x64xbf16>
    %cst_118 = arith.constant dense<0.000000e+00> : vector<16x256xf32>
    %299 = tpu.matmul %298, %295, %cst_118 {dimension_numbers = #tpu.dot_dimension_numbers<[1], [0], [0], [1], [0, 0, 1, 1], [], []>} : vector<16x64xbf16>, vector<64x256xbf16>, vector<16x256xf32> -> vector<16x256xf32>
    %300 = vector.broadcast %297 : vector<1x256xf32> to vector<16x256xf32>
    %301 = arith.addf %299, %300 : vector<16x256xf32>
    %302 = arith.mulf %301, %301 : vector<16x256xf32>
    %303 = arith.mulf %301, %302 : vector<16x256xf32>
    %cst_119 = arith.constant 4.471500e-02 : f32
    %304 = vector.broadcast %cst_119 : f32 to vector<16x256xf32>
    %305 = arith.mulf %304, %303 : vector<16x256xf32>
    %306 = arith.addf %301, %305 : vector<16x256xf32>
    %cst_120 = arith.constant 0.797884583 : f32
    %307 = vector.broadcast %cst_120 : f32 to vector<16x256xf32>
    %308 = arith.mulf %307, %306 : vector<16x256xf32>
    %309 = math.tanh %308 : vector<16x256xf32>
    %cst_121 = arith.constant 1.000000e+00 : f32
    %310 = vector.broadcast %cst_121 : f32 to vector<16x256xf32>
    %311 = arith.addf %310, %309 : vector<16x256xf32>
    %cst_122 = arith.constant 5.000000e-01 : f32
    %312 = vector.broadcast %cst_122 : f32 to vector<16x256xf32>
    %313 = arith.mulf %312, %311 : vector<16x256xf32>
    %314 = arith.mulf %301, %313 : vector<16x256xf32>
    %c0_123 = arith.constant 0 : index
    %c0_124 = arith.constant 0 : index
    %c0_125 = arith.constant 0 : index
    %315 = vector.load %arg23[%c0_123, %c0_124, %c0_125] : memref<1x256x64xbf16, #tpu.memory_space<vmem>>, vector<1x256x64xbf16>
    %316 = vector.shape_cast %315 : vector<1x256x64xbf16> to vector<256x64xbf16>
    %c0_126 = arith.constant 0 : index
    %c0_127 = arith.constant 0 : index
    %c0_128 = arith.constant 0 : index
    %317 = vector.load %arg24[%c0_126, %c0_127, %c0_128] : memref<1x1x64xf32, #tpu.memory_space<vmem>>, vector<1x1x64xf32>
    %318 = vector.shape_cast %317 : vector<1x1x64xf32> to vector<1x64xf32>
    %319 = arith.truncf %314 : vector<16x256xf32> to vector<16x256xbf16>
    %cst_129 = arith.constant dense<0.000000e+00> : vector<16x64xf32>
    %320 = tpu.matmul %319, %316, %cst_129 {dimension_numbers = #tpu.dot_dimension_numbers<[1], [0], [0], [1], [0, 0, 1, 1], [], []>} : vector<16x256xbf16>, vector<256x64xbf16>, vector<16x64xf32> -> vector<16x64xf32>
    %321 = vector.broadcast %318 : vector<1x64xf32> to vector<16x64xf32>
    %322 = arith.addf %320, %321 : vector<16x64xf32>
    %323 = arith.addf %293, %322 : vector<16x64xf32>
    %c0_130 = arith.constant 0 : index
    %c0_131 = arith.constant 0 : index
    %c0_132 = arith.constant 0 : index
    %324 = vector.load %arg25[%c0_130, %c0_131, %c0_132] : memref<1x1x64xf32, #tpu.memory_space<vmem>>, vector<1x1x64xf32>
    %325 = vector.shape_cast %324 : vector<1x1x64xf32> to vector<1x64xf32>
    %c0_133 = arith.constant 0 : index
    %c0_134 = arith.constant 0 : index
    %c0_135 = arith.constant 0 : index
    %326 = vector.load %arg26[%c0_133, %c0_134, %c0_135] : memref<1x1x64xf32, #tpu.memory_space<vmem>>, vector<1x1x64xf32>
    %327 = vector.shape_cast %326 : vector<1x1x64xf32> to vector<1x64xf32>
    %cst_136 = arith.constant dense<0.000000e+00> : vector<16xf32>
    %328 = vector.multi_reduction <add>, %323, %cst_136 [1] : vector<16x64xf32> to vector<16xf32>
    %329 = vector.shape_cast %328 : vector<16xf32> to vector<16x1xf32>
    %cst_137 = arith.constant 6.400000e+01 : f32
    %330 = vector.broadcast %cst_137 : f32 to vector<16x1xf32>
    %331 = arith.divf %329, %330 : vector<16x1xf32>
    %332 = vector.broadcast %331 : vector<16x1xf32> to vector<16x64xf32>
    %333 = arith.subf %323, %332 : vector<16x64xf32>
    %334 = arith.mulf %333, %333 : vector<16x64xf32>
    %cst_138 = arith.constant dense<0.000000e+00> : vector<16xf32>
    %335 = vector.multi_reduction <add>, %334, %cst_138 [1] : vector<16x64xf32> to vector<16xf32>
    %336 = vector.shape_cast %335 : vector<16xf32> to vector<16x1xf32>
    %cst_139 = arith.constant 6.400000e+01 : f32
    %337 = vector.broadcast %cst_139 : f32 to vector<16x1xf32>
    %338 = arith.divf %336, %337 : vector<16x1xf32>
    %339 = vector.broadcast %331 : vector<16x1xf32> to vector<16x64xf32>
    %340 = arith.subf %323, %339 : vector<16x64xf32>
    %cst_140 = arith.constant 9.99999996E-13 : f32
    %341 = vector.broadcast %cst_140 : f32 to vector<16x1xf32>
    %342 = arith.addf %338, %341 : vector<16x1xf32>
    %343 = math.rsqrt %342 : vector<16x1xf32>
    %344 = vector.broadcast %343 : vector<16x1xf32> to vector<16x64xf32>
    %345 = arith.mulf %340, %344 : vector<16x64xf32>
    %346 = vector.broadcast %325 : vector<1x64xf32> to vector<16x64xf32>
    %347 = arith.mulf %345, %346 : vector<16x64xf32>
    %348 = vector.broadcast %327 : vector<1x64xf32> to vector<16x64xf32>
    %349 = arith.addf %347, %348 : vector<16x64xf32>
    %c0_141 = arith.constant 0 : index
    %c0_142 = arith.constant 0 : index
    %350 = vector.load %arg27[%c0_141, %c0_142] : memref<16x64xf32, #tpu.memory_space<vmem>>, vector<16x64xf32>
    tpu.vector_store %arg27[%c0_141, %c0_142], %349 {strides = array<i32>} : memref<16x64xf32, #tpu.memory_space<vmem>>, vector<16x64xf32>,
    return
  }
  func.func @transform_0(%arg0: i32) -> (i32, i32) {
    %c0_i32 = arith.constant 0 : i32
    %c0_i32_0 = arith.constant 0 : i32
    %c0_i32_1 = arith.constant 0 : i32
    return %c0_i32, %c0_i32_0 : i32, i32
  }
  func.func @transform_1(%arg0: i32) -> (i32, i32) {
    %c0_i32 = arith.constant 0 : i32
    %c0_i32_0 = arith.constant 0 : i32
    %c0_i32_1 = arith.constant 0 : i32
    return %c0_i32, %c0_i32_0 : i32, i32
  }
  func.func @transform_2(%arg0: i32) -> (i32, i32) {
    %c0_i32 = arith.constant 0 : i32
    %c0_i32_0 = arith.constant 0 : i32
    %c0_i32_1 = arith.constant 0 : i32
    return %c0_i32, %c0_i32_0 : i32, i32
  }
  func.func @transform_3(%arg0: i32) -> (i32, i32) {
    %c0_i32 = arith.constant 0 : i32
    %c0_i32_0 = arith.constant 0 : i32
    %c0_i32_1 = arith.constant 0 : i32
    return %c0_i32, %c0_i32_0 : i32, i32
  }
  func.func @transform_4(%arg0: i32) -> (i32, i32) {
    %c0_i32 = arith.constant 0 : i32
    %c0_i32_0 = arith.constant 0 : i32
    %c0_i32_1 = arith.constant 0 : i32
    return %c0_i32, %c0_i32_0 : i32, i32
  }
  func.func @transform_5(%arg0: i32) -> (i32, i32) {
    %c0_i32 = arith.constant 0 : i32
    %c0_i32_0 = arith.constant 0 : i32
    %c0_i32_1 = arith.constant 0 : i32
    return %c0_i32, %c0_i32_0 : i32, i32
  }
  func.func @transform_6(%arg0: i32) -> (i32, i32, i32) {
    %c0_i32 = arith.constant 0 : i32
    %c0_i32_0 = arith.constant 0 : i32
    %c0_i32_1 = arith.constant 0 : i32
    return %arg0, %c0_i32, %c0_i32_0 : i32, i32, i32
  }
  func.func @transform_7(%arg0: i32) -> (i32, i32, i32) {
    %c0_i32 = arith.constant 0 : i32
    %c0_i32_0 = arith.constant 0 : i32
    %c0_i32_1 = arith.constant 0 : i32
    return %arg0, %c0_i32, %c0_i32_0 : i32, i32, i32
  }
  func.func @transform_8(%arg0: i32) -> (i32, i32, i32) {
    %c0_i32 = arith.constant 0 : i32
    %c0_i32_0 = arith.constant 0 : i32
    %c0_i32_1 = arith.constant 0 : i32
    return %arg0, %c0_i32, %c0_i32_0 : i32, i32, i32
  }
  func.func @transform_9(%arg0: i32) -> (i32, i32, i32) {
    %c0_i32 = arith.constant 0 : i32
    %c0_i32_0 = arith.constant 0 : i32
    %c0_i32_1 = arith.constant 0 : i32
    return %arg0, %c0_i32, %c0_i32_0 : i32, i32, i32
  }
  func.func @transform_10(%arg0: i32) -> (i32, i32, i32) {
    %c0_i32 = arith.constant 0 : i32
    %c0_i32_0 = arith.constant 0 : i32
    %c0_i32_1 = arith.constant 0 : i32
    return %arg0, %c0_i32, %c0_i32_0 : i32, i32, i32
  }
  func.func @transform_11(%arg0: i32) -> (i32, i32, i32) {
    %c0_i32 = arith.constant 0 : i32
    %c0_i32_0 = arith.constant 0 : i32
    %c0_i32_1 = arith.constant 0 : i32
    return %arg0, %c0_i32, %c0_i32_0 : i32, i32, i32
  }
  func.func @transform_12(%arg0: i32) -> (i32, i32, i32) {
    %c0_i32 = arith.constant 0 : i32
    %c0_i32_0 = arith.constant 0 : i32
    %c0_i32_1 = arith.constant 0 : i32
    return %arg0, %c0_i32, %c0_i32_0 : i32, i32, i32
  }
  func.func @transform_13(%arg0: i32) -> (i32, i32, i32) {
    %c0_i32 = arith.constant 0 : i32
    %c0_i32_0 = arith.constant 0 : i32
    %c0_i32_1 = arith.constant 0 : i32
    return %arg0, %c0_i32, %c0_i32_0 : i32, i32, i32
  }
  func.func @transform_14(%arg0: i32) -> (i32, i32, i32) {
    %c0_i32 = arith.constant 0 : i32
    %c0_i32_0 = arith.constant 0 : i32
    %c0_i32_1 = arith.constant 0 : i32
    return %arg0, %c0_i32, %c0_i32_0 : i32, i32, i32
  }
  func.func @transform_15(%arg0: i32) -> (i32, i32, i32) {
    %c0_i32 = arith.constant 0 : i32
    %c0_i32_0 = arith.constant 0 : i32
    %c0_i32_1 = arith.constant 0 : i32
    return %arg0, %c0_i32, %c0_i32_0 : i32, i32, i32
  }
  func.func @transform_16(%arg0: i32) -> (i32, i32, i32) {
    %c0_i32 = arith.constant 0 : i32
    %c0_i32_0 = arith.constant 0 : i32
    %c0_i32_1 = arith.constant 0 : i32
    return %arg0, %c0_i32, %c0_i32_0 : i32, i32, i32
  }
  func.func @transform_17(%arg0: i32) -> (i32, i32, i32) {
    %c0_i32 = arith.constant 0 : i32
    %c0_i32_0 = arith.constant 0 : i32
    %c0_i32_1 = arith.constant 0 : i32
    return %arg0, %c0_i32, %c0_i32_0 : i32, i32, i32
  }
  func.func @transform_18(%arg0: i32) -> (i32, i32, i32) {
    %c0_i32 = arith.constant 0 : i32
    %c0_i32_0 = arith.constant 0 : i32
    %c0_i32_1 = arith.constant 0 : i32
    return %arg0, %c0_i32, %c0_i32_0 : i32, i32, i32
  }
  func.func @transform_19(%arg0: i32) -> (i32, i32, i32) {
    %c0_i32 = arith.constant 0 : i32
    %c0_i32_0 = arith.constant 0 : i32
    %c0_i32_1 = arith.constant 0 : i32
    return %arg0, %c0_i32, %c0_i32_0 : i32, i32, i32
  }
  func.func @transform_20(%arg0: i32) -> (i32, i32, i32) {
    %c0_i32 = arith.constant 0 : i32
    %c0_i32_0 = arith.constant 0 : i32
    %c0_i32_1 = arith.constant 0 : i32
    return %arg0, %c0_i32, %c0_i32_0 : i32, i32, i32
  }
  func.func @transform_21(%arg0: i32) -> (i32, i32, i32) {
    %c0_i32 = arith.constant 0 : i32
    %c0_i32_0 = arith.constant 0 : i32
    %c0_i32_1 = arith.constant 0 : i32
    return %arg0, %c0_i32, %c0_i32_0 : i32, i32, i32
  }
  func.func @transform_22(%arg0: i32) -> (i32, i32, i32) {
    %c0_i32 = arith.constant 0 : i32
    %c0_i32_0 = arith.constant 0 : i32
    %c0_i32_1 = arith.constant 0 : i32
    return %arg0, %c0_i32, %c0_i32_0 : i32, i32, i32
  }
  func.func @transform_23(%arg0: i32) -> (i32, i32, i32) {
    %c0_i32 = arith.constant 0 : i32
    %c0_i32_0 = arith.constant 0 : i32
    %c0_i32_1 = arith.constant 0 : i32
    return %arg0, %c0_i32, %c0_i32_0 : i32, i32, i32
  }
  func.func @transform_24(%arg0: i32) -> (i32, i32, i32) {
    %c0_i32 = arith.constant 0 : i32
    %c0_i32_0 = arith.constant 0 : i32
    %c0_i32_1 = arith.constant 0 : i32
    return %arg0, %c0_i32, %c0_i32_0 : i32, i32, i32
  }
  func.func @transform_25(%arg0: i32) -> (i32, i32, i32) {
    %c0_i32 = arith.constant 0 : i32
    %c0_i32_0 = arith.constant 0 : i32
    %c0_i32_1 = arith.constant 0 : i32
    return %arg0, %c0_i32, %c0_i32_0 : i32, i32, i32
  }
  func.func @transform_26(%arg0: i32) -> (i32, i32) {
    %c0_i32 = arith.constant 0 : i32
    %c0_i32_0 = arith.constant 0 : i32
    %c0_i32_1 = arith.constant 0 : i32
    return %c0_i32, %c0_i32_0 : i32, i32
  }
}

</mosaic_0001>

<bundles_post_ra>
// kernel: eq.22
= control target key start
LH: loop header
LB: loop body
LE: loop exit
PB: predicated region body
PF: predicated region fallthrough
CT: control target
= control target key end

     0   :  { %vm7_vm0 = vcmask 39936   ;;  %vm13_vm1 = vcmask 80936   ;;  %s39_s0 = inlined_call_operand.vmem [shape: s32[2,5], index: 0, kind: input, shape index: {}]   ;;  %s40_s1 = inlined_call_operand.vmem [shape: s32[10], index: 1, kind: output, shape index: {}]  }
   0x1   :  { %v4_v0 = vld [vmem:[%s39_s0] sm:$0x3]  ;;  %s22_s0 = smov 5  }
   0x2   :  { %5 = vst [vmem:[#allocation1] sm:$0x3] %v4_v0 }
   0x9   :  { %v10_v1 = vld [vmem:[#allocation1 + $0x1] sm:$0x1]   ;;  %v6_v2 = vld [vmem:[#allocation1] sm:$0x1]  }
   0xa   :  { %11 = vrot.lane.b32.xlu0 %v10_v1, %s22_s0  ;;  %8 = vst.msk [vmem:[#allocation0] sm:$0x1] %vm7_vm0, %v6_v2  }
  0x7c   :  { %v12_v3 = vpop.permute.xlu0 %11  }
  0x7d   :  { %14 = vst.msk [vmem:[#allocation0] sm:$0x1] %vm13_vm1, %v12_v3  }
  0x84   :  { %v17_v4 = vld [vmem:[#allocation0] sm:$0x1] }
  0x85   :  { %20 = vst [vmem:[%s40_s1] sm:$0x1] %v17_v4 }

// kernel: vl_transformer_itm_forward.2
= control target key start
LH: loop header
LB: loop body
LE: loop exit
PB: predicated region body
PF: predicated region fallthrough
CT: control target
= control target key end

     0   :  { %s2218_s21 = smov 0   ;;  %s2565_s0 = inlined_call_operand.vmem [shape: f32[10,64], index: 0, kind: input, shape index: {}]   ;;  %s2566_s1 = inlined_call_operand.vmem [shape: f32[10,10], index: 1, kind: input, shape index: {}]   ;;  %s2567_s2 = inlined_call_operand.vmem [shape: f32[2,1,64], index: 2, kind: input, shape index: {}]   ;;  %s2568_s3 = inlined_call_operand.vmem [shape: f32[2,1,64], index: 3, kind: input, shape index: {}]   ;;  %s2569_s4 = inlined_call_operand.vmem [shape: bf16[2,64,192], index: 4, kind: input, shape index: {}]   ;;  %s2570_s5 = inlined_call_operand.vmem [shape: f32[2,1,192], index: 5, kind: input, shape index: {}]   ;;  %s2571_s6 = inlined_call_operand.vmem [shape: bf16[2,64,64], index: 6, kind: input, shape index: {}]   ;;  %s2572_s7 = inlined_call_operand.vmem [shape: f32[2,1,64], index: 7, kind: input, shape index: {}]   ;;  %s2573_s8 = inlined_call_operand.vmem [shape: f32[2,1,64], index: 8, kind: input, shape index: {}]   ;;  %s2574_s9 = inlined_call_operand.vmem [shape: f32[2,1,64], index: 9, kind: input, shape index: {}]   ;;  %s2575_s10 = inlined_call_operand.vmem [shape: bf16[2,64,256], index: 10, kind: input, shape index: {}]   ;;  %s2576_s11 = inlined_call_operand.vmem [shape: f32[2,1,256], index: 11, kind: input, shape index: {}]   ;;  %s2577_s12 = inlined_call_operand.vmem [shape: bf16[2,256,64], index: 12, kind: input, shape index: {}]   ;;  %s2578_s13 = inlined_call_operand.vmem [shape: f32[2,1,64], index: 13, kind: input, shape index: {}]   ;;  %s2579_s14 = inlined_call_operand.vmem [shape: f32[1,64], index: 14, kind: input, shape index: {}]   ;;  %s2580_s15 = inlined_call_operand.vmem [shape: f32[1,64], index: 15, kind: input, shape index: {}]   ;;  %s2581_s16 = inlined_call_operand.vmem [shape: f32[10,64], index: 16, kind: output, shape index: {}]  }
   0x1   :  { %2585 = sst [smem:[#allocation3_spill]] %s2565_s0 }
   0x2   :  { %2586 = sst [smem:[#allocation4_spill]] %s2566_s1 }
   0x3   :  { %2587 = sst [smem:[#allocation5_spill]] %s2567_s2 }
   0x4   :  { %2588 = sst [smem:[#allocation6_spill]] %s2568_s3 }
   0x5   :  { %2589 = sst [smem:[#allocation7_spill]] %s2569_s4 }
   0x6   :  { %2590 = sst [smem:[#allocation8_spill]] %s2570_s5 }
   0x7   :  { %2591 = sst [smem:[#allocation9_spill]] %s2579_s14 }
   0x8   :  { %2592 = sst [smem:[#allocation10_spill]] %s2580_s15 }
   0x9 LB: > { %2593 = sst [smem:[#allocation2_spill]] %s2123_s21  ;;  %s2224_s22 = sadd.s32 4294967295, %s2123_s21   ;;  %s2123_s21 = sphi %s2218_s21, %s26_s21  }
   0xa   : > { %p1824_p0 = scmp.ge.s32.totalorder %s2123_s21, 1  ;;  %p553_p1 = scmp.lt.s32.totalorder %s2123_s21, 3 }
   0xc   : > { %p554_p2 = pnand %p1824_p0, %p553_p1 }
   0xd   : > { %p639_p3 = scmp.lt.s32.totalorder (!%p554_p2), %s2224_s22, 1  ;;  %s2596_s4 = sld [smem:[#allocation7_spill]] (!%p554_p2) }
   0xe   : > { %557 = sbr.rel (%p554_p2) target bundleno = 2647 (0xa57), region = 84  ;;  %s2597_s5 = sld [smem:[#allocation8_spill]] (!%p554_p2) }
   0xf   : > { %p1835_p4 = scmp.ne.s32.totalorder (!%p554_p2), %s2224_s22, 0 }
  0x13   : > { %s2230_s23 = scalar_select %p639_p3, %s2224_s22, 1 }
  0x14   : > { %s2598_s18 = sld [smem:[#allocation3_spill]] (!%p1835_p4) }
  0x15   : > { %s1999_s30 = sshll.u32 %s2230_s23, 6  ;;  %s1827_s0 = sshll.u32 %s2230_s23, 1 }
  0x16   : > { %s2245_s19 = scalar_lea.vmem %s2596_s4, %s1999_s30  ;;  %s2250_s25 = scalar_lea.vmem %s2597_s5, %s1827_s0 }
  0x17   : > { %s2000_s21 = sshll.u32 %s2230_s23, 5  ;;  %s667_s20 = scalar_lea.vmem %s2574_s9, %s2230_s23 }
  0x18   : > { %s2260_s28 = scalar_lea.vmem %s2571_s6, %s2000_s21  ;;  %s2273_s2 = scalar_lea.vmem %s2575_s10, %s1999_s30 }
  0x19   : > { %s2278_s26 = scalar_lea.vmem %s2576_s11, %s1827_s0  ;;  %s2002_s1 = sshll.u32 %s2230_s23, 7 }
  0x1a   : > { %s2284_s3 = scalar_lea.vmem %s2577_s12, %s2002_s1  ;;  %s684_s4 = scalar_lea.vmem %s2578_s13, %s2230_s23 }
  0x1b   : > { %689 = sbr.rel (%p1835_p4) target bundleno = 35 (0x23), region = 88 }
  0x20   : > { %v690_v0 = vld [vmem:[%s2598_s18] sm:$0xff]  ;;  %vm692_vm0 = vcmask 523264   ;;  %v691_v1 = vld [vmem:[%s2598_s18 + $0x8] sm:$0x3]  ;;  %vm694_vm1 = vcmask 517120  }
  0x21   : > { %693 = vst.msk [vmem:[%s2581_s16] sm:$0xff] %vm692_vm0, %v690_v0 }
  0x22   : > { %695 = vst.msk [vmem:[%s2581_s16 + $0x8] sm:$0x3] %vm694_vm1, %v691_v1 }
  0x23 PF: > { %vm702_vm2 = vcmask 523264   ;;  %vm706_vm3 = vcmask 517120   ;;  %v2125_v6 = vmov 64.0   ;;  %v1862_v23 = vld [vmem:[%s2245_s19 + $0x30] sm:$0xf]  ;;  %s2599_s0 = sld [smem:[#allocation5_spill]]  ;;  %s2605_s27 = scalar_lea.vmem %s2573_s8, %s2230_s23 }
  0x24   : > { %2061 = vrcp.f32 %v2125_v6  ;;  %v2010_v24 = vld [vmem:[%s2245_s19 + $0x34] sm:$0xf0]  ;;  %v2009_v25 = vld [vmem:[%s2245_s19 + $0x34] sm:$0xf]  ;;  %v1864_v27 = vld [vmem:[%s2245_s19 + $0x38] sm:$0xf0] }
  0x25   : > { %v1863_v26 = vor.u32 %v2010_v24, %v1862_v23  ;;  %v1867_v28 = vor.u32 %v2009_v25, %v1864_v27  ;;  %v1854_v29 = vld [vmem:[%s2245_s19 + $0x20] sm:$0xf]  ;;  %v2008_v30 = vld [vmem:[%s2245_s19 + $0x24] sm:$0xf0]  ;;  %v2007_v31 = vld [vmem:[%s2245_s19 + $0x24] sm:$0xf] }
  0x26   : > { %v1855_v32 = vor.u32 %v2008_v30, %v1854_v29  ;;  %v1856_v33 = vld [vmem:[%s2245_s19 + $0x28] sm:$0xf0]  ;;  %v1846_v35 = vld [vmem:[%s2245_s19 + $0x10] sm:$0xf]  ;;  %v2006_v36 = vld [vmem:[%s2245_s19 + $0x14] sm:$0xf0] }
  0x27   : > { %827 = vmatpush.bf16.msra.mxu0 %v1863_v26  ;;  %841 = vmatpush.bf16.msra.mxu1 %v1867_v28  ;;  %v1859_v34 = vor.u32 %v2007_v31, %v1856_v33  ;;  %v2005_v37 = vld [vmem:[%s2245_s19 + $0x14] sm:$0xf]  ;;  %v1847_v38 = vor.u32 %v2006_v36, %v1846_v35  ;;  %v1848_v39 = vld [vmem:[%s2245_s19 + $0x18] sm:$0xf0]  ;;  %v1838_v41 = vld [vmem:[%s2245_s19] sm:$0xf] }
  0x28   : > { %v2306_v2 = vld [vmem:[%s2581_s16] sm:$0xff]  ;;  %v1851_v40 = vor.u32 %v2005_v37, %v1848_v39  ;;  %v2004_v42 = vld [vmem:[%s2245_s19 + $0x4] sm:$0xf0]  ;;  %v1840_v46 = vld [vmem:[%s2245_s19 + $0x8] sm:$0xf0]  ;;  %s2601_s1 = sld [smem:[#allocation6_spill]] }
  0x29   : > { %v703_v3 = vsel %vm702_vm2, %v2306_v2, 0.0  ;;  %v2313_v4 = vld [vmem:[%s2581_s16 + $0x8] sm:$0x3]  ;;  %v2003_v43 = vld [vmem:[%s2245_s19 + $0x4] sm:$0xf]  ;;  %v1839_v45 = vor.u32 %v2004_v42, %v1838_v41  ;;  %s2600_s24 = scalar_lea.vmem %s2599_s0, %s2230_s23  ;;  %vm929_vm11 = vcmask 1044480  }
  0x2a   : > { %704 = vadd.xlane.f32.xlu0 %v703_v3  ;;  %v707_v5 = vsel %vm706_vm3, %v2313_v4, 0.0  ;;  %v2062_v7 = vpop.eup %2061  ;;  %v1843_v48 = vor.u32 %v2003_v43, %v1840_v46  ;;  %v2055_v3 = vld [vmem:[%s2600_s24] ss:$0 sm:$0xff]  ;;  %vm871_vm12 = vcmask 130048   ;;  %s2603_s29 = sld [smem:[#allocation4_spill]]  ;;  %vm896_vm13 = vcmask 80896  }
  0x2b   : > { %v711_v8 = vmul.f32 64.0, %v2062_v7  ;;  %vm715_vm4 = vweird.f32 %v2062_v7  ;;  %828 = vmatpush.bf16.msra.mxu0 %v1855_v32  ;;  %842 = vmatpush.bf16.msra.mxu1 %v1859_v34  ;;  %vm900_vm14 = vcmask 74752   ;;  %s2127_s30 = smov 16   ;;  %s2128_s0 = smov 48  }
  0x2c   : > { %s2129_s24 = smov 112   ;;  %s2130_s14 = smov 32  }
  0x2d   : > { %v712_v9 = vsub.f32 1.0, %v711_v8  ;;  %s2131_s15 = smov 96   ;;  %p1996_p5 = scmp.ne.s32.totalorder %s2224_s22, 1 }
  0x2e   : > { %s2602_s17 = scalar_lea.vmem %s2601_s1, %s2230_s23  ;;  %s2132_s1 = smov 80  }
  0x2f   : > { %v713_v10 = vmul.f32 %v2062_v7, %v712_v9  ;;  %829 = vmatpush.bf16.msra.mxu0 %v1847_v38  ;;  %843 = vmatpush.bf16.msra.mxu1 %v1851_v40  ;;  %v2056_v9 = vld [vmem:[%s2602_s17] ss:$0 sm:$0xff] }
  0x30   : > { %v2375_v40 = vld [vmem:[%s2603_s29] sm:$0xff] }
  0x31   : > { %v714_v11 = vadd.f32 %v2062_v7, %v713_v10 }
  0x32   : > { %708 = vadd.xlane.f32.xlu0 %v707_v5 }
  0x33   : > { %v2317_v12 = vsel %vm715_vm4, %v2062_v7, %v714_v11  ;;  %830 = vmatpush.bf16.msra.mxu0 %v1839_v45  ;;  %844 = vmatpush.bf16.msra.mxu1 %v1843_v48  ;;  %v2382_v45 = vld [vmem:[%s2603_s29 + $0x8] sm:$0x3] }
  0x9d   : > { %v705_v13 = vpop.xlane.xlu0 %704 }
  0x9e   : > { %v717_v14 = vmul.f32 %v2317_v12, %v705_v13 }
  0xa0   : > { %v2321_v15 = vsub.f32 %v2306_v2, %v717_v14 }
  0xa2   : > { %v721_v16 = vmul.f32 %v2321_v15, %v2321_v15 }
  0xa4   : > { %v723_v17 = vsel %vm702_vm2, %v721_v16, 0.0 }
  0xa5   : > { %724 = vadd.xlane.f32.xlu1 %v723_v17  ;;  %v709_v18 = vpop.xlane.xlu0 %708 }
  0xa6   : > { %v718_v19 = vmul.f32 %v2317_v12, %v709_v18 }
  0xa8   : > { %v2328_v20 = vsub.f32 %v2313_v4, %v718_v19 }
  0xaa   : > { %v722_v21 = vmul.f32 %v2328_v20, %v2328_v20 }
  0xac   : > { %v726_v22 = vsel %vm706_vm3, %v722_v21, 0.0 }
  0xad   : > { %727 = vadd.xlane.f32.xlu1 %v726_v22 }
 0x118   : > { %v725_v44 = vpop.xlane.xlu1 %724 }
 0x119   : > { %v729_v47 = vmul.f32 %v725_v44, %v2317_v12 }
 0x11b   : > { %v731_v49 = vadd.f32 1e-06, %v729_v47 }
 0x11d   : > { %2063 = vrsqrt.f32 %v731_v49  ;;  %vm739_vm6 = vweird.f32 %v731_v49 }
 0x120   : > { %v728_v50 = vpop.xlane.xlu1 %727 }
 0x121   : > { %v730_v51 = vmul.f32 %v728_v50, %v2317_v12 }
 0x123   : > { %v2064_v52 = vpop.eup %2063  ;;  %v732_v53 = vadd.f32 1e-06, %v730_v51 }
 0x124   : > { %v734_v54 = vmul.f32 %v2064_v52, %v731_v49  ;;  %vm740_vm5 = vweird.f32 %v2064_v52 }
 0x125   : > { %2065 = vrsqrt.f32 %v732_v53  ;;  %vm741_vm7 = vmor %vm739_vm6, %vm740_vm5  ;;  %vm749_vm9 = vweird.f32 %v732_v53 }
 0x126   : > { %v735_v55 = vmul.f32 %v2064_v52, %v734_v54 }
 0x128   : > { %v736_v56 = vmul.f32 0.5, %v735_v55 }
 0x12a   : > { %v737_v57 = vsub.f32 1.5, %v736_v56 }
 0x12b   : > { %v2066_v58 = vpop.eup %2065 }
 0x12c   : > { %v738_v59 = vmul.f32 %v2064_v52, %v737_v57  ;;  %v744_v60 = vmul.f32 %v2066_v58, %v732_v53  ;;  %vm750_vm8 = vweird.f32 %v2066_v58 }
 0x12d   : > { %vm751_vm10 = vmor %vm749_vm9, %vm750_vm8 }
 0x12e   : > { %v745_v61 = vmul.f32 %v2066_v58, %v744_v60  ;;  %v742_v62 = vsel %vm741_vm7, %v2064_v52, %v738_v59  ;;  %v2011_v59 = vld [vmem:[%s2260_s28] sm:$0xff] }
 0x12f   : > { %v753_v1 = vmul.f32 %v742_v62, %v2321_v15  ;;  %v773_v15 = vld [vmem:[%s2250_s25] sm:$0x3]  ;;  %s2126_s25 = smov 64  }
 0x130   : > { %v746_v63 = vmul.f32 0.5, %v745_v61  ;;  %v776_v18 = vperm.slane %v773_v15, 0  ;;  %v777_v19 = vperm.slane %v773_v15, 1 }
 0x131   : > { %v758_v8 = vmul.f32 %v2055_v3, %v753_v1 }
 0x132   : > { %v747_v0 = vsub.f32 1.5, %v746_v63 }
 0x133   : > { %v763_v11 = vadd.f32 %v2056_v9, %v758_v8 }
 0x134   : > { %v748_v5 = vmul.f32 %v2066_v58, %v747_v0 }
 0x136   : > { %v752_v6 = vsel %vm751_vm10, %v2066_v58, %v748_v5 }
 0x137   : > { %v754_v7 = vmul.f32 %v752_v6, %v2328_v20 }
 0x139   : > { %v759_v10 = vmul.f32 %v2055_v3, %v754_v7 }
 0x13b   : > { %v764_v13 = vadd.f32 %v2056_v9, %v759_v10 }
 0x13d   : > { %v774_v14 = vpack.c.bf16 %v764_v13, %v763_v11 }
 0x13f   : > { %1868 = vmatmul.msk.bf16.vlgmr.msra.gmra.mxu0 %vm702_vm2, %v774_v14  ;;  %1869 = vmatmul.msk.bf16.vlgmr.msra.gmra.mxu1 %vm702_vm2, %v774_v14 }
 0x1bc   : > { %v832_v16 = vpop.f32.mrf.mxu0  ;;  %v846_v17 = vpop.f32.mrf.mxu1 }
 0x1bd   : > { %v833_v20 = vadd.f32 %v832_v16, %v776_v18  ;;  %v847_v21 = vadd.f32 %v846_v17, %v777_v19 }
 0x1bf   : > { %v860_v24 = vpack.c.bf16 %v833_v20, %v833_v20  ;;  %v862_v25 = vpack.c.bf16 %v847_v21, %v847_v21 }
 0x1c1   : > { %v866_v30 = vunpack.c.l.b16 %v860_v24  ;;  %v923_v31 = vunpack.c.l.b16 %v862_v25 }
 0x1c4   : > { %v834_v22 = vpop.f32.mrf.mxu0  ;;  %v848_v23 = vpop.f32.mrf.mxu1 }
 0x1c5   : > { %v835_v26 = vadd.f32 %v834_v22, %v776_v18  ;;  %v849_v27 = vadd.f32 %v848_v23, %v777_v19 }
 0x1c7   : > { %v861_v28 = vpack.c.bf16 %v835_v26, %v835_v26  ;;  %v863_v29 = vpack.c.bf16 %v849_v27, %v849_v27 }
 0x1c9   : > { %v867_v32 = vunpack.c.l.b16 %v861_v28  ;;  %v924_v33 = vunpack.c.l.b16 %v863_v29 }
 0x1cb   : > { %v868_v34 = vpack.c.b16 %v867_v32, %v866_v30  ;;  %v2366_v35 = vpack.c.b16 %v924_v33, %v923_v31 }
 0x1cd   : > { %869 = vrot.lane.b32.xlu2 %v868_v34, %s2126_s25  ;;  %v931_v36 = vsel %vm929_vm11, %v2366_v35, 0  ;;  %s2604_s25 = scalar_lea.vmem %s2572_s7, %s2230_s23 }
 0x1ce   : > { %940 = vmatpush.bf16.msrb.mxu1 %v931_v36 }
 0x1d2   : > { %1061 = vmatpush.bf16.msra.mxu1 %v2011_v59 }
 0x227   : > { %v870_v37 = vpop.permute.xlu2 %869 }
 0x228   : > { %v876_v38 = vsel %vm871_vm12, %v870_v37, 0 }
 0x229   : > { %885 = vmatpush.bf16.xpose.msrb.mxu0 %v876_v38 }
 0x230   : > { %1870 = vmatmul.msk.bf16.vlgmr.msrb.gmra.mxu0 %vm871_vm12, %v868_v34 }
 0x2ad   : > { %v887_v39 = vpop.f32.mrf.mxu0 }
 0x2ae   : > { %v892_v41 = vmul.f32 0.25, %v887_v39 }
 0x2b0   : > { %v894_v42 = vadd.f32 %v892_v41, %v2375_v40 }
 0x2b2   : > { %v897_v43 = vsel %vm896_vm13, %v894_v42, -inf }
 0x2b3   : > { %898 = vmax.xlane.f32.xlu2 %v897_v43 }
 0x2b5   : > { %v889_v44 = vpop.f32.mrf.mxu0 }
 0x2b6   : > { %v893_v46 = vmul.f32 0.25, %v889_v44 }
 0x2b8   : > { %v895_v47 = vadd.f32 %v893_v46, %v2382_v45 }
 0x2ba   : > { %v901_v48 = vsel %vm900_vm14, %v895_v47, -inf }
 0x2bb   : > { %902 = vmax.xlane.f32.xlu0 %v901_v48 }
 0x2cb   : > { %1169 = vrot.lane.b32.xlu2 %v868_v34, %s2127_s30 }
 0x326   : > { %v899_v49 = vpop.xlane.xlu2 %898 }
 0x327   : > { %v904_v50 = vsub.f32 %v894_v42, %v899_v49 }
 0x329   : > { %v906_v51 = vmul.f32 1.442695, %v904_v50 }
 0x32b   : > { %2067 = vpow2.f32 %v906_v51 }
 0x32e   : > { %v903_v52 = vpop.xlane.xlu0 %902  ;;  %v1170_v3 = vpop.permute.xlu2 %1169 }
 0x32f   : > { %v905_v53 = vsub.f32 %v895_v47, %v903_v52  ;;  %v1175_v6 = vsel %vm871_vm12, %v1170_v3, 0 }
 0x331   : > { %v2068_v54 = vpop.eup %2067  ;;  %v908_v55 = vmul.f32 1.442695, %v905_v53 }
 0x332   : > { %v910_v56 = vsel %vm896_vm13, %v2068_v54, 0.0 }
 0x333   : > { %2069 = vpow2.f32 %v908_v55  ;;  %911 = vadd.xlane.f32.xlu1 %v910_v56 }
 0x339   : > { %v2070_v57 = vpop.eup %2069 }
 0x33a   : > { %v913_v58 = vsel %vm900_vm14, %v2070_v57, 0.0 }
 0x33b   : > { %914 = vadd.xlane.f32.xlu0 %v913_v58 }
 0x34c   : > { %950 = vrot.lane.b32.xlu1 %v868_v34, %s2128_s0 }
 0x34f   : > { %948 = vrot.lane.b32.xlu0 %v868_v34, %s2129_s24 }
 0x354   : > { %1070 = vrot.lane.b32.xlu1 %v868_v34, %s2130_s14 }
 0x357   : > { %1068 = vrot.lane.b32.xlu0 %v868_v34, %s2131_s15 }
 0x35c   : > { %1167 = vrot.lane.b32.xlu1 %v868_v34, %s2132_s1 }
 0x3a6   : > { %v912_v60 = vpop.xlane.xlu1 %911 }
 0x3a7   : > { %2071 = vrcp.f32 %v912_v60 }
 0x3ad   : > { %v2072_v62 = vpop.eup %2071 }
 0x3ae   : > { %v915_v61 = vpop.xlane.xlu0 %914  ;;  %v918_v0 = vmul.f32 %v2072_v62, %v2068_v54 }
 0x3af   : > { %2073 = vrcp.f32 %v915_v61 }
 0x3b5   : > { %v2074_v63 = vpop.eup %2073 }
 0x3b6   : > { %v919_v1 = vmul.f32 %v2074_v63, %v2070_v57 }
 0x3b8   : > { %v920_v5 = vpack.c.bf16 %v919_v1, %v918_v0 }
 0x3ba   : > { %1871 = vmatmul.msk.bf16.vlgmr.msrb.gmra.mxu1 %vm896_vm13, %v920_v5 }
 0x3bb   : > { %1184 = vmatpush.bf16.xpose.msrb.mxu1 %v1175_v6 }
 0x3be   : > { %v951_v7 = vpop.permute.xlu1 %950 }
 0x3bf   : > { %v956_v8 = vsel %vm871_vm12, %v951_v7, 0 }
 0x3c0   : > { %965 = vmatpush.bf16.xpose.msra.mxu3 %v956_v8 }
 0x3c1   : > { %v949_v9 = vpop.permute.xlu0 %948 }
 0x3c6   : > { %v1071_v10 = vpop.permute.xlu1 %1070 }
 0x3c7   : > { %1872 = vmatmul.msk.bf16.vlgmr.msra.gmra.mxu3 %vm871_vm12, %v949_v9  ;;  %v1076_v11 = vsel %vm871_vm12, %v1071_v10, 0 }
 0x3c8   : > { %1085 = vmatpush.bf16.xpose.msrb.mxu3 %v1076_v11 }
 0x3c9   : > { %v1069_v13 = vpop.permute.xlu0 %1068 }
 0x3ce   : > { %v1168_v21 = vpop.permute.xlu1 %1167 }
 0x3d7   : > { %1884 = vmatmul.msk.bf16.vlgmr.msrb.gmra.mxu3 %vm871_vm12, %v1069_v13 }
 0x437   : > { %v942_v14 = vpop.f32.mrf.mxu1 }
 0x43f   : > { %v944_v15 = vpop.f32.mrf.mxu1 }
 0x440   : > { %v947_v16 = vpack.c.bf16 %v944_v15, %v942_v14 }
 0x442   : > { %1883 = vmatmul.msk.bf16.vlgmr.msra.gmra.mxu1 %vm871_vm12, %v947_v16 }
 0x44a   : > { %v967_v17 = vpop.f32.mrf.mxu3 }
 0x44b   : > { %v972_v18 = vmul.f32 0.25, %v967_v17 }
 0x44d   : > { %v974_v19 = vadd.f32 %v972_v18, %v2375_v40 }
 0x44f   : > { %v976_v20 = vsel %vm896_vm13, %v974_v19, -inf }
 0x450   : > { %977 = vmax.xlane.f32.xlu0 %v976_v20 }
 0x452   : > { %v969_v22 = vpop.f32.mrf.mxu3  ;;  %1891 = vmatmul.msk.bf16.vlgmr.msrb.gmra.mxu1 %vm871_vm12, %v1168_v21 }
 0x453   : > { %v973_v23 = vmul.f32 0.25, %v969_v22 }
 0x455   : > { %v975_v24 = vadd.f32 %v973_v23, %v2382_v45 }
 0x457   : > { %v979_v25 = vsel %vm900_vm14, %v975_v24, -inf }
 0x458   : > { %980 = vmax.xlane.f32.xlu1 %v979_v25 }
 0x45a   : > { %v1087_v26 = vpop.f32.mrf.mxu3 }
 0x45b   : > { %v1092_v27 = vmul.f32 0.25, %v1087_v26 }
 0x45d   : > { %v1094_v28 = vadd.f32 %v1092_v27, %v2375_v40 }
 0x45f   : > { %v1096_v29 = vsel %vm896_vm13, %v1094_v28, -inf }
 0x460   : > { %1097 = vmax.xlane.f32.xlu1 %v1096_v29 }
 0x462   : > { %v1089_v53 = vpop.f32.mrf.mxu3 }
 0x463   : > { %v1093_v55 = vmul.f32 0.25, %v1089_v53 }
 0x465   : > { %v1095_v57 = vadd.f32 %v1093_v55, %v2382_v45 }
 0x467   : > { %v1099_v59 = vsel %vm900_vm14, %v1095_v57, -inf }
 0x4bf   : > { %v2406_v30 = vpop.f32.mrf.mxu1 }
 0x4c3   : > { %v978_v32 = vpop.xlane.xlu0 %977 }
 0x4c4   : > { %v982_v33 = vsub.f32 %v974_v19, %v978_v32 }
 0x4c6   : > { %v984_v38 = vmul.f32 1.442695, %v982_v33 }
 0x4c7   : > { %v2408_v31 = vpop.f32.mrf.mxu1 }
 0x4cb   : > { %v981_v34 = vpop.xlane.xlu1 %980 }
 0x4cc   : > { %v983_v36 = vsub.f32 %v975_v24, %v981_v34 }
 0x4ce   : > { %v986_v37 = vmul.f32 1.442695, %v983_v36 }
 0x4cf   : > { %v1186_v39 = vpop.f32.mrf.mxu1 }
 0x4d0   : > { %2075 = vpow2.f32 %v986_v37  ;;  %v1191_v41 = vmul.f32 0.25, %v1186_v39 }
 0x4d1   : > { %2077 = vpow2.f32 %v984_v38  ;;  %v2012_v38 = vld [vmem:[%s2260_s28 + $0x8] sm:$0xff] }
 0x4d2   : > { %v1193_v42 = vadd.f32 %v1191_v41, %v2375_v40  ;;  %1038 = vmatpush.bf16.msra.mxu0 %v2012_v38 }
 0x4d3   : > { %v1098_v43 = vpop.xlane.xlu1 %1097 }
 0x4d4   : > { %v1102_v44 = vsub.f32 %v1094_v28, %v1098_v43  ;;  %v1195_v46 = vsel %vm896_vm13, %v1193_v42, -inf }
 0x4d5   : > { %1196 = vmax.xlane.f32.xlu2 %v1195_v46 }
 0x4d6   : > { %v2076_v47 = vpop.eup %2075  ;;  %v1104_v48 = vmul.f32 1.442695, %v1102_v44 }
 0x4d7   : > { %v1188_v49 = vpop.f32.mrf.mxu1  ;;  %v991_v50 = vsel %vm900_vm14, %v2076_v47, 0.0  ;;  %v2078_v52 = vpop.eup %2077 }
 0x4d8   : > { %v1192_v51 = vmul.f32 0.25, %v1188_v49  ;;  %992 = vadd.xlane.f32.xlu1 %v991_v50  ;;  %2079 = vpow2.f32 %v1104_v48  ;;  %v988_v56 = vsel %vm896_vm13, %v2078_v52, 0.0  ;;  %v2014_v49 = vld [vmem:[%s2260_s28 + $0x18] sm:$0xff]  ;;  %v2013_v50 = vld [vmem:[%s2260_s28 + $0x10] sm:$0xff] }
 0x4d9   : > { %1158 = vmatpush.bf16.msrb.mxu0 %v2013_v50 }
 0x4da   : > { %v1194_v54 = vadd.f32 %v1192_v51, %v2382_v45 }
 0x4dc   : > { %v1198_v40 = vsel %vm900_vm14, %v1194_v54, -inf }
 0x4dd   : > { %1199 = vmax.xlane.f32.xlu0 %v1198_v40  ;;  %989 = vadd.xlane.f32.xlu2 %v988_v56 }
 0x4de   : > { %v2417_v58 = vpop.eup %2079 }
 0x4df   : > { %v1108_v60 = vsel %vm896_vm13, %v2417_v58, 0.0 }
 0x4e5   : > { %1100 = vmax.xlane.f32.xlu0 %v1099_v59  ;;  %1109 = vadd.xlane.f32.xlu2 %v1108_v60 }
 0x4f9   : > { %999 = vrot.lane.b32.xlu0 %v2366_v35, %s2129_s24  ;;  %s2606_s24 = sld [smem:[#allocation9_spill]] (!%p1996_p5) }
 0x501   : > { %1218 = vrot.lane.b32.xlu0 %v2366_v35, %s2132_s1  ;;  %s2607_s1 = sld [smem:[#allocation10_spill]] (!%p1996_p5) }
 0x548   : > { %v1197_v61 = vpop.xlane.xlu2 %1196 }
 0x549   : > { %v1201_v62 = vsub.f32 %v1193_v42, %v1197_v61 }
 0x54b   : > { %v1203_v63 = vmul.f32 1.442695, %v1201_v62  ;;  %v993_v13 = vpop.xlane.xlu1 %992  ;;  %v2057_v62 = vld [vmem:[%s2604_s25] ss:$0 sm:$0xff] }
 0x54d   : > { %2081 = vpow2.f32 %v1203_v63 }
 0x550   : > { %v1200_v45 = vpop.xlane.xlu0 %1199  ;;  %v990_v11 = vpop.xlane.xlu2 %989 }
 0x551   : > { %v1202_v0 = vsub.f32 %v1194_v54, %v1200_v45 }
 0x553   : > { %v2082_v1 = vpop.eup %2081  ;;  %v1205_v3 = vmul.f32 1.442695, %v1202_v0 }
 0x554   : > { %v1207_v5 = vsel %vm896_vm13, %v2082_v1, 0.0 }
 0x555   : > { %2083 = vpow2.f32 %v1205_v3  ;;  %1208 = vadd.xlane.f32.xlu2 %v1207_v5 }
 0x558   : > { %v1101_v6 = vpop.xlane.xlu0 %1100  ;;  %v1110_v25 = vpop.xlane.xlu2 %1109 }
 0x559   : > { %v1103_v7 = vsub.f32 %v1095_v57, %v1101_v6 }
 0x55b   : > { %v2084_v8 = vpop.eup %2083  ;;  %v1106_v9 = vmul.f32 1.442695, %v1103_v7 }
 0x55c   : > { %v1210_v10 = vsel %vm900_vm14, %v2084_v8, 0.0 }
 0x55d   : > { %2085 = vpow2.f32 %v1106_v9  ;;  %1211 = vadd.xlane.f32.xlu1 %v1210_v10 }
 0x55e   : > { %2087 = vrcp.f32 %v990_v11 }
 0x55f   : > { %2089 = vrcp.f32 %v993_v13 }
 0x563   : > { %v2086_v14 = vpop.eup %2085 }
 0x564   : > { %v1111_v15 = vsel %vm900_vm14, %v2086_v14, 0.0  ;;  %v2088_v16 = vpop.eup %2087 }
 0x565   : > { %1112 = vadd.xlane.f32.xlu1 %v1111_v15  ;;  %v2090_v17 = vpop.eup %2089  ;;  %v996_v18 = vmul.f32 %v2088_v16, %v2078_v52 }
 0x566   : > { %v997_v21 = vmul.f32 %v2090_v17, %v2076_v47 }
 0x568   : > { %v998_v22 = vpack.c.bf16 %v997_v21, %v996_v18  ;;  %v2021_v21 = vld [vmem:[%s2273_s2 + $0x34] sm:$0xf] }
 0x56b   : > { %v1000_v19 = vpop.permute.xlu0 %999 }
 0x56c   : > { %v1005_v20 = vsel %vm929_vm11, %v1000_v19, 0  ;;  %v1924_v19 = vld [vmem:[%s2273_s2 + $0x30] sm:$0xf] }
 0x56d   : > { %1119 = vrot.lane.b32.xlu2 %v2366_v35, %s2131_s15  ;;  %1014 = vmatpush.bf16.msra.mxu2 %v1005_v20  ;;  %v2022_v20 = vld [vmem:[%s2273_s2 + $0x34] sm:$0xf0] }
 0x570   : > { %1873 = vmatmul.msk.bf16.vlgmr.msra.gmra.mxu2 %vm896_vm13, %v998_v22  ;;  %v1925_v22 = vor.u32 %v2022_v20, %v1924_v19  ;;  %v2026_v19 = vld [vmem:[%s2284_s3 + $0x18] sm:$0xff] }
 0x571   : > { %v2034_v20 = vld [vmem:[%s2284_s3 + $0x58] sm:$0xff] }
 0x573   : > { %v1219_v23 = vpop.permute.xlu0 %1218 }
 0x574   : > { %v1224_v24 = vsel %vm929_vm11, %v1219_v23, 0  ;;  %v1926_v23 = vld [vmem:[%s2273_s2 + $0x38] sm:$0xf0] }
 0x575   : > { %1233 = vmatpush.bf16.msra.mxu3 %v1224_v24  ;;  %v1929_v24 = vor.u32 %v2021_v21, %v1926_v23  ;;  %v2025_v21 = vld [vmem:[%s2284_s3 + $0x10] sm:$0xff]  ;;  %v1337_v23 = vld [vmem:[%s2278_s26] sm:$0x3] }
 0x577   : > { %1405 = vmatpush.bf16.msra.mxu1 %v1929_v24  ;;  %v2024_v24 = vld [vmem:[%s2284_s3 + $0x8] sm:$0xff] }
 0x5c8   : > { %v1209_v26 = vpop.xlane.xlu2 %1208 }
 0x5c9   : > { %2091 = vrcp.f32 %v1209_v26  ;;  %v2020_v26 = vld [vmem:[%s2273_s2 + $0x24] sm:$0xf0] }
 0x5cf   : > { %v2092_v32 = vpop.eup %2091 }
 0x5d0   : > { %v1120_v27 = vpop.permute.xlu2 %1119  ;;  %v1212_v28 = vpop.xlane.xlu1 %1211  ;;  %v1215_v33 = vmul.f32 %v2092_v32, %v2082_v1 }
 0x5d1   : > { %2093 = vrcp.f32 %v1212_v28  ;;  %v1125_v29 = vsel %vm929_vm11, %v1120_v27, 0  ;;  %v2019_v27 = vld [vmem:[%s2273_s2 + $0x24] sm:$0xf] }
 0x5d2   : > { %1134 = vmatpush.bf16.msrb.mxu2 %v1125_v29  ;;  %2095 = vrcp.f32 %v1110_v25  ;;  %v1916_v25 = vld [vmem:[%s2273_s2 + $0x20] sm:$0xf]  ;;  %v1918_v29 = vld [vmem:[%s2273_s2 + $0x28] sm:$0xf0] }
 0x5d3   : > { %v1917_v28 = vor.u32 %v2020_v26, %v1916_v25  ;;  %v1921_v32 = vor.u32 %v2019_v27, %v1918_v29  ;;  %v2032_v25 = vld [vmem:[%s2284_s3 + $0x48] sm:$0xff]  ;;  %v1340_v26 = vperm.slane %v1337_v23, 0  ;;  %v1341_v27 = vperm.slane %v1337_v23, 1 }
 0x5d5   : > { %1406 = vmatpush.bf16.msra.mxu1 %v1921_v32  ;;  %v2023_v32 = vld [vmem:[%s2284_s3] sm:$0xff] }
 0x5d6   : > { %1257 = vmatpush.bf16.msra.mxu2 %v2014_v49 }
 0x5d7   : > { %v2094_v35 = vpop.eup %2093 }
 0x5d8   : > { %v1216_v34 = vmul.f32 %v2094_v35, %v2084_v8  ;;  %v1113_v36 = vpop.xlane.xlu1 %1112  ;;  %v2096_v39 = vpop.eup %2095  ;;  %v1908_v35 = vld [vmem:[%s2273_s2 + $0x10] sm:$0xf] }
 0x5d9   : > { %2097 = vrcp.f32 %v1113_v36  ;;  %v1116_v42 = vmul.f32 %v2096_v39, %v2417_v58 }
 0x5da   : > { %v1217_v37 = vpack.c.bf16 %v1216_v34, %v1215_v33  ;;  %v2018_v33 = vld [vmem:[%s2273_s2 + $0x14] sm:$0xf0]  ;;  %v2017_v34 = vld [vmem:[%s2273_s2 + $0x14] sm:$0xf] }
 0x5db   : > { %v1909_v36 = vor.u32 %v2018_v33, %v1908_v35  ;;  %v2031_v35 = vld [vmem:[%s2284_s3 + $0x40] sm:$0xff] }
 0x5dc   : > { %1892 = vmatmul.msk.bf16.vlgmr.msra.gmra.mxu3 %vm896_vm13, %v1217_v37  ;;  %v1910_v37 = vld [vmem:[%s2273_s2 + $0x18] sm:$0xf0] }
 0x5dd   : > { %v1913_v39 = vor.u32 %v2017_v34, %v1910_v37 }
 0x5df   : > { %v2098_v41 = vpop.eup %2097  ;;  %1407 = vmatpush.bf16.msra.mxu1 %v1913_v39 }
 0x5e0   : > { %v1117_v43 = vmul.f32 %v2098_v41, %v2086_v14 }
 0x5e2   : > { %v1118_v44 = vpack.c.bf16 %v1117_v43, %v1116_v42  ;;  %v1900_v42 = vld [vmem:[%s2273_s2] sm:$0xf]  ;;  %v2016_v43 = vld [vmem:[%s2273_s2 + $0x4] sm:$0xf0] }
 0x5e4   : > { %1885 = vmatmul.msk.bf16.vlgmr.msrb.gmra.mxu2 %vm896_vm13, %v1118_v44  ;;  %v2015_v44 = vld [vmem:[%s2273_s2 + $0x4] sm:$0xf] }
 0x5f3   : > { %v1016_v46 = vpop.f32.mrf.mxu2 }
 0x5fb   : > { %v1018_v47 = vpop.f32.mrf.mxu2 }
 0x5fc   : > { %v1021_v48 = vpack.c.bf16 %v1018_v47, %v1016_v46  ;;  %v1901_v47 = vor.u32 %v2016_v43, %v1900_v42 }
 0x5fe   : > { %1878 = vmatmul.msk.bf16.vlgmr.msra.gmra.mxu0 %vm871_vm12, %v1021_v48  ;;  %v1902_v48 = vld [vmem:[%s2273_s2 + $0x8] sm:$0xf0] }
 0x5ff   : > { %1391 = vmatpush.bf16.msra.mxu0 %v1925_v22  ;;  %v1905_v49 = vor.u32 %v2015_v44, %v1902_v48  ;;  %v2033_v22 = vld [vmem:[%s2284_s3 + $0x50] sm:$0xff] }
 0x601   : > { %1408 = vmatpush.bf16.msra.mxu1 %v1905_v49 }
 0x603   : > { %1392 = vmatpush.bf16.msra.mxu0 %v1917_v28 }
 0x607   : > { %1393 = vmatpush.bf16.msra.mxu0 %v1909_v36 }
 0x60b   : > { %1394 = vmatpush.bf16.msra.mxu0 %v1901_v47 }
 0x65f   : > { %v1235_v51 = vpop.f32.mrf.mxu3 }
 0x667   : > { %v1136_v52 = vpop.f32.mrf.mxu2  ;;  %v1237_v53 = vpop.f32.mrf.mxu3 }
 0x668   : > { %v1240_v54 = vpack.c.bf16 %v1237_v53, %v1235_v51 }
 0x66a   : > { %1897 = vmatmul.msk.bf16.vlgmr.msra.gmra.mxu2 %vm871_vm12, %v1240_v54 }
 0x66f   : > { %v1138_v55 = vpop.f32.mrf.mxu2 }
 0x670   : > { %v1141_v40 = vpack.c.bf16 %v1138_v55, %v1136_v52 }
 0x672   : > { %1890 = vmatmul.msk.bf16.vlgmr.msrb.gmra.mxu0 %vm871_vm12, %v1141_v40 }
 0x67b   : > { %v1040_v56 = vpop.f32.mrf.mxu0 }
 0x67c   : > { %v1064_v58 = vadd.f32 %v2406_v30, %v1040_v56 }
 0x683   : > { %v1042_v57 = vpop.f32.mrf.mxu0 }
 0x684   : > { %v1066_v0 = vadd.f32 %v2408_v31, %v1042_v57 }
 0x6ed   : > { %v1259_v59 = vpop.f32.mrf.mxu2 }
 0x6ef   : > { %v1160_v60 = vpop.f32.mrf.mxu0 }
 0x6f0   : > { %v1165_v61 = vadd.f32 %v1160_v60, %v1064_v58 }
 0x6f2   : > { %v1264_v63 = vadd.f32 %v1259_v59, %v1165_v61 }
 0x6f4   : > { %v1269_v45 = vadd.f32 %v2057_v62, %v1264_v63 }
 0x6f5   : > { %v1261_v6 = vpop.f32.mrf.mxu2 }
 0x6f6   : > { %v2452_v1 = vadd.f32 %v1269_v45, %v2306_v2  ;;  %v2058_v45 = vld [vmem:[%s2605_s27] ss:$0 sm:$0xff] }
 0x6f7   : > { %v1162_v3 = vpop.f32.mrf.mxu0 }
 0x6f8   : > { %v1166_v5 = vadd.f32 %v1162_v3, %v1066_v0  ;;  %v1275_v30 = vsel %vm702_vm2, %v2452_v1, 0.0 }
 0x6f9   : > { %1276 = vadd.xlane.f32.xlu1 %v1275_v30  ;;  %v2059_v30 = vld [vmem:[%s667_s20] ss:$0 sm:$0xff] }
 0x6fa   : > { %v1265_v7 = vadd.f32 %v1261_v6, %v1166_v5 }
 0x6fc   : > { %v1270_v8 = vadd.f32 %v2057_v62, %v1265_v7 }
 0x6fe   : > { %v2457_v9 = vadd.f32 %v1270_v8, %v2313_v4 }
 0x700   : > { %v1278_v31 = vsel %vm706_vm3, %v2457_v9, 0.0 }
 0x701   : > { %1279 = vadd.xlane.f32.xlu0 %v1278_v31 }
 0x76c   : > { %v1277_v2 = vpop.xlane.xlu1 %1276 }
 0x76d   : > { %v1281_v10 = vmul.f32 %v1277_v2, %v2317_v12 }
 0x76f   : > { %v2463_v11 = vsub.f32 %v2452_v1, %v1281_v10 }
 0x771   : > { %v1285_v13 = vmul.f32 %v2463_v11, %v2463_v11 }
 0x773   : > { %v1287_v14 = vsel %vm702_vm2, %v1285_v13, 0.0  ;;  %v2038_v13 = vld [vmem:[%s2284_s3 + $0x78] sm:$0xff] }
 0x774   : > { %1288 = vadd.xlane.f32.xlu1 %v1287_v14  ;;  %v1280_v4 = vpop.xlane.xlu0 %1279  ;;  %1599 = vmatpush.bf16.msrb.mxu2 %v2038_v13  ;;  %v2029_v14 = vld [vmem:[%s2284_s3 + $0x30] sm:$0xff] }
 0x775   : > { %v1282_v15 = vmul.f32 %v1280_v4, %v2317_v12  ;;  %v2037_v4 = vld [vmem:[%s2284_s3 + $0x70] sm:$0xff] }
 0x777   : > { %v2470_v16 = vsub.f32 %v2457_v9, %v1282_v15  ;;  %v2028_v15 = vld [vmem:[%s2284_s3 + $0x28] sm:$0xff] }
 0x778   : > { %1600 = vmatpush.bf16.msrb.mxu2 %v2037_v4 }
 0x779   : > { %v1286_v17 = vmul.f32 %v2470_v16, %v2470_v16 }
 0x77b   : > { %v1290_v18 = vsel %vm706_vm3, %v1286_v17, 0.0  ;;  %v2027_v17 = vld [vmem:[%s2284_s3 + $0x20] sm:$0xff] }
 0x77c   : > { %1291 = vadd.xlane.f32.xlu1 %v1290_v18  ;;  %v2035_v18 = vld [vmem:[%s2284_s3 + $0x60] sm:$0xff] }
 0x7e7   : > { %v1289_v38 = vpop.xlane.xlu1 %1288 }
 0x7e8   : > { %v1293_v41 = vmul.f32 %v1289_v38, %v2317_v12 }
 0x7ea   : > { %v1295_v46 = vadd.f32 1e-06, %v1293_v41 }
 0x7ec   : > { %2099 = vrsqrt.f32 %v1295_v46  ;;  %vm1303_vm0 = vweird.f32 %v1295_v46 }
 0x7ef   : > { %v1292_v50 = vpop.xlane.xlu1 %1291 }
 0x7f0   : > { %v1294_v51 = vmul.f32 %v1292_v50, %v2317_v12 }
 0x7f2   : > { %v2100_v52 = vpop.eup %2099  ;;  %v1296_v53 = vadd.f32 1e-06, %v1294_v51 }
 0x7f3   : > { %v1298_v54 = vmul.f32 %v2100_v52, %v1295_v46  ;;  %vm1304_vm15 = vweird.f32 %v2100_v52 }
 0x7f4   : > { %2101 = vrsqrt.f32 %v1296_v53  ;;  %vm1305_vm1 = vmor %vm1303_vm0, %vm1304_vm15  ;;  %vm1313_vm5 = vweird.f32 %v1296_v53 }
 0x7f5   : > { %v1299_v55 = vmul.f32 %v2100_v52, %v1298_v54 }
 0x7f7   : > { %v1300_v40 = vmul.f32 0.5, %v1299_v55 }
 0x7f9   : > { %v1301_v56 = vsub.f32 1.5, %v1300_v40 }
 0x7fa   : > { %v2102_v57 = vpop.eup %2101 }
 0x7fb   : > { %v1302_v58 = vmul.f32 %v2100_v52, %v1301_v56  ;;  %v1308_v59 = vmul.f32 %v2102_v57, %v1296_v53  ;;  %vm1314_vm4 = vweird.f32 %v2102_v57 }
 0x7fc   : > { %vm1315_vm6 = vmor %vm1313_vm5, %vm1314_vm4 }
 0x7fd   : > { %v1309_v60 = vmul.f32 %v2102_v57, %v1308_v59  ;;  %v1306_v61 = vsel %vm1305_vm1, %v2100_v52, %v1302_v58 }
 0x7fe   : > { %v1317_v0 = vmul.f32 %v1306_v61, %v2463_v11  ;;  %v2030_v11 = vld [vmem:[%s2284_s3 + $0x38] sm:$0xff] }
 0x7ff   : > { %v1310_v62 = vmul.f32 0.5, %v1309_v60  ;;  %1585 = vmatpush.bf16.msrb.mxu3 %v2030_v11 }
 0x800   : > { %v1322_v6 = vmul.f32 %v2058_v45, %v1317_v0 }
 0x801   : > { %v1311_v63 = vsub.f32 1.5, %v1310_v62 }
 0x802   : > { %v1327_v31 = vadd.f32 %v2059_v30, %v1322_v6 }
 0x803   : > { %v1312_v3 = vmul.f32 %v2102_v57, %v1311_v63  ;;  %1586 = vmatpush.bf16.msrb.mxu3 %v2029_v14 }
 0x805   : > { %v1316_v5 = vsel %vm1315_vm6, %v2102_v57, %v1312_v3 }
 0x806   : > { %v1318_v7 = vmul.f32 %v1316_v5, %v2470_v16  ;;  %v2036_v16 = vld [vmem:[%s2284_s3 + $0x68] sm:$0xff] }
 0x807   : > { %1587 = vmatpush.bf16.msrb.mxu3 %v2028_v15  ;;  %1601 = vmatpush.bf16.msrb.mxu2 %v2036_v16  ;;  %v2060_v15 = vld [vmem:[%s684_s4] ss:$0 sm:$0xff] }
 0x808   : > { %v1323_v8 = vmul.f32 %v2058_v45, %v1318_v7 }
 0x80a   : > { %v1328_v2 = vadd.f32 %v2059_v30, %v1323_v8 }
 0x80b   : > { %1588 = vmatpush.bf16.msrb.mxu3 %v2027_v17  ;;  %1602 = vmatpush.bf16.msrb.mxu2 %v2035_v18 }
 0x80c   : > { %v1338_v10 = vpack.c.bf16 %v1328_v2, %v1327_v31 }
 0x80e   : > { %1930 = vmatmul.msk.bf16.vlgmr.msra.gmra.mxu0 %vm702_vm2, %v1338_v10  ;;  %1931 = vmatmul.msk.bf16.vlgmr.msra.gmra.mxu1 %vm702_vm2, %v1338_v10 }
 0x80f   : > { %1589 = vmatpush.bf16.msrb.mxu3 %v2026_v19  ;;  %1603 = vmatpush.bf16.msrb.mxu2 %v2034_v20 }
 0x813   : > { %1590 = vmatpush.bf16.msrb.mxu3 %v2025_v21  ;;  %1604 = vmatpush.bf16.msrb.mxu2 %v2033_v22 }
 0x817   : > { %1591 = vmatpush.bf16.msrb.mxu3 %v2024_v24  ;;  %1605 = vmatpush.bf16.msrb.mxu2 %v2032_v25 }
 0x81b   : > { %1592 = vmatpush.bf16.msrb.mxu3 %v2023_v32  ;;  %1606 = vmatpush.bf16.msrb.mxu2 %v2031_v35 }
 0x88b   : > { %v1396_v28 = vpop.f32.mrf.mxu0  ;;  %v1410_v29 = vpop.f32.mrf.mxu1 }
 0x88c   : > { %v1397_v33 = vadd.f32 %v1396_v28, %v1340_v26  ;;  %v1411_v34 = vadd.f32 %v1410_v29, %v1341_v27 }
 0x88e   : > { %v1415_v36 = vmul.f32 %v1397_v33, %v1397_v33  ;;  %v1416_v37 = vmul.f32 %v1411_v34, %v1411_v34 }
 0x890   : > { %v1419_v38 = vmul.f32 %v1415_v36, %v1397_v33  ;;  %v1420_v39 = vmul.f32 %v1416_v37, %v1411_v34 }
 0x892   : > { %v1423_v41 = vmul.f32 0.044715, %v1419_v38  ;;  %v1424_v42 = vmul.f32 0.044715, %v1420_v39 }
 0x893   : > { %v1398_v43 = vpop.f32.mrf.mxu0  ;;  %v1412_v44 = vpop.f32.mrf.mxu1 }
 0x894   : > { %v1427_v46 = vadd.f32 %v1423_v41, %v1397_v33  ;;  %v1428_v47 = vadd.f32 %v1424_v42, %v1411_v34  ;;  %v1399_v48 = vadd.f32 %v1398_v43, %v1340_v26  ;;  %v1413_v49 = vadd.f32 %v1412_v44, %v1341_v27 }
 0x896   : > { %v1431_v50 = vmul.f32 0.7978846, %v1427_v46  ;;  %v1417_v51 = vmul.f32 %v1399_v48, %v1399_v48  ;;  %v1418_v52 = vmul.f32 %v1413_v49, %v1413_v49  ;;  %v1432_v53 = vmul.f32 0.7978846, %v1428_v47 }
 0x898   : > { %v1421_v54 = vmul.f32 %v1417_v51, %v1399_v48  ;;  %v1422_v55 = vmul.f32 %v1418_v52, %v1413_v49  ;;  %2103 = vtanh.f32 %v1431_v50 }
 0x899   : > { %2105 = vtanh.f32 %v1432_v53 }
 0x89a   : > { %v1425_v40 = vmul.f32 0.044715, %v1421_v54  ;;  %v1426_v56 = vmul.f32 0.044715, %v1422_v55 }
 0x89c   : > { %v1429_v57 = vadd.f32 %v1425_v40, %v1399_v48  ;;  %v1430_v58 = vadd.f32 %v1426_v56, %v1413_v49 }
 0x89e   : > { %v1433_v59 = vmul.f32 0.7978846, %v1429_v57  ;;  %v1434_v60 = vmul.f32 0.7978846, %v1430_v58  ;;  %v2104_v61 = vpop.eup %2103 }
 0x89f   : > { %v2106_v62 = vpop.eup %2105  ;;  %v1439_v63 = vadd.f32 1.0, %v2104_v61 }
 0x8a0   : > { %2107 = vtanh.f32 %v1433_v59  ;;  %v1440_v45 = vadd.f32 1.0, %v2106_v62 }
 0x8a1   : > { %2109 = vtanh.f32 %v1434_v60  ;;  %v1443_v5 = vmul.f32 0.5, %v1439_v63 }
 0x8a2   : > { %v1444_v6 = vmul.f32 0.5, %v1440_v45 }
 0x8a3   : > { %v1447_v2 = vmul.f32 %v1443_v5, %v1397_v33 }
 0x8a4   : > { %v1448_v11 = vmul.f32 %v1444_v6, %v1411_v34 }
 0x8a6   : > { %v2108_v0 = vpop.eup %2107 }
 0x8a7   : > { %v2110_v3 = vpop.eup %2109  ;;  %v1441_v30 = vadd.f32 1.0, %v2108_v0 }
 0x8a8   : > { %v1442_v7 = vadd.f32 1.0, %v2110_v3 }
 0x8a9   : > { %v1445_v8 = vmul.f32 0.5, %v1441_v30 }
 0x8aa   : > { %v1446_v31 = vmul.f32 0.5, %v1442_v7 }
 0x8ab   : > { %v1449_v10 = vmul.f32 %v1445_v8, %v1399_v48 }
 0x8ac   : > { %v1450_v13 = vmul.f32 %v1446_v31, %v1413_v49 }
 0x8ad   : > { %v1484_v14 = vpack.c.bf16 %v1449_v10, %v1447_v2 }
 0x8ae   : > { %v1485_v4 = vpack.c.bf16 %v1450_v13, %v1448_v11 }
 0x8af   : > { %1593 = vmatmul.bf16.vlgmr.msrb.gmra.mxu3 %v1484_v14 }
 0x8b0   : > { %1607 = vmatmul.bf16.vlgmr.msrb.gmra.mxu2 %v1485_v4 }
 0x932   : > { %v1594_v16 = vpop.f32.mrf.mxu3 }
 0x933   : > { %v1595_v17 = vadd.f32 %v2060_v15, %v1594_v16  ;;  %v1608_v18 = vpop.f32.mrf.mxu2 }
 0x935   : > { %v1609_v19 = vadd.f32 %v1608_v18, %v1595_v17 }
 0x937   : > { %v1613_v20 = vadd.f32 %v1609_v19, %v2452_v1 }
 0x939   : > { %1615 = vst.msk [vmem:[%s2581_s16] sm:$0xff] %vm702_vm2, %v1613_v20 }
 0x93a   : > { %v1596_v21 = vpop.f32.mrf.mxu3 }
 0x93b   : > { %v1597_v22 = vadd.f32 %v2060_v15, %v1596_v21  ;;  %v1610_v23 = vpop.f32.mrf.mxu2 }
 0x93d   : > { %v1611_v24 = vadd.f32 %v1610_v23, %v1597_v22  ;;  %1620 = sbr.rel (%p1996_p5) target bundleno = 2647 (0xa57), region = 92 }
 0x93f   : > { %v1614_v25 = vadd.f32 %v1611_v24, %v2457_v9 }
 0x941   : > { %1616 = vst.msk [vmem:[%s2581_s16 + $0x8] sm:$0x3] %vm706_vm3, %v1614_v25 }
 0x942   : > { %v1623_v1 = vsel %vm702_vm2, %v1613_v20, 0.0  ;;  %v1626_v26 = vsel %vm706_vm3, %v1614_v25, 0.0  ;;  %v2111_v54 = vld [vmem:[%s2606_s24] ss:$0 sm:$0xff] }
 0x943   : > { %1624 = vadd.xlane.f32.xlu0 %v1623_v1  ;;  %v2112_v56 = vld [vmem:[%s2607_s1] ss:$0 sm:$0xff] }
 0x94b   : > { %1627 = vadd.xlane.f32.xlu0 %v1626_v26 }
 0x9b6   : > { %v1625_v27 = vpop.xlane.xlu0 %1624 }
 0x9b7   : > { %v1629_v28 = vmul.f32 %v1625_v27, %v2317_v12 }
 0x9b9   : > { %v1631_v29 = vsub.f32 %v1613_v20, %v1629_v28 }
 0x9bb   : > { %v1633_v32 = vmul.f32 %v1631_v29, %v1631_v29 }
 0x9bd   : > { %v1635_v9 = vsel %vm702_vm2, %v1633_v32, 0.0 }
 0x9be   : > { %1636 = vadd.xlane.f32.xlu1 %v1635_v9  ;;  %v1628_v35 = vpop.xlane.xlu0 %1627 }
 0x9bf   : > { %v1630_v33 = vmul.f32 %v1628_v35, %v2317_v12 }
 0x9c1   : > { %v1632_v34 = vsub.f32 %v1614_v25, %v1630_v33 }
 0x9c3   : > { %v1634_v36 = vmul.f32 %v1632_v34, %v1632_v34 }
 0x9c5   : > { %v1638_v37 = vsel %vm706_vm3, %v1634_v36, 0.0 }
 0x9c6   : > { %1639 = vadd.xlane.f32.xlu1 %v1638_v37 }
 0xa31   : > { %v1637_v38 = vpop.xlane.xlu1 %1636 }
 0xa32   : > { %v1641_v39 = vmul.f32 %v1637_v38, %v2317_v12 }
 0xa34   : > { %v1643_v41 = vadd.f32 1e-06, %v1641_v39 }
 0xa36   : > { %2113 = vrsqrt.f32 %v1643_v41  ;;  %vm1651_vm8 = vweird.f32 %v1643_v41 }
 0xa39   : > { %v1640_v42 = vpop.xlane.xlu1 %1639 }
 0xa3a   : > { %v1642_v43 = vmul.f32 %v1640_v42, %v2317_v12 }
 0xa3c   : > { %v2114_v44 = vpop.eup %2113  ;;  %v1644_v46 = vadd.f32 1e-06, %v1642_v43 }
 0xa3d   : > { %v1646_v47 = vmul.f32 %v2114_v44, %v1643_v41  ;;  %vm1652_vm7 = vweird.f32 %v2114_v44 }
 0xa3e   : > { %2115 = vrsqrt.f32 %v1644_v46  ;;  %vm1653_vm9 = vmor %vm1651_vm8, %vm1652_vm7  ;;  %vm1661_vm11 = vweird.f32 %v1644_v46 }
 0xa3f   : > { %v1647_v48 = vmul.f32 %v2114_v44, %v1646_v47 }
 0xa41   : > { %v1648_v49 = vmul.f32 0.5, %v1647_v48 }
 0xa43   : > { %v1649_v50 = vsub.f32 1.5, %v1648_v49 }
 0xa44   : > { %v2116_v51 = vpop.eup %2115 }
 0xa45   : > { %v1650_v52 = vmul.f32 %v2114_v44, %v1649_v50  ;;  %v1656_v53 = vmul.f32 %v2116_v51, %v1644_v46  ;;  %vm1662_vm10 = vweird.f32 %v2116_v51 }
 0xa46   : > { %vm1663_vm12 = vmor %vm1661_vm11, %vm1662_vm10 }
 0xa47   : > { %v1654_v55 = vsel %vm1653_vm9, %v2114_v44, %v1650_v52  ;;  %v1657_v40 = vmul.f32 %v2116_v51, %v1656_v53 }
 0xa48   : > { %v1665_v12 = vmul.f32 %v1654_v55, %v1631_v29 }
 0xa49   : > { %v1658_v57 = vmul.f32 0.5, %v1657_v40 }
 0xa4a   : > { %v1670_v58 = vmul.f32 %v2111_v54, %v1665_v12 }
 0xa4b   : > { %v1659_v59 = vsub.f32 1.5, %v1658_v57 }
 0xa4c   : > { %v1675_v60 = vadd.f32 %v2112_v56, %v1670_v58 }
 0xa4d   : > { %v1660_v61 = vmul.f32 %v2116_v51, %v1659_v59 }
 0xa4e   : > { %1677 = vst.msk [vmem:[%s2581_s16] sm:$0xff] %vm702_vm2, %v1675_v60 }
 0xa4f   : > { %v1664_v62 = vsel %vm1663_vm12, %v2116_v51, %v1660_v61 }
 0xa50   : > { %v1666_v63 = vmul.f32 %v1664_v62, %v1632_v34 }
 0xa52   : > { %v1671_v45 = vmul.f32 %v2111_v54, %v1666_v63 }
 0xa54   : > { %v1676_v0 = vadd.f32 %v2112_v56, %v1671_v45 }
 0xa56   : > { %1678 = vst.msk [vmem:[%s2581_s16 + $0x8] sm:$0x3] %vm706_vm3, %v1676_v0 }
 0xa57 PF: > { %s2608_s21 = sld [smem:[#allocation2_spill]] }
 0xa5d   : > { %s26_s21 = sadd.s32 1, %s2608_s21  }
 0xa5e   : > { %p23_p6 = scmp.ge.s32.totalorder %s26_s21, 4  }
 0xa60   :  { %25 = sbr.rel (!%p23_p6) target bundleno = 9 (0x9), region = 151 }

// kernel: vl_transformer_itm_forward.3
= control target key start
LH: loop header
LB: loop body
LE: loop exit
PB: predicated region body
PF: predicated region fallthrough
CT: control target
= control target key end

     0   :  { %s4023_s0 = inlined_call_operand.vmem [shape: f32[16,64], index: 0, kind: input, shape index: {}]   ;;  %s4024_s1 = inlined_call_operand.vmem [shape: f32[10,64], index: 1, kind: input, shape index: {}]   ;;  %s4025_s2 = inlined_call_operand.vmem [shape: f32[16,16], index: 2, kind: input, shape index: {}]   ;;  %s4026_s3 = inlined_call_operand.vmem [shape: f32[16,10], index: 3, kind: input, shape index: {}]   ;;  %s4027_s4 = inlined_call_operand.vmem [shape: f32[1,64], index: 4, kind: input, shape index: {}]   ;;  %s4028_s5 = inlined_call_operand.vmem [shape: f32[1,64], index: 5, kind: input, shape index: {}]   ;;  %s4029_s6 = inlined_call_operand.vmem [shape: bf16[2,64,192], index: 6, kind: input, shape index: {}]   ;;  %s4030_s7 = inlined_call_operand.vmem [shape: f32[2,1,192], index: 7, kind: input, shape index: {}]   ;;  %s4031_s8 = inlined_call_operand.vmem [shape: bf16[2,64,64], index: 8, kind: input, shape index: {}]   ;;  %s4032_s9 = inlined_call_operand.vmem [shape: f32[2,1,64], index: 9, kind: input, shape index: {}]   ;;  %s4033_s10 = inlined_call_operand.vmem [shape: f32[2,1,64], index: 10, kind: input, shape index: {}]   ;;  %s4034_s11 = inlined_call_operand.vmem [shape: f32[2,1,64], index: 11, kind: input, shape index: {}]   ;;  %s4035_s12 = inlined_call_operand.vmem [shape: bf16[2,64,64], index: 12, kind: input, shape index: {}]   ;;  %s4036_s13 = inlined_call_operand.vmem [shape: f32[2,1,64], index: 13, kind: input, shape index: {}]   ;;  %s4037_s14 = inlined_call_operand.vmem [shape: bf16[2,64,128], index: 14, kind: input, shape index: {}]   ;;  %s4038_s15 = inlined_call_operand.vmem [shape: f32[2,1,128], index: 15, kind: input, shape index: {}]   ;;  %s4039_s16 = inlined_call_operand.vmem [shape: bf16[2,64,64], index: 16, kind: input, shape index: {}]   ;;  %s4040_s17 = inlined_call_operand.vmem [shape: f32[2,1,64], index: 17, kind: input, shape index: {}]   ;;  %s4041_s18 = inlined_call_operand.vmem [shape: f32[2,1,64], index: 18, kind: input, shape index: {}]   ;;  %s4042_s19 = inlined_call_operand.vmem [shape: f32[2,1,64], index: 19, kind: input, shape index: {}]   ;;  %s4043_s20 = inlined_call_operand.vmem [shape: bf16[2,64,256], index: 20, kind: input, shape index: {}]   ;;  %s4044_s21 = inlined_call_operand.vmem [shape: f32[2,1,256], index: 21, kind: input, shape index: {}]   ;;  %s4045_s22 = inlined_call_operand.vmem [shape: bf16[2,256,64], index: 22, kind: input, shape index: {}]   ;;  %s4046_s23 = inlined_call_operand.vmem [shape: f32[2,1,64], index: 23, kind: input, shape index: {}]   ;;  %s4047_s24 = inlined_call_operand.vmem [shape: f32[2,1,64], index: 24, kind: input, shape index: {}]   ;;  %s4048_s25 = inlined_call_operand.vmem [shape: f32[2,1,64], index: 25, kind: input, shape index: {}]   ;;  %s4049_s26 = inlined_call_operand.hbm [shape: f32[16,64], index: 26, kind: output, shape index: {}]  }
   0x1   :  { %4057 = sst [smem:[#allocation9_spill]] %s4023_s0 }
   0x2   :  { %4058 = sst [smem:[#allocation10_spill]] %s4024_s1 }
   0x3   :  { %4059 = sst [smem:[#allocation11_spill]] %s4025_s2 }
   0x4   :  { %4060 = sst [smem:[#allocation12_spill]] %s4026_s3 }
   0x5   :  { %4061 = sst [smem:[#allocation13_spill]] %s4027_s4 }
   0x6   :  { %4062 = sst [smem:[#allocation14_spill]] %s4028_s5 }
   0x7   :  { %4063 = sst [smem:[#allocation15_spill]] %s4029_s6 }
   0x8   :  { %4064 = sst [smem:[#allocation16_spill]] %s4030_s7 }
   0x9   :  { %4065 = sst [smem:[#allocation17_spill]] %s4031_s8 }
   0xa   :  { %4066 = sst [smem:[#allocation18_spill]] %s4032_s9 }
   0xb   :  { %4067 = sst [smem:[#allocation19_spill]] %s4033_s10 }
   0xc   :  { %4068 = sst [smem:[#allocation20_spill]] %s4035_s12 }
   0xd   :  { %4069 = sst [smem:[#allocation21_spill]] %s4037_s14 }
   0xe   :  { %4070 = sst [smem:[#allocation22_spill]] %s4039_s16 }
   0xf   :  { %4071 = sst [smem:[#allocation23_spill]] %s4041_s18 }
  0x10   :  { %4072 = sst [smem:[#allocation24_spill]] %s4042_s19 }
  0x11   :  { %4073 = sst [smem:[#allocation25_spill]] %s4043_s20 }
  0x12   :  { %4074 = sst [smem:[#allocation26_spill]] %s4044_s21 }
  0x13   :  { %4075 = sst [smem:[#allocation27_spill]] %s4045_s22 }
  0x14   :  { %4076 = sst [smem:[#allocation28_spill]] %s4046_s23 }
  0x15   :  { %4077 = sst [smem:[#allocation29_spill]] %s4047_s24 }
  0x16   :  { %4078 = sst [smem:[#allocation30_spill]] %s4048_s25 }
  0x17   :  { %4079 = sst [smem:[#allocation31_spill]] %s4049_s26 }
  0x18   :  { %31 = vsyncpa [#allocation3], 0  ;;  %s3521_s27 = smov 0  }
  0x19 LB: > { %4080 = sst [smem:[#allocation5_spill]] %s3372_s27  ;;  %s3527_s3 = sadd.s32 4294967295, %s3372_s27   ;;  %s3372_s27 = sphi %s3521_s27, %s37_s27  }
  0x1a   : > { %4081 = sst [smem:[#allocation6_spill]] %s3527_s3  ;;  %p2904_p0 = scmp.ge.s32.totalorder %s3372_s27, 1 }
  0x1b   : > { %p874_p1 = scmp.lt.s32.totalorder %s3372_s27, 3 }
  0x1d   : > { %p875_p2 = pnand %p2904_p0, %p874_p1 }
  0x1f   : > { %878 = sbr.rel (%p875_p2) target bundleno = 4817 (0x12d1), region = 124 }
  0x24   : > { %p1010_p3 = scmp.lt.s32.totalorder %s3527_s3, 1  ;;  %s4082_s0 = sld [smem:[#allocation15_spill]] }
  0x25   : > { %s4084_s5 = sld [smem:[#allocation16_spill]] }
  0x26   : > { %s3533_s7 = scalar_select %p1010_p3, %s3527_s3, 1 }
  0x27   : > { %s4087_s23 = sld [smem:[#allocation17_spill]] }
  0x28   : > { %s3148_s28 = sshll.u32 %s3533_s7, 6  ;;  %s2907_s8 = sshll.u32 %s3533_s7, 1 }
  0x29   : > { %s3149_s6 = sshll.u32 %s3533_s7, 5  ;;  %s4089_s12 = sld [smem:[#allocation20_spill]] }
  0x2a   : > { %s3540_s9 = scalar_lea.vmem %s4082_s0, %s3148_s28  ;;  %s4090_s14 = sld [smem:[#allocation21_spill]] }
  0x2b   : > { %4083 = sst [smem:[#allocation7_spill]] %s3540_s9  ;;  %s3545_s10 = scalar_lea.vmem %s4084_s5, %s2907_s8 }
  0x2c   : > { %4085 = sst [smem:[#allocation8_spill]] %s3545_s10  ;;  %s3154_s21 = sshll.u32 %s3533_s7, 7 }
  0x2d   : > { %s3555_s22 = scalar_lea.vmem %s4087_s23, %s3149_s6  ;;  %s4091_s16 = sld [smem:[#allocation22_spill]] }
  0x2e   : > { %s4094_s20 = sld [smem:[#allocation25_spill]] }
  0x2f   : > { %s3568_s26 = scalar_lea.vmem %s4089_s12, %s3149_s6  ;;  %s4095_s2 = sld [smem:[#allocation26_spill]] }
  0x30   : > { %s3577_s4 = scalar_lea.vmem %s4090_s14, %s3149_s6  ;;  %s4097_s25 = sld [smem:[#allocation28_spill]] }
  0x31   : > { %s4098_s14 = sld [smem:[#allocation29_spill]] }
  0x32   : > { %s4099_s18 = sld [smem:[#allocation30_spill]] }
  0x33   : > { %s3586_s9 = scalar_lea.vmem %s4091_s16, %s3149_s6  ;;  %s4096_s16 = sld [smem:[#allocation27_spill]] }
  0x34   : > { %s3603_s0 = scalar_lea.vmem %s4094_s20, %s3148_s28 }
  0x35   : > { %s3608_s30 = scalar_lea.vmem %s4095_s2, %s2907_s8  ;;  %s4100_s8 = sld [smem:[#allocation6_spill]] }
  0x36   : > { %s1079_s1 = scalar_lea.vmem %s4097_s25, %s3533_s7 }
  0x37   : > { %s1082_s28 = scalar_lea.vmem %s4098_s14, %s3533_s7 }
  0x38   : > { %s1085_s5 = scalar_lea.vmem %s4099_s18, %s3533_s7 }
  0x39   : > { %s3614_s27 = scalar_lea.vmem %s4096_s16, %s3154_s21 }
  0x3b   : > { %p2921_p4 = scmp.ne.s32.totalorder %s4100_s8, 0 }
  0x3c   : > { %s4101_s3 = sld [smem:[#allocation9_spill]] (!%p2921_p4) }
  0x3d   : > { %1090 = sbr.rel (%p2921_p4) target bundleno = 344 (0x158), region = 128  ;;  %s4102_s19 = sld [smem:[#allocation13_spill]] (!%p2921_p4) }
  0x3e   : > { %s4103_s10 = sld [smem:[#allocation14_spill]] (!%p2921_p4) }
  0x42   : > { %v1091_v0 = vld [vmem:[%s4101_s3] sm:$0xff]  ;;  %vm1095_vm0 = vcmask 523264   ;;  %v1092_v2 = vld [vmem:[%s4101_s3 + $0x8] sm:$0xff]  ;;  %v3374_v4 = vmov 64.0  }
  0x43   : > { %v1096_v1 = vsel %vm1095_vm0, %v1091_v0, 0.0  ;;  %v1099_v3 = vsel %vm1095_vm0, %v1092_v2, 0.0  ;;  %3231 = vrcp.f32 %v3374_v4  ;;  %v3229_v35 = vld [vmem:[%s4102_s19] ss:$0 sm:$0xff] }
  0x44   : > { %1097 = vadd.xlane.f32.xlu0 %v1096_v1  ;;  %v3230_v38 = vld [vmem:[%s4103_s10] ss:$0 sm:$0xff] }
  0x49   : > { %v3232_v5 = vpop.eup %3231 }
  0x4a   : > { %v1103_v6 = vmul.f32 64.0, %v3232_v5  ;;  %vm1107_vm1 = vweird.f32 %v3232_v5 }
  0x4c   : > { %1100 = vadd.xlane.f32.xlu0 %v1099_v3  ;;  %v1104_v7 = vsub.f32 1.0, %v1103_v6 }
  0x4e   : > { %v1105_v8 = vmul.f32 %v3232_v5, %v1104_v7 }
  0x50   : > { %v1106_v9 = vadd.f32 %v3232_v5, %v1105_v8 }
  0x52   : > { %v1108_v10 = vsel %vm1107_vm1, %v3232_v5, %v1106_v9 }
  0xb7   : > { %v1098_v11 = vpop.xlane.xlu0 %1097 }
  0xb8   : > { %v1109_v12 = vmul.f32 %v1108_v10, %v1098_v11 }
  0xba   : > { %v1111_v13 = vsub.f32 %v1091_v0, %v1109_v12 }
  0xbc   : > { %v1113_v14 = vmul.f32 %v1111_v13, %v1111_v13 }
  0xbe   : > { %v1115_v15 = vsel %vm1095_vm0, %v1113_v14, 0.0 }
  0xbf   : > { %1116 = vadd.xlane.f32.xlu1 %v1115_v15  ;;  %v1101_v16 = vpop.xlane.xlu0 %1100 }
  0xc0   : > { %v1110_v17 = vmul.f32 %v1108_v10, %v1101_v16 }
  0xc2   : > { %v1112_v18 = vsub.f32 %v1092_v2, %v1110_v17 }
  0xc4   : > { %v1114_v19 = vmul.f32 %v1112_v18, %v1112_v18 }
  0xc6   : > { %v1118_v20 = vsel %vm1095_vm0, %v1114_v19, 0.0 }
  0xc7   : > { %1119 = vadd.xlane.f32.xlu1 %v1118_v20 }
 0x132   : > { %v1117_v21 = vpop.xlane.xlu1 %1116 }
 0x133   : > { %v1121_v22 = vmul.f32 %v1117_v21, %v1108_v10 }
 0x135   : > { %v1123_v23 = vadd.f32 1e-12, %v1121_v22 }
 0x137   : > { %3233 = vrsqrt.f32 %v1123_v23  ;;  %vm1131_vm3 = vweird.f32 %v1123_v23 }
 0x13a   : > { %v1120_v24 = vpop.xlane.xlu1 %1119 }
 0x13b   : > { %v1122_v25 = vmul.f32 %v1120_v24, %v1108_v10 }
 0x13d   : > { %v3234_v26 = vpop.eup %3233  ;;  %v1124_v27 = vadd.f32 1e-12, %v1122_v25 }
 0x13e   : > { %v1126_v28 = vmul.f32 %v3234_v26, %v1123_v23  ;;  %vm1132_vm2 = vweird.f32 %v3234_v26 }
 0x13f   : > { %3235 = vrsqrt.f32 %v1124_v27  ;;  %vm1133_vm4 = vmor %vm1131_vm3, %vm1132_vm2  ;;  %vm1141_vm6 = vweird.f32 %v1124_v27 }
 0x140   : > { %v1127_v29 = vmul.f32 %v3234_v26, %v1126_v28 }
 0x142   : > { %v1128_v30 = vmul.f32 0.5, %v1127_v29 }
 0x144   : > { %v1129_v31 = vsub.f32 1.5, %v1128_v30 }
 0x145   : > { %v3236_v32 = vpop.eup %3235 }
 0x146   : > { %v1130_v33 = vmul.f32 %v3234_v26, %v1129_v31  ;;  %v1136_v34 = vmul.f32 %v3236_v32, %v1124_v27  ;;  %vm1142_vm5 = vweird.f32 %v3236_v32 }
 0x147   : > { %vm1143_vm7 = vmor %vm1141_vm6, %vm1142_vm5 }
 0x148   : > { %v1134_v36 = vsel %vm1133_vm4, %v3234_v26, %v1130_v33  ;;  %v1137_v37 = vmul.f32 %v3236_v32, %v1136_v34 }
 0x149   : > { %v1145_v39 = vmul.f32 %v1134_v36, %v1111_v13 }
 0x14a   : > { %v1138_v40 = vmul.f32 0.5, %v1137_v37 }
 0x14b   : > { %v1150_v41 = vmul.f32 %v3229_v35, %v1145_v39 }
 0x14c   : > { %v1139_v42 = vsub.f32 1.5, %v1138_v40 }
 0x14d   : > { %v1155_v43 = vadd.f32 %v3230_v38, %v1150_v41 }
 0x14e   : > { %v1140_v44 = vmul.f32 %v3236_v32, %v1139_v42 }
 0x14f   : > { %1157 = vst.msk [vmem:[#allocation2] sm:$0xff] %vm1095_vm0, %v1155_v43 }
 0x150   : > { %v1144_v45 = vsel %vm1143_vm7, %v3236_v32, %v1140_v44 }
 0x151   : > { %v1146_v46 = vmul.f32 %v1144_v45, %v1112_v18 }
 0x153   : > { %v1151_v47 = vmul.f32 %v3229_v35, %v1146_v46 }
 0x155   : > { %v1156_v48 = vadd.f32 %v3230_v38, %v1151_v47 }
 0x157   : > { %1158 = vst.msk [vmem:[#allocation2 + $0x8] sm:$0xff] %vm1095_vm0, %v1156_v48 }
 0x158 PF: > { %s4104_s24 = sld [smem:[#allocation7_spill]]  ;;  %v3655_v61 = vld [vmem:[#allocation2] sm:$0xff]  ;;  %vm1222_vm8 = vcmask 523264   ;;  %s3375_s14 = smov 64   ;;  %vm1274_vm9 = vcmask 130048   ;;  %vm1883_vm1 = vcmask 80896  }
 0x159   : > { %s4105_s25 = sld [smem:[#allocation8_spill]]  ;;  %s3376_s23 = smov 112   ;;  %vm1912_vm2 = vcmask 1044480  }
 0x15a   : > { %s4106_s6 = sld [smem:[#allocation11_spill]]  ;;  %s3377_s12 = smov 48  }
 0x15b   : > { %s3378_s18 = smov 32   ;;  %s3379_s19 = smov 16  }
 0x15c   : > { %s3380_s20 = smov 96   ;;  %s3381_s21 = smov 80  }
 0x15d   : > { %s4109_s2 = sld [smem:[#allocation10_spill]]  ;;  %s4112_s8 = scalar_lea.vmem %s4034_s11, %s3533_s7 }
 0x15e   : > { %v2948_v49 = vld [vmem:[%s4104_s24 + $0x30] sm:$0xf]  ;;  %v3162_v50 = vld [vmem:[%s4104_s24 + $0x34] sm:$0xf0]  ;;  %v2940_v51 = vld [vmem:[%s4104_s24 + $0x20] sm:$0xf] }
 0x15f   : > { %v2949_v52 = vor.u32 %v3162_v50, %v2948_v49  ;;  %v3160_v53 = vld [vmem:[%s4104_s24 + $0x24] sm:$0xf0]  ;;  %v2932_v55 = vld [vmem:[%s4104_s24 + $0x10] sm:$0xf]  ;;  %v3158_v56 = vld [vmem:[%s4104_s24 + $0x14] sm:$0xf0] }
 0x160   : > { %v2941_v54 = vor.u32 %v3160_v53, %v2940_v51  ;;  %v2933_v57 = vor.u32 %v3158_v56, %v2932_v55  ;;  %v2924_v58 = vld [vmem:[%s4104_s24] sm:$0xf]  ;;  %v3156_v59 = vld [vmem:[%s4104_s24 + $0x4] sm:$0xf0]  ;;  %v3161_v13 = vld [vmem:[%s4104_s24 + $0x34] sm:$0xf] }
 0x161   : > { %1230 = vmatpush.bf16.msra.mxu0 %v2949_v52  ;;  %v2925_v60 = vor.u32 %v3156_v59, %v2924_v58  ;;  %v3657_v62 = vld [vmem:[#allocation2 + $0x8] sm:$0xff]  ;;  %v3663_v0 = vld [vmem:[%s4105_s25] sm:$0x3]  ;;  %v2950_v14 = vld [vmem:[%s4104_s24 + $0x38] sm:$0xf0]  ;;  %s4107_s25 = sld [smem:[#allocation18_spill]] }
 0x162   : > { %v1176_v63 = vpack.c.bf16 %v3657_v62, %v3655_v61  ;;  %v1178_v2 = vperm.slane %v3663_v0, 0  ;;  %v3159_v15 = vld [vmem:[%s4104_s24 + $0x24] sm:$0xf]  ;;  %v2953_v16 = vor.u32 %v3161_v13, %v2950_v14  ;;  %v2942_v17 = vld [vmem:[%s4104_s24 + $0x28] sm:$0xf0]  ;;  %v1179_v43 = vperm.slane %v3663_v0, 1 }
 0x163   : > { %v2945_v18 = vor.u32 %v3159_v15, %v2942_v17  ;;  %v3157_v19 = vld [vmem:[%s4104_s24 + $0x14] sm:$0xf]  ;;  %v2934_v20 = vld [vmem:[%s4104_s24 + $0x18] sm:$0xf0]  ;;  %v3155_v22 = vld [vmem:[%s4104_s24 + $0x4] sm:$0xf] }
 0x164   : > { %1244 = vmatpush.bf16.msra.mxu1 %v2953_v16  ;;  %v2937_v21 = vor.u32 %v3157_v19, %v2934_v20  ;;  %v2926_v23 = vld [vmem:[%s4104_s24 + $0x8] sm:$0xf0]  ;;  %v3684_v26 = vld [vmem:[%s4106_s6] sm:$0xff]  ;;  %s4110_s24 = sld [smem:[#allocation19_spill]] }
 0x165   : > { %1231 = vmatpush.bf16.msra.mxu0 %v2941_v54  ;;  %v2929_v24 = vor.u32 %v3155_v22, %v2926_v23  ;;  %v3692_v31 = vld [vmem:[%s4106_s6 + $0x8] sm:$0xff] }
 0x166   : > { %v3164_v15 = vld [vmem:[%s3555_s22 + $0x8] sm:$0xff] }
 0x167   : > { %s4108_s29 = scalar_lea.vmem %s4107_s25, %s3533_s7 }
 0x168   : > { %1245 = vmatpush.bf16.msra.mxu1 %v2945_v18 }
 0x169   : > { %1232 = vmatpush.bf16.msra.mxu0 %v2933_v57 }
 0x16a   : > { %s4111_s25 = scalar_lea.vmem %s4110_s24, %s3533_s7 }
 0x16c   : > { %1246 = vmatpush.bf16.msra.mxu1 %v2937_v21 }
 0x16d   : > { %1233 = vmatpush.bf16.msra.mxu0 %v2925_v60 }
 0x170   : > { %2954 = vmatmul.msk.bf16.vlgmr.msra.gmra.mxu0 %vm1222_vm8, %v1176_v63  ;;  %1247 = vmatpush.bf16.msra.mxu1 %v2929_v24 }
 0x173   : > { %2955 = vmatmul.msk.bf16.vlgmr.msra.gmra.mxu1 %vm1222_vm8, %v1176_v63 }
 0x1ed   : > { %v1235_v1 = vpop.f32.mrf.mxu0 }
 0x1ee   : > { %v1236_v3 = vadd.f32 %v1235_v1, %v1178_v2 }
 0x1f0   : > { %v1263_v5 = vpack.c.bf16 %v1236_v3, %v1236_v3  ;;  %v1249_v44 = vpop.f32.mrf.mxu1 }
 0x1f1   : > { %v1250_v45 = vadd.f32 %v1249_v44, %v1179_v43 }
 0x1f2   : > { %v1269_v8 = vunpack.c.l.b16 %v1263_v5 }
 0x1f3   : > { %v1265_v48 = vpack.c.bf16 %v1250_v45, %v1250_v45 }
 0x1f5   : > { %v1237_v4 = vpop.f32.mrf.mxu0  ;;  %v1324_v51 = vunpack.c.l.b16 %v1265_v48 }
 0x1f6   : > { %v1238_v6 = vadd.f32 %v1237_v4, %v1178_v2 }
 0x1f8   : > { %v1264_v7 = vpack.c.bf16 %v1238_v6, %v1238_v6  ;;  %v1251_v49 = vpop.f32.mrf.mxu1 }
 0x1f9   : > { %v1252_v50 = vadd.f32 %v1251_v49, %v1179_v43 }
 0x1fa   : > { %v1270_v9 = vunpack.c.l.b16 %v1264_v7 }
 0x1fb   : > { %v1266_v52 = vpack.c.bf16 %v1252_v50, %v1252_v50 }
 0x1fc   : > { %v3666_v10 = vpack.c.b16 %v1270_v9, %v1269_v8 }
 0x1fd   : > { %v1325_v53 = vunpack.c.l.b16 %v1266_v52 }
 0x1fe   : > { %1272 = vrot.lane.b32.xlu0 %v3666_v10, %s3375_s14 }
 0x1ff   : > { %v3699_v54 = vpack.c.b16 %v1325_v53, %v1324_v51 }
 0x201   : > { %1338 = vmatpush.bf16.msra.mxu3 %v3699_v54 }
 0x270   : > { %v1273_v11 = vpop.permute.xlu0 %1272 }
 0x271   : > { %v1279_v12 = vsel %vm1274_vm9, %v1273_v11, 0 }
 0x272   : > { %1288 = vmatpush.bf16.xpose.msra.mxu2 %v1279_v12 }
 0x279   : > { %2956 = vmatmul.msk.bf16.vlgmr.msra.gmra.mxu2 %vm1274_vm9, %v3666_v10 }
 0x2fc   : > { %v1290_v25 = vpop.f32.mrf.mxu2 }
 0x2fd   : > { %v1295_v27 = vmul.f32 0.25, %v1290_v25 }
 0x2ff   : > { %v1297_v28 = vadd.f32 %v1295_v27, %v3684_v26 }
 0x301   : > { %v1299_v29 = vsel %vm1274_vm9, %v1297_v28, -inf }
 0x302   : > { %1300 = vmax.xlane.f32.xlu0 %v1299_v29 }
 0x304   : > { %v1292_v30 = vpop.f32.mrf.mxu2 }
 0x305   : > { %v1296_v32 = vmul.f32 0.25, %v1292_v30 }
 0x307   : > { %v1298_v33 = vadd.f32 %v1296_v32, %v3692_v31 }
 0x309   : > { %v1302_v34 = vsel %vm1274_vm9, %v1298_v33, -inf }
 0x30a   : > { %1303 = vmax.xlane.f32.xlu1 %v1302_v34 }
 0x375   : > { %v1301_v35 = vpop.xlane.xlu0 %1300 }
 0x376   : > { %v1305_v36 = vsub.f32 %v1297_v28, %v1301_v35 }
 0x378   : > { %v1307_v37 = vmul.f32 1.442695, %v1305_v36 }
 0x37a   : > { %3248 = vpow2.f32 %v1307_v37  ;;  %v3163_v37 = vld [vmem:[%s3555_s22] sm:$0xff] }
 0x37d   : > { %v1304_v38 = vpop.xlane.xlu1 %1303 }
 0x37e   : > { %v1306_v39 = vsub.f32 %v1298_v33, %v1304_v38 }
 0x380   : > { %v3249_v40 = vpop.eup %3248  ;;  %v1309_v41 = vmul.f32 1.442695, %v1306_v39 }
 0x381   : > { %v1311_v42 = vsel %vm1274_vm9, %v3249_v40, 0.0 }
 0x382   : > { %3250 = vpow2.f32 %v1309_v41  ;;  %1312 = vadd.xlane.f32.xlu1 %v1311_v42 }
 0x388   : > { %v3251_v46 = vpop.eup %3250 }
 0x389   : > { %v1314_v47 = vsel %vm1274_vm9, %v3251_v46, 0.0 }
 0x38a   : > { %1315 = vadd.xlane.f32.xlu2 %v1314_v47 }
 0x39b   : > { %1346 = vrot.lane.b32.xlu1 %v3666_v10, %s3376_s23 }
 0x3a2   : > { %1348 = vrot.lane.b32.xlu2 %v3666_v10, %s3377_s12 }
 0x3f5   : > { %v1313_v55 = vpop.xlane.xlu1 %1312 }
 0x3f6   : > { %3252 = vrcp.f32 %v1313_v55 }
 0x3fc   : > { %v3253_v57 = vpop.eup %3252 }
 0x3fd   : > { %v1316_v56 = vpop.xlane.xlu2 %1315  ;;  %v1319_v60 = vmul.f32 %v3253_v57, %v3249_v40 }
 0x3fe   : > { %3254 = vrcp.f32 %v1316_v56 }
 0x404   : > { %v3255_v58 = vpop.eup %3254 }
 0x405   : > { %v1349_v59 = vpop.permute.xlu2 %1348  ;;  %v1320_v63 = vmul.f32 %v3255_v58, %v3251_v46 }
 0x406   : > { %v1354_v0 = vsel %vm1274_vm9, %v1349_v59, 0 }
 0x407   : > { %1363 = vmatpush.bf16.xpose.msrb.mxu3 %v1354_v0  ;;  %v1321_v1 = vpack.c.bf16 %v1320_v63, %v1319_v60 }
 0x409   : > { %2957 = vmatmul.msk.bf16.vlgmr.msra.gmra.mxu3 %vm1274_vm9, %v1321_v1 }
 0x40d   : > { %v1347_v2 = vpop.permute.xlu1 %1346 }
 0x40f   : > { %1434 = vmatpush.bf16.msra.mxu3 %v3164_v15 }
 0x419   : > { %2958 = vmatmul.msk.bf16.vlgmr.msrb.gmra.mxu3 %vm1274_vm9, %v1347_v2 }
 0x48c   : > { %v1340_v3 = vpop.f32.mrf.mxu3 }
 0x494   : > { %v1342_v4 = vpop.f32.mrf.mxu3 }
 0x495   : > { %v1345_v5 = vpack.c.bf16 %v1342_v4, %v1340_v3 }
 0x49c   : > { %v1365_v6 = vpop.f32.mrf.mxu3 }
 0x49d   : > { %v1370_v7 = vmul.f32 0.25, %v1365_v6 }
 0x49f   : > { %v1372_v8 = vadd.f32 %v1370_v7, %v3684_v26 }
 0x4a1   : > { %v1374_v9 = vsel %vm1274_vm9, %v1372_v8, -inf }
 0x4a2   : > { %1375 = vmax.xlane.f32.xlu2 %v1374_v9 }
 0x4a4   : > { %v1367_v11 = vpop.f32.mrf.mxu3 }
 0x4a5   : > { %v1371_v12 = vmul.f32 0.25, %v1367_v11 }
 0x4a7   : > { %v1373_v13 = vadd.f32 %v1371_v12, %v3692_v31 }
 0x4a9   : > { %v1377_v14 = vsel %vm1274_vm9, %v1373_v13, -inf }
 0x4aa   : > { %1378 = vmax.xlane.f32.xlu1 %v1377_v14 }
 0x4ba   : > { %1466 = vrot.lane.b32.xlu2 %v3666_v10, %s3378_s18 }
 0x4c3   : > { %1563 = vrot.lane.b32.xlu1 %v3666_v10, %s3379_s19 }
 0x515   : > { %v1376_v16 = vpop.xlane.xlu2 %1375 }
 0x516   : > { %v1380_v17 = vsub.f32 %v1372_v8, %v1376_v16 }
 0x518   : > { %v1382_v18 = vmul.f32 1.442695, %v1380_v17 }
 0x51a   : > { %3256 = vpow2.f32 %v1382_v18 }
 0x51d   : > { %v1467_v19 = vpop.permute.xlu2 %1466  ;;  %v1379_v20 = vpop.xlane.xlu1 %1378 }
 0x51e   : > { %v1472_v21 = vsel %vm1274_vm9, %v1467_v19, 0  ;;  %v1381_v22 = vsub.f32 %v1373_v13, %v1379_v20 }
 0x51f   : > { %1481 = vmatpush.bf16.xpose.msrb.mxu3 %v1472_v21 }
 0x520   : > { %v3257_v23 = vpop.eup %3256  ;;  %v1384_v24 = vmul.f32 1.442695, %v1381_v22 }
 0x521   : > { %v1386_v25 = vsel %vm1274_vm9, %v3257_v23, 0.0 }
 0x522   : > { %3258 = vpow2.f32 %v1384_v24  ;;  %1387 = vadd.xlane.f32.xlu0 %v1386_v25 }
 0x528   : > { %v3259_v27 = vpop.eup %3258 }
 0x529   : > { %v1389_v28 = vsel %vm1274_vm9, %v3259_v27, 0.0 }
 0x52a   : > { %1390 = vadd.xlane.f32.xlu0 %v1389_v28 }
 0x535   : > { %v1564_v29 = vpop.permute.xlu1 %1563 }
 0x536   : > { %v1569_v30 = vsel %vm1274_vm9, %v1564_v29, 0 }
 0x537   : > { %1578 = vmatpush.bf16.xpose.msrb.mxu1 %v1569_v30 }
 0x53e   : > { %1397 = vrot.lane.b32.xlu0 %v3699_v54, %s3376_s23 }
 0x546   : > { %1464 = vrot.lane.b32.xlu0 %v3666_v10, %s3380_s20 }
 0x54e   : > { %1561 = vrot.lane.b32.xlu0 %v3666_v10, %s3381_s21 }
 0x595   : > { %v1388_v32 = vpop.xlane.xlu0 %1387 }
 0x59d   : > { %v1391_v33 = vpop.xlane.xlu0 %1390 }
 0x59e   : > { %3260 = vrcp.f32 %v1391_v33 }
 0x59f   : > { %3262 = vrcp.f32 %v1388_v32 }
 0x5a4   : > { %v3261_v34 = vpop.eup %3260 }
 0x5a5   : > { %v3263_v35 = vpop.eup %3262  ;;  %v1395_v36 = vmul.f32 %v3261_v34, %v3259_v27 }
 0x5a6   : > { %v1394_v38 = vmul.f32 %v3263_v35, %v3257_v23 }
 0x5a8   : > { %v1396_v40 = vpack.c.bf16 %v1395_v36, %v1394_v38  ;;  %v3166_v36 = vld [vmem:[%s3555_s22 + $0x18] sm:$0xff] }
 0x5b0   : > { %v1398_v39 = vpop.permute.xlu0 %1397 }
 0x5b1   : > { %1410 = vmatpush.bf16.msrb.mxu2 %v1398_v39 }
 0x5b4   : > { %2959 = vmatmul.msk.bf16.vlgmr.msrb.gmra.mxu2 %vm1274_vm9, %v1396_v40 }
 0x5b5   : > { %1457 = vmatpush.bf16.msra.mxu2 %v3163_v37 }
 0x5b8   : > { %v1465_v41 = vpop.permute.xlu0 %1464 }
 0x5c0   : > { %v1562_v42 = vpop.permute.xlu0 %1561 }
 0x5c1   : > { %2977 = vmatmul.msk.bf16.vlgmr.msrb.gmra.mxu1 %vm1274_vm9, %v1562_v42  ;;  %v3165_v42 = vld [vmem:[%s3555_s22 + $0x10] sm:$0xff] }
 0x5c2   : > { %1552 = vmatpush.bf16.msrb.mxu0 %v3165_v42 }
 0x5c4   : > { %2969 = vmatmul.msk.bf16.vlgmr.msra.gmra.mxu2 %vm1274_vm9, %v1345_v5 }
 0x637   : > { %v1412_v10 = vpop.f32.mrf.mxu2 }
 0x63e   : > { %v1580_v43 = vpop.f32.mrf.mxu1 }
 0x63f   : > { %v1585_v44 = vmul.f32 0.25, %v1580_v43  ;;  %v1414_v45 = vpop.f32.mrf.mxu2 }
 0x640   : > { %v1417_v46 = vpack.c.bf16 %v1414_v45, %v1412_v10 }
 0x641   : > { %v1587_v47 = vadd.f32 %v1585_v44, %v3684_v26 }
 0x642   : > { %2964 = vmatmul.msk.bf16.vlgmr.msra.gmra.mxu3 %vm1274_vm9, %v1417_v46 }
 0x643   : > { %v1589_v48 = vsel %vm1274_vm9, %v1587_v47, -inf }
 0x644   : > { %1590 = vmax.xlane.f32.xlu2 %v1589_v48 }
 0x646   : > { %v1582_v49 = vpop.f32.mrf.mxu1 }
 0x647   : > { %v1586_v50 = vmul.f32 0.25, %v1582_v49  ;;  %v1459_v10 = vpop.f32.mrf.mxu2 }
 0x649   : > { %v1588_v51 = vadd.f32 %v1586_v50, %v3692_v31 }
 0x64b   : > { %v1592_v52 = vsel %vm1274_vm9, %v1588_v51, -inf }
 0x64c   : > { %1593 = vmax.xlane.f32.xlu0 %v1592_v52 }
 0x64f   : > { %v1461_v43 = vpop.f32.mrf.mxu2 }
 0x652   : > { %2970 = vmatmul.msk.bf16.vlgmr.msrb.gmra.mxu3 %vm1274_vm9, %v1465_v41 }
 0x6b7   : > { %v1591_v53 = vpop.xlane.xlu2 %1590 }
 0x6b8   : > { %v1595_v55 = vsub.f32 %v1587_v47, %v1591_v53 }
 0x6ba   : > { %v1597_v56 = vmul.f32 1.442695, %v1595_v55 }
 0x6bc   : > { %3264 = vpow2.f32 %v1597_v56 }
 0x6bf   : > { %v1594_v0 = vpop.xlane.xlu0 %1593 }
 0x6c0   : > { %v1596_v3 = vsub.f32 %v1588_v51, %v1594_v0  ;;  %v3237_v51 = vld [vmem:[%s4108_s29] ss:$0 sm:$0xff] }
 0x6c2   : > { %v3265_v57 = vpop.eup %3264  ;;  %v1599_v5 = vmul.f32 1.442695, %v1596_v3 }
 0x6c3   : > { %v1601_v58 = vsel %vm1274_vm9, %v3265_v57, 0.0 }
 0x6c4   : > { %1602 = vadd.xlane.f32.xlu0 %v1601_v58  ;;  %3266 = vpow2.f32 %v1599_v5 }
 0x6c5   : > { %v3739_v59 = vpop.f32.mrf.mxu3 }
 0x6c6   : > { %v1460_v47 = vadd.f32 %v1459_v10, %v3739_v59 }
 0x6ca   : > { %v3267_v11 = vpop.eup %3266 }
 0x6cb   : > { %v1604_v12 = vsel %vm1274_vm9, %v3267_v11, 0.0 }
 0x6cd   : > { %v3741_v60 = vpop.f32.mrf.mxu3 }
 0x6ce   : > { %v1462_v55 = vadd.f32 %v1461_v43, %v3741_v60 }
 0x6d5   : > { %v1483_v63 = vpop.f32.mrf.mxu3 }
 0x6d6   : > { %v1488_v1 = vmul.f32 0.25, %v1483_v63 }
 0x6d8   : > { %v1490_v2 = vadd.f32 %v1488_v1, %v3684_v26 }
 0x6da   : > { %v1492_v4 = vsel %vm1274_vm9, %v1490_v2, -inf }
 0x6db   : > { %1493 = vmax.xlane.f32.xlu1 %v1492_v4  ;;  %v3382_v4 = vmov 64.0  }
 0x6dd   : > { %v1485_v6 = vpop.f32.mrf.mxu3 }
 0x6de   : > { %v1489_v7 = vmul.f32 0.25, %v1485_v6 }
 0x6e0   : > { %v1491_v8 = vadd.f32 %v1489_v7, %v3692_v31 }
 0x6e2   : > { %v1495_v9 = vsel %vm1274_vm9, %v1491_v8, -inf }
 0x6e3   : > { %1496 = vmax.xlane.f32.xlu2 %v1495_v9 }
 0x6eb   : > { %1605 = vadd.xlane.f32.xlu2 %v1604_v12 }
 0x703   : > { %1612 = vrot.lane.b32.xlu2 %v3699_v54, %s3381_s21 }
 0x737   : > { %v1603_v31 = vpop.xlane.xlu0 %1602 }
 0x74e   : > { %v1494_v26 = vpop.xlane.xlu1 %1493 }
 0x74f   : > { %v1498_v13 = vsub.f32 %v1490_v2, %v1494_v26 }
 0x751   : > { %v1500_v14 = vmul.f32 1.442695, %v1498_v13 }
 0x753   : > { %3268 = vpow2.f32 %v1500_v14 }
 0x756   : > { %v1497_v15 = vpop.xlane.xlu2 %1496 }
 0x757   : > { %v1499_v16 = vsub.f32 %v1491_v8, %v1497_v15 }
 0x759   : > { %v3269_v17 = vpop.eup %3268  ;;  %v1502_v18 = vmul.f32 1.442695, %v1499_v16 }
 0x75a   : > { %v1504_v19 = vsel %vm1274_vm9, %v3269_v17, 0.0 }
 0x75b   : > { %3270 = vpow2.f32 %v1502_v18  ;;  %1505 = vadd.xlane.f32.xlu1 %v1504_v19  ;;  %v3174_v18 = vld [vmem:[%s3577_s4 + $0x18] sm:$0xff]  ;;  %v3172_v19 = vld [vmem:[%s3577_s4 + $0x8] sm:$0xff] }
 0x75c   : > { %3272 = vrcp.f32 %v1603_v31  ;;  %1826 = vmatpush.bf16.msra.mxu1 %v3174_v18  ;;  %v3173_v31 = vld [vmem:[%s3577_s4 + $0x10] sm:$0xff] }
 0x75e   : > { %v1606_v20 = vpop.xlane.xlu2 %1605 }
 0x75f   : > { %3274 = vrcp.f32 %v1606_v20  ;;  %v3171_v20 = vld [vmem:[%s3577_s4] sm:$0xff] }
 0x760   : > { %1827 = vmatpush.bf16.msra.mxu1 %v3173_v31 }
 0x761   : > { %v3271_v21 = vpop.eup %3270 }
 0x762   : > { %v1507_v22 = vsel %vm1274_vm9, %v3271_v21, 0.0  ;;  %v3273_v23 = vpop.eup %3272 }
 0x763   : > { %1508 = vadd.xlane.f32.xlu0 %v1507_v22  ;;  %v1609_v25 = vmul.f32 %v3273_v23, %v3265_v57  ;;  %v1162_v22 = vld [vmem:[%s4109_s2 + $0x8] sm:$0x3] }
 0x764   : > { %1828 = vmatpush.bf16.msra.mxu1 %v3172_v19 }
 0x765   : > { %v3275_v24 = vpop.eup %3274 }
 0x766   : > { %v1610_v27 = vmul.f32 %v3275_v24, %v3267_v11  ;;  %v1613_v28 = vpop.permute.xlu2 %1612  ;;  %v3170_v24 = vld [vmem:[%s3568_s26 + $0x18] sm:$0xff] }
 0x767   : > { %1625 = vmatpush.bf16.msra.mxu3 %v1613_v28  ;;  %1772 = vmatpush.bf16.msra.mxu0 %v3170_v24 }
 0x768   : > { %v1611_v29 = vpack.c.bf16 %v1610_v27, %v1609_v25  ;;  %1829 = vmatpush.bf16.msra.mxu1 %v3171_v20  ;;  %v3169_v25 = vld [vmem:[%s3568_s26 + $0x10] sm:$0xff]  ;;  %v3168_v27 = vld [vmem:[%s3568_s26 + $0x8] sm:$0xff] }
 0x76a   : > { %2978 = vmatmul.msk.bf16.vlgmr.msra.gmra.mxu3 %vm1274_vm9, %v1611_v29 }
 0x76b   : > { %1773 = vmatpush.bf16.msra.mxu0 %v3169_v25 }
 0x76f   : > { %1774 = vmatpush.bf16.msra.mxu0 %v3168_v27 }
 0x774   : > { %1515 = vrot.lane.b32.xlu1 %v3699_v54, %s3380_s20 }
 0x7ce   : > { %v1506_v32 = vpop.xlane.xlu1 %1505 }
 0x7d6   : > { %v1509_v30 = vpop.xlane.xlu0 %1508 }
 0x7d7   : > { %3276 = vrcp.f32 %v1509_v30  ;;  %v3167_v30 = vld [vmem:[%s3568_s26] sm:$0xff]  ;;  %s4113_s26 = scalar_lea.vmem %s4038_s15, %s3533_s7 }
 0x7d8   : > { %3278 = vrcp.f32 %v1506_v32  ;;  %1775 = vmatpush.bf16.msra.mxu0 %v3167_v30 }
 0x7d9   : > { %3280 = vrcp.f32 %v3382_v4 }
 0x7dd   : > { %v3277_v33 = vpop.eup %3276 }
 0x7de   : > { %v3279_v34 = vpop.eup %3278  ;;  %v1513_v35 = vmul.f32 %v3277_v33, %v3271_v21  ;;  %v1161_v21 = vld [vmem:[%s4109_s2] sm:$0xff] }
 0x7df   : > { %v1512_v37 = vmul.f32 %v3279_v34, %v3269_v17  ;;  %v3281_v5 = vpop.eup %3280  ;;  %v1791_v23 = vpack.c.bf16 %v1162_v22, %v1161_v21 }
 0x7e0   : > { %v1674_v6 = vmul.f32 64.0, %v3281_v5  ;;  %vm1678_vm10 = vweird.f32 %v3281_v5 }
 0x7e1   : > { %v1514_v39 = vpack.c.bf16 %v1513_v35, %v1512_v37  ;;  %3017 = vmatmul.msk.bf16.vlgmr.msra.gmra.mxu1 %vm1222_vm8, %v1791_v23 }
 0x7e2   : > { %v1675_v60 = vsub.f32 1.0, %v1674_v6 }
 0x7e4   : > { %v1676_v7 = vmul.f32 %v3281_v5, %v1675_v60 }
 0x7e6   : > { %v1516_v38 = vpop.permute.xlu1 %1515 }
 0x7e7   : > { %1528 = vmatpush.bf16.msrb.mxu2 %v1516_v38 }
 0x7ea   : > { %2971 = vmatmul.msk.bf16.vlgmr.msrb.gmra.mxu2 %vm1274_vm9, %v1514_v39 }
 0x7eb   : > { %1649 = vmatpush.bf16.msra.mxu2 %v3166_v36 }
 0x7ed   : > { %v1627_v40 = vpop.f32.mrf.mxu3 }
 0x7f5   : > { %v1629_v41 = vpop.f32.mrf.mxu3 }
 0x7f6   : > { %v1632_v54 = vpack.c.bf16 %v1629_v41, %v1627_v40 }
 0x7fa   : > { %2983 = vmatmul.msk.bf16.vlgmr.msra.gmra.mxu2 %vm1274_vm9, %v1632_v54 }
 0x86d   : > { %v1530_v44 = vpop.f32.mrf.mxu2 }
 0x875   : > { %v1532_v45 = vpop.f32.mrf.mxu2 }
 0x876   : > { %v1535_v46 = vpack.c.bf16 %v1532_v45, %v1530_v44 }
 0x878   : > { %2976 = vmatmul.msk.bf16.vlgmr.msrb.gmra.mxu0 %vm1274_vm9, %v1535_v46  ;;  %v3238_v46 = vld [vmem:[%s4111_s25] ss:$0 sm:$0xff]  ;;  %s4114_s25 = scalar_lea.vmem %s4036_s13, %s3533_s7 }
 0x87d   : > { %v1651_v48 = vpop.f32.mrf.mxu2 }
 0x885   : > { %v1653_v0 = vpop.f32.mrf.mxu2 }
 0x8f5   : > { %v1554_v49 = vpop.f32.mrf.mxu0 }
 0x8f6   : > { %v1559_v50 = vadd.f32 %v1554_v49, %v1460_v47 }
 0x8f8   : > { %v1656_v52 = vadd.f32 %v1651_v48, %v1559_v50  ;;  %v3239_v50 = vld [vmem:[%s4112_s8] ss:$0 sm:$0xff]  ;;  %s4115_s8 = sld [smem:[#allocation12_spill]] }
 0x8fa   : > { %v1661_v53 = vadd.f32 %v3237_v51, %v1656_v52 }
 0x8fc   : > { %v1663_v56 = vadd.f32 %v1661_v53, %v3655_v61  ;;  %v1677_v61 = vadd.f32 %v3281_v5, %v1676_v7 }
 0x8fd   : > { %v1556_v57 = vpop.f32.mrf.mxu0 }
 0x8fe   : > { %v1560_v58 = vadd.f32 %v1556_v57, %v1462_v55  ;;  %v1667_v63 = vsel %vm1222_vm8, %v1663_v56, 0.0  ;;  %v3771_v8 = vsel %vm1678_vm10, %v3281_v5, %v1677_v61  ;;  %v3241_v61 = vld [vmem:[%s4114_s25] ss:$0 sm:$0xff]  ;;  %v3840_v23 = vld [vmem:[%s4115_s8 + $0x8] sm:$0xff] }
 0x8ff   : > { %1668 = vadd.xlane.f32.xlu0 %v1667_v63  ;;  %v1831_v63 = vpop.f32.mrf.mxu1  ;;  %v3833_v31 = vld [vmem:[%s4115_s8] sm:$0xff] }
 0x900   : > { %v1657_v59 = vadd.f32 %v1653_v0, %v1560_v58  ;;  %v3240_v58 = vld [vmem:[%s4113_s26] ss:$0 sm:$0xff]  ;;  %s4119_s26 = sld [smem:[#allocation24_spill]] }
 0x901   : > { %v1832_v0 = vadd.f32 %v3240_v58, %v1831_v63 }
 0x902   : > { %v1662_v1 = vadd.f32 %v3237_v51, %v1657_v59 }
 0x903   : > { %v1847_v59 = vpack.c.bf16 %v1832_v0, %v1832_v0 }
 0x904   : > { %v1664_v2 = vadd.f32 %v1662_v1, %v3657_v62 }
 0x906   : > { %v1670_v3 = vsel %vm1222_vm8, %v1664_v2, 0.0  ;;  %s4120_s4 = scalar_lea.vmem %s4119_s26, %s3533_s7 }
 0x907   : > { %1671 = vadd.xlane.f32.xlu0 %v1670_v3  ;;  %v1833_v1 = vpop.f32.mrf.mxu1  ;;  %v1856_v3 = vunpack.c.l.b16 %v1847_v59 }
 0x972   : > { %v1669_v9 = vpop.xlane.xlu0 %1668 }
 0x973   : > { %v1680_v11 = vmul.f32 %v3771_v8, %v1669_v9 }
 0x975   : > { %v1682_v62 = vsub.f32 %v1663_v56, %v1680_v11 }
 0x977   : > { %v1684_v12 = vmul.f32 %v1682_v62, %v1682_v62 }
 0x979   : > { %v1686_v26 = vsel %vm1222_vm8, %v1684_v12, 0.0 }
 0x97a   : > { %1687 = vadd.xlane.f32.xlu0 %v1686_v26  ;;  %v1672_v13 = vpop.xlane.xlu0 %1671 }
 0x97b   : > { %v1681_v14 = vmul.f32 %v3771_v8, %v1672_v13 }
 0x97d   : > { %v1683_v15 = vsub.f32 %v1664_v2, %v1681_v14  ;;  %v1834_v2 = vadd.f32 %v3240_v58, %v1833_v1 }
 0x97f   : > { %v1685_v16 = vmul.f32 %v1683_v15, %v1683_v15  ;;  %v1848_v4 = vpack.c.bf16 %v1834_v2, %v1834_v2 }
 0x981   : > { %v1689_v17 = vsel %vm1222_vm8, %v1685_v16, 0.0  ;;  %v1857_v5 = vunpack.c.l.b16 %v1848_v4 }
 0x982   : > { %1690 = vadd.xlane.f32.xlu2 %v1689_v17 }
 0x983   : > { %v3816_v6 = vpack.c.b16 %v1857_v5, %v1856_v3 }
 0x985   : > { %v1863_v60 = vsel %vm1274_vm9, %v3816_v6, 0 }
 0x986   : > { %1872 = vmatpush.bf16.xpose.msrb.mxu3 %v1863_v60 }
 0x99a   : > { %1933 = vrot.lane.b32.xlu2 %v3816_v6, %s3376_s23 }
 0x9ed   : > { %v1688_v28 = vpop.xlane.xlu0 %1687 }
 0x9ee   : > { %v1692_v29 = vmul.f32 %v1688_v28, %v3771_v8 }
 0x9f0   : > { %v1694_v32 = vadd.f32 1e-12, %v1692_v29 }
 0x9f2   : > { %3282 = vrsqrt.f32 %v1694_v32  ;;  %vm1702_vm12 = vweird.f32 %v1694_v32 }
 0x9f5   : > { %v1691_v33 = vpop.xlane.xlu2 %1690 }
 0x9f6   : > { %v1693_v34 = vmul.f32 %v1691_v33, %v3771_v8 }
 0x9f8   : > { %v3283_v35 = vpop.eup %3282  ;;  %v1695_v36 = vadd.f32 1e-12, %v1693_v34 }
 0x9f9   : > { %v1697_v37 = vmul.f32 %v3283_v35, %v1694_v32  ;;  %vm1703_vm11 = vweird.f32 %v3283_v35 }
 0x9fa   : > { %3284 = vrsqrt.f32 %v1695_v36  ;;  %vm1704_vm13 = vmor %vm1702_vm12, %vm1703_vm11  ;;  %vm1712_vm15 = vweird.f32 %v1695_v36 }
 0x9fb   : > { %v1698_v38 = vmul.f32 %v3283_v35, %v1697_v37 }
 0x9fd   : > { %v1699_v39 = vmul.f32 0.5, %v1698_v38  ;;  %v1934_v16 = vpop.permute.xlu2 %1933 }
 0x9fe   : > { %v1939_v17 = vsel %vm1274_vm9, %v1934_v16, 0 }
 0x9ff   : > { %v1700_v40 = vsub.f32 1.5, %v1699_v39  ;;  %1948 = vmatpush.bf16.xpose.msrb.mxu0 %v1939_v17 }
 0xa00   : > { %v3285_v41 = vpop.eup %3284 }
 0xa01   : > { %v1701_v54 = vmul.f32 %v3283_v35, %v1700_v40  ;;  %v1707_v42 = vmul.f32 %v3285_v41, %v1695_v36  ;;  %vm1713_vm14 = vweird.f32 %v3285_v41 }
 0xa02   : > { %vm1714_vm0 = vmor %vm1712_vm15, %vm1713_vm14 }
 0xa03   : > { %v1708_v10 = vmul.f32 %v3285_v41, %v1707_v42  ;;  %v1705_v43 = vsel %vm1704_vm13, %v3283_v35, %v1701_v54 }
 0xa04   : > { %v1716_v47 = vmul.f32 %v1705_v43, %v1682_v62 }
 0xa05   : > { %v1709_v44 = vmul.f32 0.5, %v1708_v10 }
 0xa06   : > { %v1721_v51 = vmul.f32 %v3238_v46, %v1716_v47 }
 0xa07   : > { %v1710_v45 = vsub.f32 1.5, %v1709_v44 }
 0xa08   : > { %v3804_v55 = vadd.f32 %v3239_v50, %v1721_v51 }
 0xa09   : > { %v1711_v48 = vmul.f32 %v3285_v41, %v1710_v45 }
 0xa0b   : > { %v1715_v49 = vsel %vm1714_vm0, %v3285_v41, %v1711_v48 }
 0xa0c   : > { %v1717_v52 = vmul.f32 %v1715_v49, %v1683_v15 }
 0xa0e   : > { %v1722_v53 = vmul.f32 %v3238_v46, %v1717_v52  ;;  %v3175_v46 = vld [vmem:[%s3586_s9] sm:$0xff] }
 0xa10   : > { %v3806_v56 = vadd.f32 %v3239_v50, %v1722_v53 }
 0xa12   : > { %v1737_v57 = vpack.c.bf16 %v3806_v56, %v3804_v55 }
 0xa14   : > { %3000 = vmatmul.msk.bf16.vlgmr.msra.gmra.mxu0 %vm1222_vm8, %v1737_v57 }
 0xa91   : > { %v1777_v7 = vpop.f32.mrf.mxu0 }
 0xa92   : > { %v1778_v9 = vadd.f32 %v3241_v61, %v1777_v7 }
 0xa94   : > { %v1845_v62 = vpack.c.bf16 %v1778_v9, %v1778_v9 }
 0xa96   : > { %v1851_v13 = vunpack.c.l.b16 %v1845_v62 }
 0xa99   : > { %v1779_v11 = vpop.f32.mrf.mxu0 }
 0xa9a   : > { %v1780_v12 = vadd.f32 %v3241_v61, %v1779_v11 }
 0xa9c   : > { %v1846_v26 = vpack.c.bf16 %v1780_v12, %v1780_v12 }
 0xa9e   : > { %v1852_v14 = vunpack.c.l.b16 %v1846_v26 }
 0xaa0   : > { %v1853_v15 = vpack.c.b16 %v1852_v14, %v1851_v13 }
 0xaa2   : > { %2051 = vrot.lane.b32.xlu2 %v1853_v15, %s3380_s20  ;;  %3018 = vmatmul.msk.bf16.vlgmr.msrb.gmra.mxu3 %vm1274_vm9, %v1853_v15 }
 0xafc   : > { %v2052_v59 = vpop.permute.xlu2 %2051 }
 0xb25   : > { %v1874_v18 = vpop.f32.mrf.mxu3 }
 0xb26   : > { %v1879_v19 = vmul.f32 0.25, %v1874_v18 }
 0xb28   : > { %v1881_v20 = vadd.f32 %v1879_v19, %v3833_v31 }
 0xb2a   : > { %v1884_v21 = vsel %vm1883_vm1, %v1881_v20, -inf }
 0xb2b   : > { %1885 = vmax.xlane.f32.xlu1 %v1884_v21 }
 0xb2d   : > { %v1876_v22 = vpop.f32.mrf.mxu3 }
 0xb2e   : > { %v1880_v24 = vmul.f32 0.25, %v1876_v22 }
 0xb30   : > { %v1882_v25 = vadd.f32 %v1880_v24, %v3840_v23 }
 0xb32   : > { %v1887_v27 = vsel %vm1883_vm1, %v1882_v25, -inf }
 0xb33   : > { %1888 = vmax.xlane.f32.xlu0 %v1887_v27 }
 0xb44   : > { %1931 = vrot.lane.b32.xlu1 %v1853_v15, %s3376_s23 }
 0xb9e   : > { %v1886_v28 = vpop.xlane.xlu1 %1885 }
 0xb9f   : > { %v1890_v29 = vsub.f32 %v1881_v20, %v1886_v28 }
 0xba1   : > { %v1892_v30 = vmul.f32 1.442695, %v1890_v29 }
 0xba3   : > { %3286 = vpow2.f32 %v1892_v30 }
 0xba6   : > { %v1889_v32 = vpop.xlane.xlu0 %1888 }
 0xba7   : > { %v1891_v33 = vsub.f32 %v1882_v25, %v1889_v32 }
 0xba9   : > { %v3287_v34 = vpop.eup %3286  ;;  %v1894_v35 = vmul.f32 1.442695, %v1891_v33 }
 0xbaa   : > { %v1896_v36 = vsel %vm1883_vm1, %v3287_v34, 0.0 }
 0xbab   : > { %3288 = vpow2.f32 %v1894_v35  ;;  %1897 = vadd.xlane.f32.xlu0 %v1896_v36 }
 0xbb1   : > { %v3289_v37 = vpop.eup %3288 }
 0xbb2   : > { %v1899_v38 = vsel %vm1883_vm1, %v3289_v37, 0.0 }
 0xbb3   : > { %1900 = vadd.xlane.f32.xlu0 %v1899_v38 }
 0xbb6   : > { %v1932_v39 = vpop.permute.xlu1 %1931 }
 0xbb7   : > { %3020 = vmatmul.msk.bf16.vlgmr.msrb.gmra.mxu0 %vm1274_vm9, %v1932_v39 }
 0xbc7   : > { %1907 = vrot.lane.b32.xlu0 %v3816_v6, %s3375_s14  ;;  %s4124_s14 = sld [smem:[#allocation6_spill]] }
 0xbcd   : > { %p3207_p5 = scmp.eq.s32.totalorder %s4124_s14, 1 }
 0xbcf   : > { %2053 = vrot.lane.b32.xlu0 %v3816_v6, %s3380_s20 }
 0xbd7   : > { %2152 = vrot.lane.b32.xlu0 %v3816_v6, %s3381_s21 }
 0xbdf   : > { %2150 = vrot.lane.b32.xlu0 %v1853_v15, %s3381_s21 }
 0xc1e   : > { %v1898_v40 = vpop.xlane.xlu0 %1897 }
 0xc26   : > { %v1901_v41 = vpop.xlane.xlu0 %1900 }
 0xc27   : > { %3290 = vrcp.f32 %v1901_v41 }
 0xc28   : > { %3292 = vrcp.f32 %v1898_v40 }
 0xc2d   : > { %v3291_v42 = vpop.eup %3290 }
 0xc2e   : > { %v3293_v43 = vpop.eup %3292  ;;  %v1905_v45 = vmul.f32 %v3291_v42, %v3289_v37 }
 0xc2f   : > { %v1904_v49 = vmul.f32 %v3293_v43, %v3287_v34 }
 0xc31   : > { %v1906_v51 = vpack.c.bf16 %v1905_v45, %v1904_v49 }
 0xc34   : > { %v1950_v54 = vpop.f32.mrf.mxu0 }
 0xc35   : > { %v1955_v10 = vmul.f32 0.25, %v1950_v54 }
 0xc37   : > { %v1957_v44 = vadd.f32 %v1955_v10, %v3833_v31 }
 0xc39   : > { %v1908_v47 = vpop.permute.xlu0 %1907  ;;  %v1959_v48 = vsel %vm1883_vm1, %v1957_v44, -inf }
 0xc3a   : > { %v1914_v50 = vsel %vm1912_vm2, %v1908_v47, 0  ;;  %1960 = vmax.xlane.f32.xlu1 %v1959_v48 }
 0xc3b   : > { %1923 = vmatpush.bf16.msrb.mxu2 %v1914_v50 }
 0xc3c   : > { %v1952_v52 = vpop.f32.mrf.mxu0 }
 0xc3d   : > { %v1956_v53 = vmul.f32 0.25, %v1952_v52 }
 0xc3e   : > { %3019 = vmatmul.msk.bf16.vlgmr.msrb.gmra.mxu2 %vm1883_vm1, %v1906_v51 }
 0xc3f   : > { %2044 = vmatpush.bf16.msra.mxu2 %v3175_v46  ;;  %v1958_v57 = vadd.f32 %v1956_v53, %v3840_v23 }
 0xc41   : > { %v2054_v58 = vpop.permute.xlu0 %2053  ;;  %v1962_v63 = vsel %vm1883_vm1, %v1958_v57, -inf }
 0xc42   : > { %v2059_v0 = vsel %vm1274_vm9, %v2054_v58, 0  ;;  %1963 = vmax.xlane.f32.xlu2 %v1962_v63 }
 0xc43   : > { %2068 = vmatpush.bf16.xpose.msra.mxu0 %v2059_v0 }
 0xc49   : > { %v2153_v1 = vpop.permute.xlu0 %2152 }
 0xc4a   : > { %v2158_v2 = vsel %vm1274_vm9, %v2153_v1, 0  ;;  %3032 = vmatmul.msk.bf16.vlgmr.msra.gmra.mxu0 %vm1274_vm9, %v2052_v59 }
 0xc4b   : > { %2167 = vmatpush.bf16.xpose.msrb.mxu2 %v2158_v2 }
 0xc51   : > { %v2151_v17 = vpop.permute.xlu0 %2150 }
 0xcad   : > { %v1961_v5 = vpop.xlane.xlu1 %1960 }
 0xcae   : > { %v1965_v11 = vsub.f32 %v1957_v44, %v1961_v5 }
 0xcb0   : > { %v1967_v12 = vmul.f32 1.442695, %v1965_v11 }
 0xcb2   : > { %3294 = vpow2.f32 %v1967_v12 }
 0xcb5   : > { %v1964_v28 = vpop.xlane.xlu2 %1963 }
 0xcb6   : > { %v1966_v29 = vsub.f32 %v1958_v57, %v1964_v28 }
 0xcb8   : > { %v3870_v16 = vpop.eup %3294  ;;  %v1969_v30 = vmul.f32 1.442695, %v1966_v29 }
 0xcb9   : > { %v1971_v18 = vsel %vm1883_vm1, %v3870_v16, 0.0 }
 0xcc1   : > { %v1925_v3 = vpop.f32.mrf.mxu2 }
 0xcc7   : > { %v2070_v4 = vpop.f32.mrf.mxu0 }
 0xcc8   : > { %v2075_v60 = vmul.f32 0.25, %v2070_v4 }
 0xcc9   : > { %v1927_v7 = vpop.f32.mrf.mxu2 }
 0xcca   : > { %v1930_v61 = vpack.c.bf16 %v1927_v7, %v1925_v3  ;;  %v2077_v9 = vadd.f32 %v2075_v60, %v3833_v31 }
 0xccc   : > { %3031 = vmatmul.msk.bf16.vlgmr.msra.gmra.mxu2 %vm1274_vm9, %v1930_v61  ;;  %v2079_v62 = vsel %vm1883_vm1, %v2077_v9, -inf }
 0xccd   : > { %2080 = vmax.xlane.f32.xlu0 %v2079_v62 }
 0xccf   : > { %v2072_v26 = vpop.f32.mrf.mxu0 }
 0xcd0   : > { %v2076_v13 = vmul.f32 0.25, %v2072_v26 }
 0xcd2   : > { %v2078_v14 = vadd.f32 %v2076_v13, %v3840_v23  ;;  %v3176_v13 = vld [vmem:[%s3586_s9 + $0x8] sm:$0xff] }
 0xcd3   : > { %2021 = vmatpush.bf16.msra.mxu3 %v3176_v13  ;;  %v3181_v13 = vld [vmem:[%s3603_s0 + $0x14] sm:$0xf] }
 0xcd4   : > { %v2082_v15 = vsel %vm1883_vm1, %v2078_v14, -inf }
 0xcd5   : > { %2083 = vmax.xlane.f32.xlu1 %v2082_v15 }
 0xcdc   : > { %3039 = vmatmul.msk.bf16.vlgmr.msrb.gmra.mxu2 %vm1274_vm9, %v2151_v17 }
 0xcdd   : > { %1972 = vadd.xlane.f32.xlu1 %v1971_v18 }
 0xd40   : > { %v2081_v19 = vpop.xlane.xlu0 %2080 }
 0xd41   : > { %v2085_v20 = vsub.f32 %v2077_v9, %v2081_v19 }
 0xd43   : > { %v2087_v21 = vmul.f32 1.442695, %v2085_v20 }
 0xd45   : > { %3296 = vpow2.f32 %v2087_v21  ;;  %v3177_v21 = vld [vmem:[%s3586_s9 + $0x10] sm:$0xff] }
 0xd46   : > { %3298 = vpow2.f32 %v1969_v30  ;;  %2141 = vmatpush.bf16.msrb.mxu3 %v3177_v21 }
 0xd48   : > { %v2084_v33 = vpop.xlane.xlu1 %2083 }
 0xd49   : > { %v2086_v36 = vsub.f32 %v2078_v14, %v2084_v33  ;;  %v3178_v33 = vld [vmem:[%s3586_s9 + $0x18] sm:$0xff] }
 0xd4b   : > { %v3875_v22 = vpop.eup %3296  ;;  %v2089_v38 = vmul.f32 1.442695, %v2086_v36 }
 0xd4c   : > { %v2091_v24 = vsel %vm1883_vm1, %v3875_v22, 0.0  ;;  %v3299_v41 = vpop.eup %3298 }
 0xd4d   : > { %2092 = vadd.xlane.f32.xlu1 %v2091_v24  ;;  %3300 = vpow2.f32 %v2089_v38  ;;  %v1974_v42 = vsel %vm1883_vm1, %v3299_v41, 0.0 }
 0xd4f   : > { %v3879_v25 = vpop.f32.mrf.mxu2 }
 0xd50   : > { %v1973_v48 = vpop.xlane.xlu1 %1972 }
 0xd57   : > { %v3881_v27 = vpop.f32.mrf.mxu2 }
 0xd5f   : > { %v2169_v32 = vpop.f32.mrf.mxu2 }
 0xd60   : > { %v2174_v34 = vmul.f32 0.25, %v2169_v32 }
 0xd62   : > { %v2176_v35 = vadd.f32 %v2174_v34, %v3833_v31  ;;  %v3301_v31 = vpop.eup %3300 }
 0xd63   : > { %v2094_v43 = vsel %vm1883_vm1, %v3301_v31, 0.0 }
 0xd64   : > { %v2178_v37 = vsel %vm1883_vm1, %v2176_v35, -inf }
 0xd65   : > { %2179 = vmax.xlane.f32.xlu2 %v2178_v37 }
 0xd66   : > { %2102 = vrot.lane.b32.xlu1 %v3816_v6, %s3378_s18  ;;  %s4117_s18 = sld [smem:[#allocation23_spill]] }
 0xd67   : > { %v2171_v39 = vpop.f32.mrf.mxu2 }
 0xd68   : > { %v2175_v40 = vmul.f32 0.25, %v2171_v39 }
 0xd6a   : > { %v2177_v54 = vadd.f32 %v2175_v40, %v3840_v23 }
 0xd6c   : > { %v2181_v10 = vsel %vm1883_vm1, %v2177_v54, -inf }
 0xd6d   : > { %1975 = vadd.xlane.f32.xlu2 %v1974_v42  ;;  %2182 = vmax.xlane.f32.xlu0 %v2181_v10 }
 0xd75   : > { %2095 = vadd.xlane.f32.xlu2 %v2094_v43 }
 0xd81   : > { %1982 = vrot.lane.b32.xlu0 %v3816_v6, %s3377_s12  ;;  %s4116_s12 = scalar_lea.vmem %s4040_s17, %s3533_s7 }
 0xdc0   : > { %v2093_v53 = vpop.xlane.xlu1 %2092 }
 0xdd8   : > { %v2180_v44 = vpop.xlane.xlu2 %2179  ;;  %v2103_v59 = vpop.permute.xlu1 %2102 }
 0xdd9   : > { %v2184_v45 = vsub.f32 %v2176_v35, %v2180_v44  ;;  %v2108_v5 = vsel %vm1912_vm2, %v2103_v59, 0  ;;  %v3072_v59 = vld [vmem:[%s3603_s0 + $0x30] sm:$0xf] }
 0xddb   : > { %v2186_v46 = vmul.f32 1.442695, %v2184_v45 }
 0xddd   : > { %3302 = vpow2.f32 %v2186_v46 }
 0xde0   : > { %v2183_v47 = vpop.xlane.xlu0 %2182  ;;  %v1976_v52 = vpop.xlane.xlu2 %1975 }
 0xde1   : > { %v2185_v23 = vsub.f32 %v2177_v54, %v2183_v47  ;;  %v3242_v54 = vld [vmem:[%s4116_s12] ss:$0 sm:$0xff] }
 0xde3   : > { %v3303_v49 = vpop.eup %3302  ;;  %v2188_v50 = vmul.f32 1.442695, %v2185_v23 }
 0xde4   : > { %v2190_v51 = vsel %vm1883_vm1, %v3303_v49, 0.0 }
 0xde5   : > { %3304 = vpow2.f32 %v2188_v50  ;;  %2191 = vadd.xlane.f32.xlu2 %v2190_v51 }
 0xde6   : > { %3306 = vrcp.f32 %v1976_v52 }
 0xde7   : > { %3308 = vrcp.f32 %v1973_v48 }
 0xde8   : > { %v2096_v7 = vpop.xlane.xlu2 %2095 }
 0xde9   : > { %3310 = vrcp.f32 %v2096_v7  ;;  %v3184_v7 = vld [vmem:[%s3603_s0 + $0x24] sm:$0xf0] }
 0xdea   : > { %3312 = vrcp.f32 %v2093_v53 }
 0xdeb   : > { %v3305_v57 = vpop.eup %3304 }
 0xdec   : > { %v2193_v58 = vsel %vm1883_vm1, %v3305_v57, 0.0  ;;  %v3307_v63 = vpop.eup %3306 }
 0xded   : > { %2194 = vadd.xlane.f32.xlu0 %v2193_v58  ;;  %v3309_v0 = vpop.eup %3308  ;;  %v1980_v1 = vmul.f32 %v3307_v63, %v3299_v41 }
 0xdee   : > { %v1979_v3 = vmul.f32 %v3309_v0, %v3870_v16 }
 0xdef   : > { %v3311_v61 = vpop.eup %3310 }
 0xdf0   : > { %v1981_v60 = vpack.c.bf16 %v1980_v1, %v1979_v3  ;;  %v3313_v9 = vpop.eup %3312  ;;  %v2100_v11 = vmul.f32 %v3311_v61, %v3301_v31  ;;  %v3186_v1 = vld [vmem:[%s3603_s0 + $0x34] sm:$0xf0]  ;;  %v3183_v61 = vld [vmem:[%s3603_s0 + $0x24] sm:$0xf] }
 0xdf1   : > { %v2099_v62 = vmul.f32 %v3313_v9, %v3875_v22  ;;  %v3073_v3 = vor.u32 %v3186_v1, %v3072_v59  ;;  %v3189_v59 = vld [vmem:[%s3614_s27 + $0x10] sm:$0xff] }
 0xdf2   : > { %v3197_v1 = vld [vmem:[%s3614_s27 + $0x50] sm:$0xff] }
 0xdf3   : > { %v1983_v2 = vpop.permute.xlu0 %1982  ;;  %v2101_v12 = vpack.c.bf16 %v2100_v11, %v2099_v62  ;;  %v3066_v11 = vld [vmem:[%s3603_s0 + $0x28] sm:$0xf0] }
 0xdf4   : > { %v1988_v4 = vsel %vm1912_vm2, %v1983_v2, 0  ;;  %v3185_v2 = vld [vmem:[%s3603_s0 + $0x34] sm:$0xf]  ;;  %v3069_v62 = vor.u32 %v3183_v61, %v3066_v11  ;;  %v3195_v11 = vld [vmem:[%s3614_s27 + $0x40] sm:$0xff] }
 0xdf5   : > { %1997 = vmatpush.bf16.msrb.mxu1 %v1988_v4  ;;  %v3074_v4 = vld [vmem:[%s3603_s0 + $0x38] sm:$0xf0] }
 0xdf8   : > { %3021 = vmatmul.msk.bf16.vlgmr.msrb.gmra.mxu1 %vm1883_vm1, %v1981_v60  ;;  %v3064_v60 = vld [vmem:[%s3603_s0 + $0x20] sm:$0xf] }
 0xdf9   : > { %2117 = vmatpush.bf16.msra.mxu1 %v2108_v5  ;;  %v3077_v5 = vor.u32 %v3185_v2, %v3074_v4  ;;  %v3065_v9 = vor.u32 %v3184_v7, %v3064_v60  ;;  %v2320_v2 = vld [vmem:[%s3608_s30] sm:$0x3]  ;;  %v3196_v4 = vld [vmem:[%s3614_s27 + $0x48] sm:$0xff] }
 0xdfa   : > { %v2324_v60 = vperm.slane %v2320_v2, 1 }
 0xdfb   : > { %2388 = vmatpush.bf16.msra.mxu2 %v3077_v5  ;;  %v2323_v5 = vperm.slane %v2320_v2, 0 }
 0xdfd   : > { %2201 = vrot.lane.b32.xlu2 %v3816_v6, %s3379_s19  ;;  %2240 = vmatpush.bf16.msrb.mxu1 %v3178_v33  ;;  %s4118_s19 = scalar_lea.vmem %s4117_s18, %s3533_s7  ;;  %s4125_s7 = sld [smem:[#allocation31_spill]] }
 0xdfe   : > { %s3385_s18 = smov 8  }
 0xdff   : > { %2389 = vmatpush.bf16.msra.mxu2 %v3069_v62 }
 0xe08   : > { %3033 = vmatmul.msk.bf16.vlgmr.msra.gmra.mxu1 %vm1883_vm1, %v2101_v12  ;;  %v3056_v12 = vld [vmem:[%s3603_s0 + $0x10] sm:$0xf] }
 0xe58   : > { %v2192_v26 = vpop.xlane.xlu2 %2191 }
 0xe59   : > { %3314 = vrcp.f32 %v2192_v26  ;;  %v3182_v26 = vld [vmem:[%s3603_s0 + $0x14] sm:$0xf0] }
 0xe5f   : > { %v3315_v6 = vpop.eup %3314 }
 0xe60   : > { %v2202_v14 = vpop.permute.xlu2 %2201  ;;  %v2195_v15 = vpop.xlane.xlu0 %2194  ;;  %v2198_v18 = vmul.f32 %v3315_v6, %v3303_v49 }
 0xe61   : > { %v2207_v16 = vsel %vm1912_vm2, %v2202_v14, 0  ;;  %3316 = vrcp.f32 %v2195_v15  ;;  %v3057_v14 = vor.u32 %v3182_v26, %v3056_v12  ;;  %v3058_v15 = vld [vmem:[%s3603_s0 + $0x18] sm:$0xf0] }
 0xe62   : > { %2216 = vmatpush.bf16.msrb.mxu0 %v2207_v16  ;;  %v3061_v16 = vor.u32 %v3181_v13, %v3058_v15 }
 0xe64   : > { %2390 = vmatpush.bf16.msra.mxu2 %v3061_v16 }
 0xe67   : > { %v3317_v17 = vpop.eup %3316 }
 0xe68   : > { %v2199_v19 = vmul.f32 %v3317_v17, %v3305_v57 }
 0xe6a   : > { %v2200_v20 = vpack.c.bf16 %v2199_v19, %v2198_v18  ;;  %v3048_v18 = vld [vmem:[%s3603_s0] sm:$0xf]  ;;  %v3180_v19 = vld [vmem:[%s3603_s0 + $0x4] sm:$0xf0] }
 0xe6b   : > { %v3049_v21 = vor.u32 %v3180_v19, %v3048_v18 }
 0xe6c   : > { %3040 = vmatmul.msk.bf16.vlgmr.msrb.gmra.mxu0 %vm1883_vm1, %v2200_v20  ;;  %v3179_v20 = vld [vmem:[%s3603_s0 + $0x4] sm:$0xf] }
 0xe75   : > { %v1999_v22 = vpop.f32.mrf.mxu1 }
 0xe7d   : > { %v2001_v24 = vpop.f32.mrf.mxu1 }
 0xe7e   : > { %v2004_v28 = vpack.c.bf16 %v2001_v24, %v1999_v22  ;;  %v3050_v22 = vld [vmem:[%s3603_s0 + $0x8] sm:$0xf0]  ;;  %s3384_s0 = smov 128  }
 0xe80   : > { %3026 = vmatmul.msk.bf16.vlgmr.msra.gmra.mxu3 %vm1274_vm9, %v2004_v28  ;;  %v3053_v28 = vor.u32 %v3179_v20, %v3050_v22 }
 0xe81   : > { %2374 = vmatpush.bf16.msra.mxu3 %v3073_v3  ;;  %v3188_v3 = vld [vmem:[%s3614_s27 + $0x8] sm:$0xff] }
 0xe82   : > { %2391 = vmatpush.bf16.msra.mxu2 %v3053_v28 }
 0xe85   : > { %v2119_v29 = vpop.f32.mrf.mxu1  ;;  %2375 = vmatpush.bf16.msra.mxu3 %v3065_v9  ;;  %v3187_v9 = vld [vmem:[%s3614_s27] sm:$0xff] }
 0xe89   : > { %2376 = vmatpush.bf16.msra.mxu3 %v3057_v14 }
 0xe8d   : > { %v2121_v30 = vpop.f32.mrf.mxu1  ;;  %2377 = vmatpush.bf16.msra.mxu3 %v3049_v21 }
 0xe8e   : > { %v2124_v32 = vpack.c.bf16 %v2121_v30, %v2119_v29 }
 0xe90   : > { %3038 = vmatmul.msk.bf16.vlgmr.msrb.gmra.mxu3 %vm1274_vm9, %v2124_v32 }
 0xee9   : > { %v2218_v34 = vpop.f32.mrf.mxu0 }
 0xef1   : > { %v2220_v35 = vpop.f32.mrf.mxu0 }
 0xef2   : > { %v2223_v36 = vpack.c.bf16 %v2220_v35, %v2218_v34 }
 0xef4   : > { %3045 = vmatmul.msk.bf16.vlgmr.msrb.gmra.mxu1 %vm1274_vm9, %v2223_v36 }
 0xf03   : > { %v2023_v37 = vpop.f32.mrf.mxu3 }
 0xf04   : > { %v2047_v40 = vadd.f32 %v3879_v25, %v2023_v37 }
 0xf0b   : > { %v2025_v38 = vpop.f32.mrf.mxu3 }
 0xf0c   : > { %v2049_v44 = vadd.f32 %v3881_v27, %v2025_v38 }
 0xf13   : > { %v2143_v39 = vpop.f32.mrf.mxu3 }
 0xf14   : > { %v2148_v41 = vadd.f32 %v2143_v39, %v2047_v40 }
 0xf1b   : > { %v2145_v43 = vpop.f32.mrf.mxu3 }
 0xf1c   : > { %v2149_v46 = vadd.f32 %v2145_v43, %v2049_v44 }
 0xf71   : > { %v2242_v42 = vpop.f32.mrf.mxu1 }
 0xf72   : > { %v2247_v10 = vadd.f32 %v2242_v42, %v2148_v41 }
 0xf74   : > { %v2252_v31 = vadd.f32 %v3242_v54, %v2247_v10 }
 0xf76   : > { %v2254_v45 = vadd.f32 %v2252_v31, %v3804_v55  ;;  %v3243_v31 = vld [vmem:[%s4118_s19] ss:$0 sm:$0xff] }
 0xf78   : > { %v2258_v47 = vsel %vm1222_vm8, %v2254_v45, 0.0 }
 0xf79   : > { %2259 = vadd.xlane.f32.xlu1 %v2258_v47  ;;  %v2244_v23 = vpop.f32.mrf.mxu1 }
 0xf7a   : > { %v2248_v25 = vadd.f32 %v2244_v23, %v2149_v46  ;;  %v3244_v46 = vld [vmem:[%s4120_s4] ss:$0 sm:$0xff] }
 0xf7c   : > { %v2253_v48 = vadd.f32 %v3242_v54, %v2248_v25 }
 0xf7e   : > { %v2255_v49 = vadd.f32 %v2253_v48, %v3806_v56 }
 0xf80   : > { %v2261_v50 = vsel %vm1222_vm8, %v2255_v49, 0.0 }
 0xf81   : > { %2262 = vadd.xlane.f32.xlu2 %v2261_v50 }
 0xfec   : > { %v2260_v51 = vpop.xlane.xlu1 %2259 }
 0xfed   : > { %v2264_v27 = vmul.f32 %v2260_v51, %v3771_v8  ;;  %v3194_v51 = vld [vmem:[%s3614_s27 + $0x38] sm:$0xff] }
 0xfee   : > { %2568 = vmatpush.bf16.msra.mxu0 %v3194_v51 }
 0xfef   : > { %v3923_v55 = vsub.f32 %v2254_v45, %v2264_v27  ;;  %v3202_v27 = vld [vmem:[%s3614_s27 + $0x78] sm:$0xff] }
 0xff0   : > { %2582 = vmatpush.bf16.msra.mxu1 %v3202_v27 }
 0xff1   : > { %v2268_v52 = vmul.f32 %v3923_v55, %v3923_v55 }
 0xff3   : > { %v2270_v53 = vsel %vm1222_vm8, %v2268_v52, 0.0  ;;  %v3201_v52 = vld [vmem:[%s3614_s27 + $0x70] sm:$0xff] }
 0xff4   : > { %2271 = vadd.xlane.f32.xlu0 %v2270_v53  ;;  %v2263_v56 = vpop.xlane.xlu2 %2262  ;;  %2583 = vmatpush.bf16.msra.mxu1 %v3201_v52  ;;  %v3192_v53 = vld [vmem:[%s3614_s27 + $0x28] sm:$0xff] }
 0xff5   : > { %v2265_v57 = vmul.f32 %v2263_v56, %v3771_v8  ;;  %v3200_v56 = vld [vmem:[%s3614_s27 + $0x68] sm:$0xff] }
 0xff7   : > { %v3929_v58 = vsub.f32 %v2255_v49, %v2265_v57  ;;  %v3191_v57 = vld [vmem:[%s3614_s27 + $0x20] sm:$0xff] }
 0xff8   : > { %2584 = vmatpush.bf16.msra.mxu1 %v3200_v56 }
 0xff9   : > { %v2269_v63 = vmul.f32 %v3929_v58, %v3929_v58 }
 0xffb   : > { %v2273_v0 = vsel %vm1222_vm8, %v2269_v63, 0.0  ;;  %v3190_v63 = vld [vmem:[%s3614_s27 + $0x18] sm:$0xff] }
 0xffc   : > { %2274 = vadd.xlane.f32.xlu0 %v2273_v0  ;;  %v3198_v0 = vld [vmem:[%s3614_s27 + $0x58] sm:$0xff] }
0x1067   : > { %v2272_v6 = vpop.xlane.xlu0 %2271 }
0x1068   : > { %v2276_v17 = vmul.f32 %v2272_v6, %v3771_v8 }
0x106a   : > { %v2278_v24 = vadd.f32 1e-12, %v2276_v17 }
0x106c   : > { %3318 = vrsqrt.f32 %v2278_v24  ;;  %vm2286_vm4 = vweird.f32 %v2278_v24 }
0x106f   : > { %v2275_v29 = vpop.xlane.xlu0 %2274 }
0x1070   : > { %v2277_v30 = vmul.f32 %v2275_v29, %v3771_v8 }
0x1072   : > { %v3319_v32 = vpop.eup %3318  ;;  %v2279_v33 = vadd.f32 1e-12, %v2277_v30 }
0x1073   : > { %v2281_v34 = vmul.f32 %v3319_v32, %v2278_v24  ;;  %vm2287_vm3 = vweird.f32 %v3319_v32 }
0x1074   : > { %3320 = vrsqrt.f32 %v2279_v33  ;;  %vm2288_vm5 = vmor %vm2286_vm4, %vm2287_vm3  ;;  %vm2296_vm7 = vweird.f32 %v2279_v33 }
0x1075   : > { %v2282_v35 = vmul.f32 %v3319_v32, %v2281_v34 }
0x1077   : > { %v2283_v36 = vmul.f32 0.5, %v2282_v35 }
0x1079   : > { %v2284_v37 = vsub.f32 1.5, %v2283_v36 }
0x107a   : > { %v3321_v38 = vpop.eup %3320 }
0x107b   : > { %v2285_v39 = vmul.f32 %v3319_v32, %v2284_v37  ;;  %v2291_v40 = vmul.f32 %v3321_v38, %v2279_v33  ;;  %vm2297_vm6 = vweird.f32 %v3321_v38 }
0x107c   : > { %vm2298_vm9 = vmor %vm2296_vm7, %vm2297_vm6 }
0x107d   : > { %v2292_v41 = vmul.f32 %v3321_v38, %v2291_v40  ;;  %v2289_v54 = vsel %vm2288_vm5, %v3319_v32, %v2285_v39 }
0x107e   : > { %v2300_v43 = vmul.f32 %v2289_v54, %v3923_v55  ;;  %v3193_v55 = vld [vmem:[%s3614_s27 + $0x30] sm:$0xff] }
0x107f   : > { %v2293_v42 = vmul.f32 0.5, %v2292_v41  ;;  %2569 = vmatpush.bf16.msra.mxu0 %v3193_v55 }
0x1080   : > { %v2305_v47 = vmul.f32 %v3243_v31, %v2300_v43 }
0x1081   : > { %v2294_v10 = vsub.f32 1.5, %v2293_v42 }
0x1082   : > { %v3964_v48 = vadd.f32 %v3244_v46, %v2305_v47 }
0x1083   : > { %v2295_v44 = vmul.f32 %v3321_v38, %v2294_v10  ;;  %2570 = vmatpush.bf16.msra.mxu0 %v3192_v53  ;;  %v3245_v53 = vld [vmem:[%s1079_s1] ss:$0 sm:$0xff] }
0x1085   : > { %v2299_v45 = vsel %vm2298_vm9, %v3321_v38, %v2295_v44 }
0x1086   : > { %v2301_v23 = vmul.f32 %v2299_v45, %v3929_v58  ;;  %v3199_v58 = vld [vmem:[%s3614_s27 + $0x60] sm:$0xff] }
0x1087   : > { %2571 = vmatpush.bf16.msra.mxu0 %v3191_v57  ;;  %2585 = vmatpush.bf16.msra.mxu1 %v3199_v58 }
0x1088   : > { %v2306_v25 = vmul.f32 %v3243_v31, %v2301_v23 }
0x108a   : > { %v3966_v49 = vadd.f32 %v3244_v46, %v2306_v25 }
0x108b   : > { %2572 = vmatpush.bf16.msra.mxu0 %v3190_v63  ;;  %2586 = vmatpush.bf16.msra.mxu1 %v3198_v0 }
0x108c   : > { %v2321_v50 = vpack.c.bf16 %v3966_v49, %v3964_v48 }
0x108e   : > { %3078 = vmatmul.msk.bf16.vlgmr.msra.gmra.mxu3 %vm1222_vm8, %v2321_v50  ;;  %3079 = vmatmul.msk.bf16.vlgmr.msra.gmra.mxu2 %vm1222_vm8, %v2321_v50 }
0x108f   : > { %2573 = vmatpush.bf16.msra.mxu0 %v3189_v59  ;;  %2587 = vmatpush.bf16.msra.mxu1 %v3197_v1 }
0x1093   : > { %2574 = vmatpush.bf16.msra.mxu0 %v3188_v3  ;;  %2588 = vmatpush.bf16.msra.mxu1 %v3196_v4 }
0x1097   : > { %2575 = vmatpush.bf16.msra.mxu0 %v3187_v9  ;;  %2589 = vmatpush.bf16.msra.mxu1 %v3195_v11 }
0x1111   : > { %v2379_v7 = vpop.f32.mrf.mxu3  ;;  %v2393_v61 = vpop.f32.mrf.mxu2 }
0x1112   : > { %v2380_v62 = vadd.f32 %v2379_v7, %v2323_v5  ;;  %v2394_v12 = vadd.f32 %v2393_v61, %v2324_v60 }
0x1114   : > { %v2398_v26 = vmul.f32 %v2380_v62, %v2380_v62  ;;  %v2399_v13 = vmul.f32 %v2394_v12, %v2394_v12 }
0x1116   : > { %v2402_v14 = vmul.f32 %v2398_v26, %v2380_v62  ;;  %v2403_v15 = vmul.f32 %v2399_v13, %v2394_v12 }
0x1118   : > { %v2406_v16 = vmul.f32 0.044715, %v2402_v14  ;;  %v2407_v6 = vmul.f32 0.044715, %v2403_v15 }
0x1119   : > { %v2381_v17 = vpop.f32.mrf.mxu3  ;;  %v2395_v18 = vpop.f32.mrf.mxu2 }
0x111a   : > { %v2410_v19 = vadd.f32 %v2406_v16, %v2380_v62  ;;  %v2411_v20 = vadd.f32 %v2407_v6, %v2394_v12  ;;  %v2382_v21 = vadd.f32 %v2381_v17, %v2323_v5  ;;  %v2396_v22 = vadd.f32 %v2395_v18, %v2324_v60 }
0x111c   : > { %v2414_v24 = vmul.f32 0.7978846, %v2410_v19  ;;  %v2400_v28 = vmul.f32 %v2382_v21, %v2382_v21  ;;  %v2401_v29 = vmul.f32 %v2396_v22, %v2396_v22  ;;  %v2415_v30 = vmul.f32 0.7978846, %v2411_v20 }
0x111e   : > { %v2404_v32 = vmul.f32 %v2400_v28, %v2382_v21  ;;  %v2405_v33 = vmul.f32 %v2401_v29, %v2396_v22  ;;  %3322 = vtanh.f32 %v2414_v24 }
0x111f   : > { %3324 = vtanh.f32 %v2415_v30 }
0x1120   : > { %v2408_v34 = vmul.f32 0.044715, %v2404_v32  ;;  %v2409_v35 = vmul.f32 0.044715, %v2405_v33  ;;  %v3246_v32 = vld [vmem:[%s1082_s28] ss:$0 sm:$0xff] }
0x1121   : > { %s3383_s28 = smov [#allocation2]  }
0x1122   : > { %v2412_v36 = vadd.f32 %v2408_v34, %v2382_v21  ;;  %v2413_v37 = vadd.f32 %v2409_v35, %v2396_v22  ;;  %v3247_v34 = vld [vmem:[%s1085_s5] ss:$0 sm:$0xff]  ;;  %s2661_s23 = sshll.u32 %s3383_s28, 4  ;;  %s2663_s5 = sshll.u32 %s4125_s7, 4  ;;  %s2662_s23 = int_to_ptr.vmem [resolvable:$true] %s2661_s23  ;;  %s2664_s5 = int_to_ptr.hbm [resolvable:$true] %s2663_s5 }
0x1124   : > { %v2416_v38 = vmul.f32 0.7978846, %v2412_v36  ;;  %v2417_v39 = vmul.f32 0.7978846, %v2413_v37  ;;  %v3323_v40 = vpop.eup %3322 }
0x1125   : > { %v3325_v41 = vpop.eup %3324  ;;  %v2422_v54 = vadd.f32 1.0, %v3323_v40 }
0x1126   : > { %3326 = vtanh.f32 %v2416_v38  ;;  %v2423_v42 = vadd.f32 1.0, %v3325_v41 }
0x1127   : > { %3328 = vtanh.f32 %v2417_v39  ;;  %v2426_v43 = vmul.f32 0.5, %v2422_v54 }
0x1128   : > { %v2427_v45 = vmul.f32 0.5, %v2423_v42 }
0x1129   : > { %v2430_v25 = vmul.f32 %v2426_v43, %v2380_v62 }
0x112a   : > { %v2431_v51 = vmul.f32 %v2427_v45, %v2394_v12 }
0x112c   : > { %v3327_v10 = vpop.eup %3326 }
0x112d   : > { %v3329_v31 = vpop.eup %3328  ;;  %v2424_v44 = vadd.f32 1.0, %v3327_v10 }
0x112e   : > { %v2425_v46 = vadd.f32 1.0, %v3329_v31 }
0x112f   : > { %v2428_v47 = vmul.f32 0.5, %v2424_v44 }
0x1130   : > { %v2429_v23 = vmul.f32 0.5, %v2425_v46 }
0x1131   : > { %v2432_v50 = vmul.f32 %v2428_v47, %v2382_v21 }
0x1132   : > { %v2433_v27 = vmul.f32 %v2429_v23, %v2396_v22 }
0x1133   : > { %v2467_v55 = vpack.c.bf16 %v2432_v50, %v2430_v25 }
0x1134   : > { %v2468_v52 = vpack.c.bf16 %v2433_v27, %v2431_v51 }
0x1135   : > { %2576 = vmatmul.bf16.vlgmr.msra.gmra.mxu0 %v2467_v55 }
0x1136   : > { %2590 = vmatmul.bf16.vlgmr.msra.gmra.mxu1 %v2468_v52 }
0x11b2   : > { %v2577_v56 = vpop.f32.mrf.mxu0 }
0x11b3   : > { %v2578_v57 = vadd.f32 %v3245_v53, %v2577_v56  ;;  %v2591_v58 = vpop.f32.mrf.mxu1 }
0x11b5   : > { %v2592_v63 = vadd.f32 %v2591_v58, %v2578_v57 }
0x11b7   : > { %v2596_v0 = vadd.f32 %v2592_v63, %v3964_v48 }
0x11b9   : > { %v2600_v59 = vsel %vm1222_vm8, %v2596_v0, 0.0 }
0x11ba   : > { %v2579_v1 = vpop.f32.mrf.mxu0  ;;  %2601 = vadd.xlane.f32.xlu0 %v2600_v59 }
0x11bb   : > { %v2580_v2 = vadd.f32 %v3245_v53, %v2579_v1  ;;  %v2593_v3 = vpop.f32.mrf.mxu1 }
0x11bd   : > { %v2594_v4 = vadd.f32 %v2593_v3, %v2580_v2 }
0x11bf   : > { %v2597_v5 = vadd.f32 %v2594_v4, %v3966_v49 }
0x11c1   : > { %v2603_v60 = vsel %vm1222_vm8, %v2597_v5, 0.0 }
0x11c2   : > { %2604 = vadd.xlane.f32.xlu1 %v2603_v60 }
0x122d   : > { %v2602_v7 = vpop.xlane.xlu0 %2601 }
0x122e   : > { %v2606_v61 = vmul.f32 %v2602_v7, %v3771_v8 }
0x1230   : > { %v2608_v9 = vsub.f32 %v2596_v0, %v2606_v61 }
0x1232   : > { %v2610_v11 = vmul.f32 %v2608_v9, %v2608_v9 }
0x1234   : > { %v2612_v62 = vsel %vm1222_vm8, %v2610_v11, 0.0 }
0x1235   : > { %v2605_v48 = vpop.xlane.xlu1 %2604  ;;  %2613 = vadd.xlane.f32.xlu0 %v2612_v62 }
0x1236   : > { %v2607_v12 = vmul.f32 %v2605_v48, %v3771_v8 }
0x1238   : > { %v2609_v26 = vsub.f32 %v2597_v5, %v2607_v12 }
0x123a   : > { %v2611_v13 = vmul.f32 %v2609_v26, %v2609_v26 }
0x123c   : > { %v2615_v14 = vsel %vm1222_vm8, %v2611_v13, 0.0 }
0x123d   : > { %2616 = vadd.xlane.f32.xlu2 %v2615_v14 }
0x12a8   : > { %v2614_v49 = vpop.xlane.xlu0 %2613 }
0x12a9   : > { %v2618_v15 = vmul.f32 %v2614_v49, %v3771_v8 }
0x12ab   : > { %v2620_v16 = vadd.f32 1e-12, %v2618_v15 }
0x12ad   : > { %3330 = vrsqrt.f32 %v2620_v16  ;;  %vm2628_vm11 = vweird.f32 %v2620_v16 }
0x12b0   : > { %v2617_v6 = vpop.xlane.xlu2 %2616 }
0x12b1   : > { %v2619_v17 = vmul.f32 %v2617_v6, %v3771_v8 }
0x12b3   : > { %v3331_v18 = vpop.eup %3330  ;;  %v2621_v19 = vadd.f32 1e-12, %v2619_v17 }
0x12b4   : > { %v2623_v20 = vmul.f32 %v3331_v18, %v2620_v16  ;;  %vm2629_vm10 = vweird.f32 %v3331_v18 }
0x12b5   : > { %3332 = vrsqrt.f32 %v2621_v19  ;;  %vm2630_vm12 = vmor %vm2628_vm11, %vm2629_vm10  ;;  %vm2638_vm14 = vweird.f32 %v2621_v19 }
0x12b6   : > { %v2624_v21 = vmul.f32 %v3331_v18, %v2623_v20 }
0x12b8   : > { %v2625_v22 = vmul.f32 0.5, %v2624_v21 }
0x12ba   : > { %v2626_v24 = vsub.f32 1.5, %v2625_v22 }
0x12bb   : > { %v3333_v28 = vpop.eup %3332 }
0x12bc   : > { %v2627_v29 = vmul.f32 %v3331_v18, %v2626_v24  ;;  %v2633_v30 = vmul.f32 %v3333_v28, %v2621_v19  ;;  %vm2639_vm13 = vweird.f32 %v3333_v28 }
0x12bd   : > { %vm2640_vm15 = vmor %vm2638_vm14, %vm2639_vm13 }
0x12be   : > { %v2631_v8 = vsel %vm2630_vm12, %v3331_v18, %v2627_v29  ;;  %v2634_v33 = vmul.f32 %v3333_v28, %v2633_v30 }
0x12bf   : > { %v2642_v35 = vmul.f32 %v2631_v8, %v2608_v9 }
0x12c0   : > { %v2635_v36 = vmul.f32 0.5, %v2634_v33 }
0x12c1   : > { %v2647_v37 = vmul.f32 %v3246_v32, %v2642_v35 }
0x12c2   : > { %v2636_v38 = vsub.f32 1.5, %v2635_v36 }
0x12c3   : > { %v2652_v39 = vadd.f32 %v3247_v34, %v2647_v37 }
0x12c4   : > { %v2637_v40 = vmul.f32 %v3333_v28, %v2636_v38 }
0x12c5   : > { %2654 = vst.msk [vmem:[#allocation2] sm:$0xff] %vm1222_vm8, %v2652_v39 }
0x12c6   : > { %v2641_v41 = vsel %vm2640_vm15, %v3333_v28, %v2637_v40 }
0x12c7   : > { %v2643_v54 = vmul.f32 %v2641_v41, %v2609_v26 }
0x12c9   : > { %v2648_v42 = vmul.f32 %v3246_v32, %v2643_v54 }
0x12cb   : > { %v2653_v10 = vadd.f32 %v3247_v34, %v2648_v42 }
0x12cd   : > { %2655 = vst.msk [vmem:[#allocation2 + $0x8] sm:$0xff] %vm1222_vm8, %v2653_v10 }
0x12ce   : > { %3204 = dma.vmem_to_hbm [thread:$0]  (%p3207_p5), %s2662_s23, 256, %s2664_s5, [#allocation3], %s3384_s0, %s3384_s0, %s3385_s18  }
0x12cf   : > { %3367 = dma.done.wait (%p3207_p5), [#allocation3], 256  }
0x12d0   : > { %3369 = vsyncadd (%p3207_p5), [#allocation3], 4294967040 }
0x12d1 PF: > { %s4126_s19 = sld [smem:[#allocation5_spill]] }
0x12d7   : > { %s37_s27 = sadd.s32 1, %s4126_s19  }
0x12d8   : > { %p34_p6 = scmp.ge.s32.totalorder %s37_s27, 4  }
0x12da   :  { %36 = sbr.rel (!%p34_p6) target bundleno = 25 (0x19), region = 212 }
0x12df   :  { %2680 = vsyncpa [#allocation3], 1 }
0x12e0   :  { %2682 = vsyncpa [#allocation3 + $0x1], 1 }

</bundles_post_ra>
